<compile_context>
chip_gen: v6e
topology: v6e:2x2x1
jax: 0.10.0
libtpu: 0.0.40
codegen_flags: <defaults>
</compile_context>

<pallas_src>
import functools

import numpy as np
import jax
import jax.numpy as jnp
from jax.experimental import pallas as pl
from jax.experimental.pallas import tpu as pltpu

_SUBLANE = 8


def _round_up(x, m):
    return ((x + m - 1) // m) * m


# --------------------------------------------------------------------------
# Pallas kernel: fused (patches @ Wmat) * scale + shift, then ReLU.
# --------------------------------------------------------------------------
def _conv_bn_relu_kernel(p_ref, w_ref, scale_ref, shift_ref, o_ref):
    # p_ref:     (tm, Kdim)   tile of im2col rows (output pixels)
    # w_ref:     (Kdim, Cout) full weight matrix, resident across grid steps
    # scale_ref: (1, Cout)    folded BN scale  (gamma / sqrt(var + eps))
    # shift_ref: (1, Cout)    folded BN shift  (beta - mean * scale)
    # o_ref:     (tm, Cout)
    acc = jnp.dot(p_ref[...], w_ref[...], preferred_element_type=jnp.float32)
    y = acc * scale_ref[...] + shift_ref[...]
    o_ref[...] = jnp.maximum(y, 0.0).astype(o_ref.dtype)


def _choose_tile_m(m, kdim, cout, vmem_budget=20 << 20):
    """Pick the pixel-row tile size.

    Small problems run as a single block; otherwise take the largest
    power-of-two tile that (a) fits a conservative VMEM budget counting the
    double-buffered patch tile, weight matrix and output tile, and (b) wastes
    at most ~12.5% of the grid on M-padding.
    """
    if m <= 512:
        return _round_up(max(m, _SUBLANE), _SUBLANE)
    for cand in (1024, 512, 256, 128):
        need = 4 * (2 * cand * kdim + 2 * kdim * cout + 2 * cand * cout)
        if need > vmem_budget:
            continue
        mp = _round_up(m, cand)
        if (mp - m) * 8 <= m:  # <= ~12.5% padding waste
            return cand
    return 128


def _conv_bn_relu_layer(x_nhwc, w, scale, shift, *, stride, pad, pad_mode):
    """One fused Conv2d (no bias) + inference-BN + ReLU layer.

    Args:
      x_nhwc: (N, H, W, Cin) float32.
      w:      (Cout, Cin, KH, KW) float32 conv weight (PyTorch layout).
      scale:  (Cout,) folded BN scale.
      shift:  (Cout,) folded BN shift.
      stride: conv stride.
      pad:    symmetric spatial padding amount.
      pad_mode: 'reflect' (ReflectionPad2d) or 'constant' (zero padding).
    Returns:
      (N, Ho, Wo, Cout) float32.
    """
    N, H, W, Cin = x_nhwc.shape
    Cout, Cin_w, KH, KW = w.shape
    assert Cin == Cin_w

    xp = jnp.pad(x_nhwc, ((0, 0), (pad, pad), (pad, pad), (0, 0)),
                 mode=pad_mode)
    Hp, Wp = H + 2 * pad, W + 2 * pad
    Ho = (Hp - KH) // stride + 1
    Wo = (Wp - KW) // stride + 1

    # im2col (channels innermost, tap order kh-major, kw-minor) -> each patch
    # row is a contiguous Kdim*4-byte run, so the Pallas input DMA streams
    # long contiguous segments.
    cols = []
    for kh in range(KH):
        for kw in range(KW):
            cols.append(xp[:, kh:kh + stride * Ho:stride,
                           kw:kw + stride * Wo:stride, :])
    Kdim = KH * KW * Cin
    M = N * Ho * Wo
    patches = jnp.concatenate(cols, axis=-1).reshape(M, Kdim)

    # (Cout, Cin, KH, KW) -> (KH, KW, Cin, Cout) -> (Kdim, Cout) to match the
    # patch column ordering above.
    wmat = jnp.transpose(w, (2, 3, 1, 0)).reshape(Kdim, Cout)
    scale2 = scale.reshape(1, Cout).astype(jnp.float32)
    shift2 = shift.reshape(1, Cout).astype(jnp.float32)

    # Large row tiles; pad M up to a tile multiple (padded rows are zero and
    # are sliced off afterwards).
    tm = _choose_tile_m(M, Kdim, Cout)
    Mp = _round_up(M, tm)
    if Mp != M:
        patches = jnp.pad(patches, ((0, Mp - M), (0, 0)))

    out_flat = pl.pallas_call(
        _conv_bn_relu_kernel,
        out_shape=jax.ShapeDtypeStruct((Mp, Cout), jnp.float32),
        grid=(Mp // tm,),
        in_specs=[
            pl.BlockSpec((tm, Kdim), lambda i: (i, 0)),    # pixel-row tile
            pl.BlockSpec((Kdim, Cout), lambda i: (0, 0)),  # full weight, reused
            pl.BlockSpec((1, Cout), lambda i: (0, 0)),     # BN scale
            pl.BlockSpec((1, Cout), lambda i: (0, 0)),     # BN shift
        ],
        out_specs=pl.BlockSpec((tm, Cout), lambda i: (i, 0)),
        compiler_params=pltpu.CompilerParams(
            dimension_semantics=("parallel",)),
        cost_estimate=pl.CostEstimate(
            flops=2 * Mp * Kdim * Cout,
            transcendentals=0,
            bytes_accessed=4 * (Mp * Kdim + Kdim * Cout + Mp * Cout)),
    )(patches, wmat, scale2, shift2)

    if Mp != M:
        out_flat = out_flat[:M]
    return out_flat.reshape(N, Ho, Wo, Cout)


# --------------------------------------------------------------------------
# Full ResnetGenerator_enc forward.
# --------------------------------------------------------------------------
def resnet_generator_enc_forward(x_nchw, params, *, n_downsampling=2):
    """Forward pass of ResnetGenerator_enc (eval-mode BatchNorm).

    Args:
      x_nchw: (N, input_nc, H, W) float32, PyTorch NCHW convention.
      params: dict with 'stem' and 'down' (see init_params).
    Returns:
      (N, ngf * 2**n_downsampling, H / 2**n_downsampling, ...) float32, NCHW.
    """
    x = jnp.transpose(x_nchw, (0, 2, 3, 1))  # NCHW -> NHWC (I/O boundary only)

    p = params["stem"]
    x = _conv_bn_relu_layer(x, p["w"], p["scale"], p["shift"],
                            stride=1, pad=3, pad_mode="reflect")
    for i in range(n_downsampling):
        p = params["down"][i]
        x = _conv_bn_relu_layer(x, p["w"], p["scale"], p["shift"],
                                stride=2, pad=1, pad_mode="constant")

    return jnp.transpose(x, (0, 3, 1, 2))  # NHWC -> NCHW


# --------------------------------------------------------------------------
# Parameter construction (deterministic) and plain-JAX reference.
# --------------------------------------------------------------------------
def _fold_bn(gamma, beta, mean, var, eps=1e-5):
    inv = gamma / jnp.sqrt(var + eps)
    return inv, beta - mean * inv


def init_params(key, input_nc, ngf, n_downsampling):
    def conv_w(k, cout, cin, ksize):
        fan_in = cin * ksize * ksize
        return (jax.random.normal(k, (cout, cin, ksize, ksize), jnp.float32)
                / np.sqrt(fan_in))

    def bn_params(k, c):
        k1, k2, k3, k4 = jax.random.split(k, 4)
        gamma = 1.0 + 0.1 * jax.random.normal(k1, (c,), jnp.float32)
        beta = 0.1 * jax.random.normal(k2, (c,), jnp.float32)
        mean = 0.1 * jax.random.normal(k3, (c,), jnp.float32)
        var = 0.5 + jax.random.uniform(k4, (c,), jnp.float32)
        return _fold_bn(gamma, beta, mean, var)

    ks = jax.random.split(key, 2 * (n_downsampling + 1))
    scale, shift = bn_params(ks[1], ngf)
    params = {"stem": {"w": conv_w(ks[0], ngf, input_nc, 7),
                       "scale": scale, "shift": shift},
              "down": []}
    for i in range(n_downsampling):
        cin = ngf * (2 ** i)
        cout = 2 * cin
        scale, shift = bn_params(ks[2 + 2 * i + 1], cout)
        params["down"].append({"w": conv_w(ks[2 + 2 * i], cout, cin, 3),
                               "scale": scale, "shift": shift})
    return params


def _reference_layer(x_nhwc, w, scale, shift, *, stride, pad, pad_mode):
    xp = jnp.pad(x_nhwc, ((0, 0), (pad, pad), (pad, pad), (0, 0)),
                 mode=pad_mode)
    w_hwio = jnp.transpose(w, (2, 3, 1, 0))
    y = jax.lax.conv_general_dilated(
        xp, w_hwio, window_strides=(stride, stride), padding="VALID",
        dimension_numbers=("NHWC", "HWIO", "NHWC"),
        precision=jax.lax.Precision.HIGHEST)
    y = y * scale.reshape(1, 1, 1, -1) + shift.reshape(1, 1, 1, -1)
    return jnp.maximum(y, 0.0)


def reference_forward(x_nchw, params, *, n_downsampling=2):
    x = jnp.transpose(x_nchw, (0, 2, 3, 1))
    p = params["stem"]
    x = _reference_layer(x, p["w"], p["scale"], p["shift"],
                         stride=1, pad=3, pad_mode="reflect")
    for i in range(n_downsampling):
        p = params["down"][i]
        x = _reference_layer(x, p["w"], p["scale"], p["shift"],
                             stride=2, pad=1, pad_mode="constant")
    return jnp.transpose(x, (0, 3, 1, 2))


if __name__ == "__main__":
    N, input_nc, Hin, Win = 2, 3, 16, 16
    ngf = 64
    n_downsampling = 2

    key = jax.random.PRNGKey(0)
    kx, kp = jax.random.split(key)
    x = jax.random.normal(kx, (N, input_nc, Hin, Win), dtype=jnp.float32)
    params = init_params(kp, input_nc, ngf, n_downsampling)

    forward = jax.jit(functools.partial(resnet_generator_enc_forward,
                                        n_downsampling=n_downsampling))
    y = forward(x, params)
    y = jax.block_until_ready(y)

    y_ref = reference_forward(x, params, n_downsampling=n_downsampling)
    np.testing.assert_allclose(np.asarray(y), np.asarray(y_ref),
                               rtol=1e-3, atol=1e-3)
    assert y.shape == (N, ngf * 2 ** n_downsampling,
                       Hin // 2 ** n_downsampling, Win // 2 ** n_downsampling)

    print("KERNEL_OK")
</pallas_src>

<mosaic_0001>
module attributes {stable_mosaic.version = 11 : i64} {
  func.func @_conv_bn_relu_kernel(%arg0: i32, %arg1: memref<512x147xf32, #tpu.memory_space<vmem>>, %arg2: memref<147x64xf32, #tpu.memory_space<vmem>>, %arg3: memref<1x64xf32, #tpu.memory_space<vmem>>, %arg4: memref<1x64xf32, #tpu.memory_space<vmem>>, %arg5: memref<512x64xf32, #tpu.memory_space<vmem>>) attributes {dimension_semantics = [#tpu.dimension_semantics<parallel>], iteration_bounds = array<i64: 1>, scalar_prefetch = 0 : i64, scratch_operands = 0 : i64, tpu.core_type = #tpu.core_type<tc>, window_params = [{transform_indices = @transform_0, window_bounds = array<i64: 512, 147>}, {pipeline_mode = #tpu.pipeline_mode<synchronous>, transform_indices = @transform_1, window_bounds = array<i64: 147, 64>}, {pipeline_mode = #tpu.pipeline_mode<synchronous>, transform_indices = @transform_2, window_bounds = array<i64: 1, 64>}, {pipeline_mode = #tpu.pipeline_mode<synchronous>, transform_indices = @transform_3, window_bounds = array<i64: 1, 64>}, {transform_indices = @transform_4, window_bounds = array<i64: 512, 64>}]} {
    %c0 = arith.constant 0 : index
    %c0_0 = arith.constant 0 : index
    %0 = vector.load %arg1[%c0, %c0_0] : memref<512x147xf32, #tpu.memory_space<vmem>>, vector<512x147xf32>
    %c0_1 = arith.constant 0 : index
    %c0_2 = arith.constant 0 : index
    %1 = vector.load %arg2[%c0_1, %c0_2] : memref<147x64xf32, #tpu.memory_space<vmem>>, vector<147x64xf32>
    %cst = arith.constant dense<0.000000e+00> : vector<512x64xf32>
    %2 = tpu.matmul %0, %1, %cst {dimension_numbers = #tpu.dot_dimension_numbers<[1], [0], [0], [1], [0, 0, 1, 1], [], []>} : vector<512x147xf32>, vector<147x64xf32>, vector<512x64xf32> -> vector<512x64xf32>
    %c0_3 = arith.constant 0 : index
    %c0_4 = arith.constant 0 : index
    %3 = vector.load %arg3[%c0_3, %c0_4] : memref<1x64xf32, #tpu.memory_space<vmem>>, vector<1x64xf32>
    %4 = vector.broadcast %3 : vector<1x64xf32> to vector<512x64xf32>
    %5 = arith.mulf %2, %4 : vector<512x64xf32>
    %c0_5 = arith.constant 0 : index
    %c0_6 = arith.constant 0 : index
    %6 = vector.load %arg4[%c0_5, %c0_6] : memref<1x64xf32, #tpu.memory_space<vmem>>, vector<1x64xf32>
    %7 = vector.broadcast %6 : vector<1x64xf32> to vector<512x64xf32>
    %8 = arith.addf %5, %7 : vector<512x64xf32>
    %cst_7 = arith.constant 0.000000e+00 : f32
    %9 = vector.broadcast %cst_7 : f32 to vector<512x64xf32>
    %10 = arith.maximumf %8, %9 : vector<512x64xf32>
    %c0_8 = arith.constant 0 : index
    %c0_9 = arith.constant 0 : index
    %11 = vector.load %arg5[%c0_8, %c0_9] : memref<512x64xf32, #tpu.memory_space<vmem>>, vector<512x64xf32>
    tpu.vector_store %arg5[%c0_8, %c0_9], %10 {strides = array<i32>} : memref<512x64xf32, #tpu.memory_space<vmem>>, vector<512x64xf32>,
    return
  }
  func.func @transform_0(%arg0: i32) -> (i32, i32) {
    %c0_i32 = arith.constant 0 : i32
    %c0_i32_0 = arith.constant 0 : i32
    return %arg0, %c0_i32 : i32, i32
  }
  func.func @transform_1(%arg0: i32) -> (i32, i32) {
    %c0_i32 = arith.constant 0 : i32
    %c0_i32_0 = arith.constant 0 : i32
    %c0_i32_1 = arith.constant 0 : i32
    return %c0_i32, %c0_i32_0 : i32, i32
  }
  func.func @transform_2(%arg0: i32) -> (i32, i32) {
    %c0_i32 = arith.constant 0 : i32
    %c0_i32_0 = arith.constant 0 : i32
    %c0_i32_1 = arith.constant 0 : i32
    return %c0_i32, %c0_i32_0 : i32, i32
  }
  func.func @transform_3(%arg0: i32) -> (i32, i32) {
    %c0_i32 = arith.constant 0 : i32
    %c0_i32_0 = arith.constant 0 : i32
    %c0_i32_1 = arith.constant 0 : i32
    return %c0_i32, %c0_i32_0 : i32, i32
  }
  func.func @transform_4(%arg0: i32) -> (i32, i32) {
    %c0_i32 = arith.constant 0 : i32
    %c0_i32_0 = arith.constant 0 : i32
    return %arg0, %c0_i32 : i32, i32
  }
}

module attributes {stable_mosaic.version = 11 : i64} {
  func.func @_conv_bn_relu_kernel(%arg0: i32, %arg1: memref<128x576xf32, #tpu.memory_space<vmem>>, %arg2: memref<576x128xf32, #tpu.memory_space<vmem>>, %arg3: memref<1x128xf32, #tpu.memory_space<vmem>>, %arg4: memref<1x128xf32, #tpu.memory_space<vmem>>, %arg5: memref<128x128xf32, #tpu.memory_space<vmem>>) attributes {dimension_semantics = [#tpu.dimension_semantics<parallel>], iteration_bounds = array<i64: 1>, scalar_prefetch = 0 : i64, scratch_operands = 0 : i64, tpu.core_type = #tpu.core_type<tc>, window_params = [{transform_indices = @transform_0, window_bounds = array<i64: 128, 576>}, {pipeline_mode = #tpu.pipeline_mode<synchronous>, transform_indices = @transform_1, window_bounds = array<i64: 576, 128>}, {pipeline_mode = #tpu.pipeline_mode<synchronous>, transform_indices = @transform_2, window_bounds = array<i64: 1, 128>}, {pipeline_mode = #tpu.pipeline_mode<synchronous>, transform_indices = @transform_3, window_bounds = array<i64: 1, 128>}, {transform_indices = @transform_4, window_bounds = array<i64: 128, 128>}]} {
    %c0 = arith.constant 0 : index
    %c0_0 = arith.constant 0 : index
    %0 = vector.load %arg1[%c0, %c0_0] : memref<128x576xf32, #tpu.memory_space<vmem>>, vector<128x576xf32>
    %c0_1 = arith.constant 0 : index
    %c0_2 = arith.constant 0 : index
    %1 = vector.load %arg2[%c0_1, %c0_2] : memref<576x128xf32, #tpu.memory_space<vmem>>, vector<576x128xf32>
    %cst = arith.constant dense<0.000000e+00> : vector<128x128xf32>
    %2 = tpu.matmul %0, %1, %cst {dimension_numbers = #tpu.dot_dimension_numbers<[1], [0], [0], [1], [0, 0, 1, 1], [], []>} : vector<128x576xf32>, vector<576x128xf32>, vector<128x128xf32> -> vector<128x128xf32>
    %c0_3 = arith.constant 0 : index
    %c0_4 = arith.constant 0 : index
    %3 = vector.load %arg3[%c0_3, %c0_4] : memref<1x128xf32, #tpu.memory_space<vmem>>, vector<1x128xf32>
    %4 = vector.broadcast %3 : vector<1x128xf32> to vector<128x128xf32>
    %5 = arith.mulf %2, %4 : vector<128x128xf32>
    %c0_5 = arith.constant 0 : index
    %c0_6 = arith.constant 0 : index
    %6 = vector.load %arg4[%c0_5, %c0_6] : memref<1x128xf32, #tpu.memory_space<vmem>>, vector<1x128xf32>
    %7 = vector.broadcast %6 : vector<1x128xf32> to vector<128x128xf32>
    %8 = arith.addf %5, %7 : vector<128x128xf32>
    %cst_7 = arith.constant 0.000000e+00 : f32
    %9 = vector.broadcast %cst_7 : f32 to vector<128x128xf32>
    %10 = arith.maximumf %8, %9 : vector<128x128xf32>
    %c0_8 = arith.constant 0 : index
    %c0_9 = arith.constant 0 : index
    %11 = vector.load %arg5[%c0_8, %c0_9] : memref<128x128xf32, #tpu.memory_space<vmem>>, vector<128x128xf32>
    tpu.vector_store %arg5[%c0_8, %c0_9], %10 {strides = array<i32>} : memref<128x128xf32, #tpu.memory_space<vmem>>, vector<128x128xf32>,
    return
  }
  func.func @transform_0(%arg0: i32) -> (i32, i32) {
    %c0_i32 = arith.constant 0 : i32
    %c0_i32_0 = arith.constant 0 : i32
    return %arg0, %c0_i32 : i32, i32
  }
  func.func @transform_1(%arg0: i32) -> (i32, i32) {
    %c0_i32 = arith.constant 0 : i32
    %c0_i32_0 = arith.constant 0 : i32
    %c0_i32_1 = arith.constant 0 : i32
    return %c0_i32, %c0_i32_0 : i32, i32
  }
  func.func @transform_2(%arg0: i32) -> (i32, i32) {
    %c0_i32 = arith.constant 0 : i32
    %c0_i32_0 = arith.constant 0 : i32
    %c0_i32_1 = arith.constant 0 : i32
    return %c0_i32, %c0_i32_0 : i32, i32
  }
  func.func @transform_3(%arg0: i32) -> (i32, i32) {
    %c0_i32 = arith.constant 0 : i32
    %c0_i32_0 = arith.constant 0 : i32
    %c0_i32_1 = arith.constant 0 : i32
    return %c0_i32, %c0_i32_0 : i32, i32
  }
  func.func @transform_4(%arg0: i32) -> (i32, i32) {
    %c0_i32 = arith.constant 0 : i32
    %c0_i32_0 = arith.constant 0 : i32
    return %arg0, %c0_i32 : i32, i32
  }
}

module attributes {stable_mosaic.version = 11 : i64} {
  func.func @_conv_bn_relu_kernel(%arg0: i32, %arg1: memref<32x1152xf32, #tpu.memory_space<vmem>>, %arg2: memref<1152x256xf32, #tpu.memory_space<vmem>>, %arg3: memref<1x256xf32, #tpu.memory_space<vmem>>, %arg4: memref<1x256xf32, #tpu.memory_space<vmem>>, %arg5: memref<32x256xf32, #tpu.memory_space<vmem>>) attributes {dimension_semantics = [#tpu.dimension_semantics<parallel>], iteration_bounds = array<i64: 1>, scalar_prefetch = 0 : i64, scratch_operands = 0 : i64, tpu.core_type = #tpu.core_type<tc>, window_params = [{transform_indices = @transform_0, window_bounds = array<i64: 32, 1152>}, {pipeline_mode = #tpu.pipeline_mode<synchronous>, transform_indices = @transform_1, window_bounds = array<i64: 1152, 256>}, {pipeline_mode = #tpu.pipeline_mode<synchronous>, transform_indices = @transform_2, window_bounds = array<i64: 1, 256>}, {pipeline_mode = #tpu.pipeline_mode<synchronous>, transform_indices = @transform_3, window_bounds = array<i64: 1, 256>}, {transform_indices = @transform_4, window_bounds = array<i64: 32, 256>}]} {
    %c0 = arith.constant 0 : index
    %c0_0 = arith.constant 0 : index
    %0 = vector.load %arg1[%c0, %c0_0] : memref<32x1152xf32, #tpu.memory_space<vmem>>, vector<32x1152xf32>
    %c0_1 = arith.constant 0 : index
    %c0_2 = arith.constant 0 : index
    %1 = vector.load %arg2[%c0_1, %c0_2] : memref<1152x256xf32, #tpu.memory_space<vmem>>, vector<1152x256xf32>
    %cst = arith.constant dense<0.000000e+00> : vector<32x256xf32>
    %2 = tpu.matmul %0, %1, %cst {dimension_numbers = #tpu.dot_dimension_numbers<[1], [0], [0], [1], [0, 0, 1, 1], [], []>} : vector<32x1152xf32>, vector<1152x256xf32>, vector<32x256xf32> -> vector<32x256xf32>
    %c0_3 = arith.constant 0 : index
    %c0_4 = arith.constant 0 : index
    %3 = vector.load %arg3[%c0_3, %c0_4] : memref<1x256xf32, #tpu.memory_space<vmem>>, vector<1x256xf32>
    %4 = vector.broadcast %3 : vector<1x256xf32> to vector<32x256xf32>
    %5 = arith.mulf %2, %4 : vector<32x256xf32>
    %c0_5 = arith.constant 0 : index
    %c0_6 = arith.constant 0 : index
    %6 = vector.load %arg4[%c0_5, %c0_6] : memref<1x256xf32, #tpu.memory_space<vmem>>, vector<1x256xf32>
    %7 = vector.broadcast %6 : vector<1x256xf32> to vector<32x256xf32>
    %8 = arith.addf %5, %7 : vector<32x256xf32>
    %cst_7 = arith.constant 0.000000e+00 : f32
    %9 = vector.broadcast %cst_7 : f32 to vector<32x256xf32>
    %10 = arith.maximumf %8, %9 : vector<32x256xf32>
    %c0_8 = arith.constant 0 : index
    %c0_9 = arith.constant 0 : index
    %11 = vector.load %arg5[%c0_8, %c0_9] : memref<32x256xf32, #tpu.memory_space<vmem>>, vector<32x256xf32>
    tpu.vector_store %arg5[%c0_8, %c0_9], %10 {strides = array<i32>} : memref<32x256xf32, #tpu.memory_space<vmem>>, vector<32x256xf32>,
    return
  }
  func.func @transform_0(%arg0: i32) -> (i32, i32) {
    %c0_i32 = arith.constant 0 : i32
    %c0_i32_0 = arith.constant 0 : i32
    return %arg0, %c0_i32 : i32, i32
  }
  func.func @transform_1(%arg0: i32) -> (i32, i32) {
    %c0_i32 = arith.constant 0 : i32
    %c0_i32_0 = arith.constant 0 : i32
    %c0_i32_1 = arith.constant 0 : i32
    return %c0_i32, %c0_i32_0 : i32, i32
  }
  func.func @transform_2(%arg0: i32) -> (i32, i32) {
    %c0_i32 = arith.constant 0 : i32
    %c0_i32_0 = arith.constant 0 : i32
    %c0_i32_1 = arith.constant 0 : i32
    return %c0_i32, %c0_i32_0 : i32, i32
  }
  func.func @transform_3(%arg0: i32) -> (i32, i32) {
    %c0_i32 = arith.constant 0 : i32
    %c0_i32_0 = arith.constant 0 : i32
    %c0_i32_1 = arith.constant 0 : i32
    return %c0_i32, %c0_i32_0 : i32, i32
  }
  func.func @transform_4(%arg0: i32) -> (i32, i32) {
    %c0_i32 = arith.constant 0 : i32
    %c0_i32_0 = arith.constant 0 : i32
    return %arg0, %c0_i32 : i32, i32
  }
}

</mosaic_0001>

<bundles_post_ra>
// kernel: resnet_generator_enc_forward.3
= control target key start
LH: loop header
LB: loop body
LE: loop exit
PB: predicated region body
PF: predicated region fallthrough
CT: control target
= control target key end

     0   :  { %v1127_v0 = vmov 0.0   ;;  %vm357_vm0 = vcmask 1042432   ;;  %vm164_vm1 = vcmask 154624   ;;  %vm952_vm2 = vcmask 523264   ;;  %s2090_s1 = inlined_call_operand.vmem [shape: f32[147,64], index: 1, kind: input, shape index: {}]   ;;  %s2091_s0 = inlined_call_operand.vmem [shape: f32[512,147], index: 0, kind: input, shape index: {}]   ;;  %s2092_s2 = inlined_call_operand.vmem [shape: f32[1,64], index: 2, kind: input, shape index: {}]   ;;  %s2093_s3 = inlined_call_operand.vmem [shape: f32[1,64], index: 3, kind: input, shape index: {}]   ;;  %s2094_s4 = inlined_call_operand.vmem [shape: f32[512,64], index: 4, kind: output, shape index: {}]  }
   0x1   :  { %361 = vmatprep.subr.mxu0 %v1127_v0  ;;  %1088 = vmatprep.subr.mxu1 %v1127_v0  ;;  %v160_v1 = vld [vmem:[%s2090_s1 + $0x78] sm:$0xff]  ;;  %v159_v2 = vld [vmem:[%s2090_s1 + $0x70] sm:$0xff]  ;;  %v158_v3 = vld [vmem:[%s2090_s1 + $0x68] sm:$0xff] }
   0x2   :  { %362 = vmatpush1.msra.mxu0 %v160_v1  ;;  %1107 = vmatpush1.msra.mxu1 %v160_v1  ;;  %v157_v4 = vld [vmem:[%s2090_s1 + $0x60] sm:$0xff]  ;;  %v156_v5 = vld [vmem:[%s2090_s1 + $0x58] sm:$0xff]  ;;  %v155_v6 = vld [vmem:[%s2090_s1 + $0x50] sm:$0xff] }
   0x3   :  { %363 = vmatprep.subr.mxu0 %v1127_v0  ;;  %1089 = vmatprep.subr.mxu1 %v1127_v0  ;;  %v154_v7 = vld [vmem:[%s2090_s1 + $0x48] sm:$0xff]  ;;  %v153_v8 = vld [vmem:[%s2090_s1 + $0x40] sm:$0xff]  ;;  %v152_v9 = vld [vmem:[%s2090_s1 + $0x38] sm:$0xff] }
   0x4   :  { %364 = vmatpush1.msra.mxu0 %v159_v2  ;;  %1108 = vmatpush1.msra.mxu1 %v159_v2  ;;  %v151_v10 = vld [vmem:[%s2090_s1 + $0x30] sm:$0xff]  ;;  %v150_v11 = vld [vmem:[%s2090_s1 + $0x28] sm:$0xff]  ;;  %v149_v12 = vld [vmem:[%s2090_s1 + $0x20] sm:$0xff] }
   0x5   :  { %365 = vmatprep.subr.mxu0 %v1127_v0  ;;  %1090 = vmatprep.subr.mxu1 %v1127_v0  ;;  %v148_v13 = vld [vmem:[%s2090_s1 + $0x18] sm:$0xff]  ;;  %v147_v14 = vld [vmem:[%s2090_s1 + $0x10] sm:$0xff]  ;;  %v146_v15 = vld [vmem:[%s2090_s1 + $0x8] sm:$0xff] }
   0x6   :  { %366 = vmatpush1.msra.mxu0 %v158_v3  ;;  %1109 = vmatpush1.msra.mxu1 %v158_v3  ;;  %v145_v16 = vld [vmem:[%s2090_s1] sm:$0xff]  ;;  %v163_v17 = vld [vmem:[%s2090_s1 + $0x90] sm:$0x7]  ;;  %v162_v18 = vld [vmem:[%s2090_s1 + $0x88] sm:$0xff] }
   0x7   :  { %367 = vmatprep.subr.mxu0 %v1127_v0  ;;  %1091 = vmatprep.subr.mxu1 %v1127_v0  ;;  %v161_v19 = vld [vmem:[%s2090_s1 + $0x80] sm:$0xff]  ;;  %v18_v20 = vld [vmem:[%s2091_s0 + $0x8] sm:$0xff]  ;;  %v20_v24 = vld [vmem:[%s2091_s0 + $0x18] sm:$0xff] }
   0x8   :  { %368 = vmatpush1.msra.mxu0 %v157_v4  ;;  %1110 = vmatpush1.msra.mxu1 %v157_v4  ;;  %v82_v21 = vld [vmem:[%s2091_s0 + $0x208] sm:$0xff]  ;;  %v17_v22 = vld [vmem:[%s2091_s0] sm:$0xff]  ;;  %v84_v25 = vld [vmem:[%s2091_s0 + $0x218] sm:$0xff] }
   0x9   :  { %369 = vmatprep.subr.mxu0 %v1127_v0  ;;  %1092 = vmatprep.subr.mxu1 %v1127_v0  ;;  %v81_v23 = vld [vmem:[%s2091_s0 + $0x200] sm:$0xff]  ;;  %v19_v26 = vld [vmem:[%s2091_s0 + $0x10] sm:$0xff]  ;;  %v22_v28 = vld [vmem:[%s2091_s0 + $0x28] sm:$0xff] }
   0xa   :  { %370 = vmatpush1.msra.mxu0 %v156_v5  ;;  %1111 = vmatpush1.msra.mxu1 %v156_v5  ;;  %v83_v27 = vld [vmem:[%s2091_s0 + $0x210] sm:$0xff]  ;;  %v86_v29 = vld [vmem:[%s2091_s0 + $0x228] sm:$0xff]  ;;  %v21_v30 = vld [vmem:[%s2091_s0 + $0x20] sm:$0xff] }
   0xb   :  { %371 = vmatprep.subr.mxu0 %v1127_v0  ;;  %1093 = vmatprep.subr.mxu1 %v1127_v0  ;;  %v85_v31 = vld [vmem:[%s2091_s0 + $0x220] sm:$0xff]  ;;  %v24_v32 = vld [vmem:[%s2091_s0 + $0x38] sm:$0xff]  ;;  %v23_v34 = vld [vmem:[%s2091_s0 + $0x30] sm:$0xff] }
   0xc   :  { %372 = vmatpush1.msra.mxu0 %v155_v6  ;;  %1112 = vmatpush1.msra.mxu1 %v155_v6  ;;  %v88_v33 = vld [vmem:[%s2091_s0 + $0x238] sm:$0xff]  ;;  %v87_v35 = vld [vmem:[%s2091_s0 + $0x230] sm:$0xff]  ;;  %v26_v36 = vld [vmem:[%s2091_s0 + $0x48] sm:$0xff] }
   0xd   :  { %373 = vmatprep.subr.mxu0 %v1127_v0  ;;  %1094 = vmatprep.subr.mxu1 %v1127_v0  ;;  %v90_v37 = vld [vmem:[%s2091_s0 + $0x248] sm:$0xff]  ;;  %v25_v38 = vld [vmem:[%s2091_s0 + $0x40] sm:$0xff]  ;;  %v28_v40 = vld [vmem:[%s2091_s0 + $0x58] sm:$0xff] }
   0xe   :  { %374 = vmatpush1.msra.mxu0 %v154_v7  ;;  %1113 = vmatpush1.msra.mxu1 %v154_v7  ;;  %v89_v39 = vld [vmem:[%s2091_s0 + $0x240] sm:$0xff]  ;;  %v92_v41 = vld [vmem:[%s2091_s0 + $0x258] sm:$0xff]  ;;  %v27_v42 = vld [vmem:[%s2091_s0 + $0x50] sm:$0xff] }
   0xf   :  { %375 = vmatprep.subr.mxu0 %v1127_v0  ;;  %1095 = vmatprep.subr.mxu1 %v1127_v0  ;;  %v91_v43 = vld [vmem:[%s2091_s0 + $0x250] sm:$0xff]  ;;  %v30_v44 = vld [vmem:[%s2091_s0 + $0x68] sm:$0xff]  ;;  %v29_v46 = vld [vmem:[%s2091_s0 + $0x60] sm:$0xff] }
  0x10   :  { %376 = vmatpush1.msra.mxu0 %v153_v8  ;;  %1114 = vmatpush1.msra.mxu1 %v153_v8  ;;  %v94_v45 = vld [vmem:[%s2091_s0 + $0x268] sm:$0xff]  ;;  %v93_v47 = vld [vmem:[%s2091_s0 + $0x260] sm:$0xff]  ;;  %v32_v48 = vld [vmem:[%s2091_s0 + $0x78] sm:$0xff] }
  0x11   :  { %377 = vmatprep.subr.mxu0 %v1127_v0  ;;  %1096 = vmatprep.subr.mxu1 %v1127_v0  ;;  %v96_v49 = vld [vmem:[%s2091_s0 + $0x278] sm:$0xff]  ;;  %v31_v50 = vld [vmem:[%s2091_s0 + $0x70] sm:$0xff]  ;;  %v34_v52 = vld [vmem:[%s2091_s0 + $0x88] sm:$0xff] }
  0x12   :  { %378 = vmatpush1.msra.mxu0 %v152_v9  ;;  %1115 = vmatpush1.msra.mxu1 %v152_v9  ;;  %v95_v51 = vld [vmem:[%s2091_s0 + $0x270] sm:$0xff]  ;;  %v98_v53 = vld [vmem:[%s2091_s0 + $0x288] sm:$0xff]  ;;  %v33_v54 = vld [vmem:[%s2091_s0 + $0x80] sm:$0xff] }
  0x13   :  { %379 = vmatprep.subr.mxu0 %v1127_v0  ;;  %1097 = vmatprep.subr.mxu1 %v1127_v0  ;;  %v97_v55 = vld [vmem:[%s2091_s0 + $0x280] sm:$0xff]  ;;  %v36_v56 = vld [vmem:[%s2091_s0 + $0x98] sm:$0xff]  ;;  %v35_v58 = vld [vmem:[%s2091_s0 + $0x90] sm:$0xff] }
  0x14   :  { %380 = vmatpush1.msra.mxu0 %v151_v10  ;;  %1116 = vmatpush1.msra.mxu1 %v151_v10  ;;  %v100_v57 = vld [vmem:[%s2091_s0 + $0x298] sm:$0xff]  ;;  %v99_v59 = vld [vmem:[%s2091_s0 + $0x290] sm:$0xff]  ;;  %v38_v60 = vld [vmem:[%s2091_s0 + $0xa8] sm:$0xff] }
  0x15   :  { %381 = vmatprep.subr.mxu0 %v1127_v0  ;;  %1098 = vmatprep.subr.mxu1 %v1127_v0  ;;  %v102_v61 = vld [vmem:[%s2091_s0 + $0x2a8] sm:$0xff]  ;;  %v37_v62 = vld [vmem:[%s2091_s0 + $0xa0] sm:$0xff]  ;;  %v104_v1 = vld [vmem:[%s2091_s0 + $0x2b8] sm:$0xff] }
  0x16   :  { %382 = vmatpush1.msra.mxu0 %v150_v11  ;;  %1117 = vmatpush1.msra.mxu1 %v150_v11  ;;  %v101_v63 = vld [vmem:[%s2091_s0 + $0x2a0] sm:$0xff]  ;;  %v39_v2 = vld [vmem:[%s2091_s0 + $0xb0] sm:$0xff]  ;;  %v42_v4 = vld [vmem:[%s2091_s0 + $0xc8] sm:$0xff] }
  0x17   :  { %383 = vmatprep.subr.mxu0 %v1127_v0  ;;  %1099 = vmatprep.subr.mxu1 %v1127_v0  ;;  %v103_v3 = vld [vmem:[%s2091_s0 + $0x2b0] sm:$0xff]  ;;  %v106_v5 = vld [vmem:[%s2091_s0 + $0x2c8] sm:$0xff]  ;;  %v41_v6 = vld [vmem:[%s2091_s0 + $0xc0] sm:$0xff] }
  0x18   :  { %384 = vmatpush1.msra.mxu0 %v149_v12  ;;  %1118 = vmatpush1.msra.mxu1 %v149_v12  ;;  %v105_v7 = vld [vmem:[%s2091_s0 + $0x2c0] sm:$0xff]  ;;  %v44_v8 = vld [vmem:[%s2091_s0 + $0xd8] sm:$0xff]  ;;  %v43_v10 = vld [vmem:[%s2091_s0 + $0xd0] sm:$0xff] }
  0x19   :  { %385 = vmatprep.subr.mxu0 %v1127_v0  ;;  %1100 = vmatprep.subr.mxu1 %v1127_v0  ;;  %v108_v9 = vld [vmem:[%s2091_s0 + $0x2d8] sm:$0xff]  ;;  %v107_v11 = vld [vmem:[%s2091_s0 + $0x2d0] sm:$0xff]  ;;  %v46_v12 = vld [vmem:[%s2091_s0 + $0xe8] sm:$0xff] }
  0x1a   :  { %386 = vmatpush1.msra.mxu0 %v148_v13  ;;  %1119 = vmatpush1.msra.mxu1 %v148_v13  ;;  %v110_v13 = vld [vmem:[%s2091_s0 + $0x2e8] sm:$0xff] }
  0x1b   :  { %387 = vmatprep.subr.mxu0 %v1127_v0  ;;  %1101 = vmatprep.subr.mxu1 %v1127_v0 }
  0x1c   :  { %388 = vmatpush1.msra.mxu0 %v147_v14  ;;  %1120 = vmatpush1.msra.mxu1 %v147_v14  ;;  %v45_v14 = vld [vmem:[%s2091_s0 + $0xe0] sm:$0xff] }
  0x1d   :  { %389 = vmatprep.subr.mxu0 %v1127_v0  ;;  %1102 = vmatprep.subr.mxu1 %v1127_v0 }
  0x1e   :  { %390 = vmatpush1.msra.mxu0 %v146_v15  ;;  %1121 = vmatpush1.msra.mxu1 %v146_v15  ;;  %v109_v15 = vld [vmem:[%s2091_s0 + $0x2e0] sm:$0xff] }
  0x1f   :  { %391 = vmatprep.subr.mxu0 %v1127_v0  ;;  %1103 = vmatprep.subr.mxu1 %v1127_v0 }
  0x20   :  { %392 = vmatpush1.msra.mxu0 %v145_v16  ;;  %1122 = vmatpush1.msra.mxu1 %v145_v16  ;;  %v48_v16 = vld [vmem:[%s2091_s0 + $0xf8] sm:$0xff] }
  0x21   :  { %419 = vmatprep.subr.mxu0 %v1127_v0  ;;  %1104 = vmatprep.subr.mxu1 %v1127_v0 }
  0x22   :  { %1021 = vmatpush2.msk.msra.mxu0 %vm357_vm0, %v163_v17  ;;  %1123 = vmatpush2.msk.msra.mxu1 %vm357_vm0, %v163_v17  ;;  %v112_v17 = vld [vmem:[%s2091_s0 + $0x2f8] sm:$0xff] }
  0x23   :  { %421 = vmatprep.subr.mxu0 %v1127_v0  ;;  %1105 = vmatprep.subr.mxu1 %v1127_v0 }
  0x24   :  { %422 = vmatpush2.msra.mxu0 %v162_v18  ;;  %1124 = vmatpush2.msra.mxu1 %v162_v18  ;;  %v47_v18 = vld [vmem:[%s2091_s0 + $0xf0] sm:$0xff] }
  0x25   :  { %423 = vmatprep.subr.mxu0 %v1127_v0  ;;  %1106 = vmatprep.subr.mxu1 %v1127_v0  ;;  %v40_v0 = vld [vmem:[%s2091_s0 + $0xb8] sm:$0xff] }
  0x26   :  { %424 = vmatpush2.msra.mxu0 %v161_v19  ;;  %1125 = vmatpush2.msra.mxu1 %v161_v19  ;;  %v111_v19 = vld [vmem:[%s2091_s0 + $0x2f0] sm:$0xff] }
  0x27   :  { %1022 = vmatprep.mubr.msk.f32.mxu0 %vm164_vm1, %v18_v20  ;;  %1054 = vmatprep.mubr.msk.f32.mxu1 %vm164_vm1, %v82_v21  ;;  %v50_v20 = vld [vmem:[%s2091_s0 + $0x108] sm:$0xff] }
  0x28   :  { %426 = vmatmul.mubr.f32.vlgmr.msra.gmra.mxu0 %v17_v22  ;;  %586 = vmatmul.mubr.f32.vlgmr.msra.gmra.mxu1 %v81_v23  ;;  %v114_v21 = vld [vmem:[%s2091_s0 + $0x308] sm:$0xff]  ;;  %v49_v22 = vld [vmem:[%s2091_s0 + $0x100] sm:$0xff] }
  0x29   :  { %1023 = vmatprep.mubr.msk.f32.mxu0 %vm164_vm1, %v20_v24  ;;  %1055 = vmatprep.mubr.msk.f32.mxu1 %vm164_vm1, %v84_v25  ;;  %v113_v23 = vld [vmem:[%s2091_s0 + $0x300] sm:$0xff]  ;;  %v52_v24 = vld [vmem:[%s2091_s0 + $0x118] sm:$0xff] }
  0x2a   :  { %v116_v25 = vld [vmem:[%s2091_s0 + $0x318] sm:$0xff] }
  0x2c   :  { %431 = vmatmul.mubr.f32.gmra.mxu0 %v19_v26  ;;  %591 = vmatmul.mubr.f32.gmra.mxu1 %v83_v27  ;;  %v51_v26 = vld [vmem:[%s2091_s0 + $0x110] sm:$0xff] }
  0x2d   :  { %1024 = vmatprep.mubr.msk.f32.mxu0 %vm164_vm1, %v22_v28  ;;  %1056 = vmatprep.mubr.msk.f32.mxu1 %vm164_vm1, %v86_v29  ;;  %v115_v27 = vld [vmem:[%s2091_s0 + $0x310] sm:$0xff]  ;;  %v54_v28 = vld [vmem:[%s2091_s0 + $0x128] sm:$0xff] }
  0x2e   :  { %v118_v29 = vld [vmem:[%s2091_s0 + $0x328] sm:$0xff] }
  0x30   :  { %436 = vmatmul.mubr.f32.gmra.mxu0 %v21_v30  ;;  %596 = vmatmul.mubr.f32.gmra.mxu1 %v85_v31  ;;  %v53_v30 = vld [vmem:[%s2091_s0 + $0x120] sm:$0xff] }
  0x31   :  { %1025 = vmatprep.mubr.msk.f32.mxu0 %vm164_vm1, %v24_v32  ;;  %1057 = vmatprep.mubr.msk.f32.mxu1 %vm164_vm1, %v88_v33  ;;  %v117_v31 = vld [vmem:[%s2091_s0 + $0x320] sm:$0xff]  ;;  %v56_v32 = vld [vmem:[%s2091_s0 + $0x138] sm:$0xff] }
  0x32   :  { %v120_v33 = vld [vmem:[%s2091_s0 + $0x338] sm:$0xff] }
  0x34   :  { %441 = vmatmul.mubr.f32.gmra.mxu0 %v23_v34  ;;  %601 = vmatmul.mubr.f32.gmra.mxu1 %v87_v35  ;;  %v55_v34 = vld [vmem:[%s2091_s0 + $0x130] sm:$0xff] }
  0x35   :  { %1026 = vmatprep.mubr.msk.f32.mxu0 %vm164_vm1, %v26_v36  ;;  %1058 = vmatprep.mubr.msk.f32.mxu1 %vm164_vm1, %v90_v37  ;;  %v119_v35 = vld [vmem:[%s2091_s0 + $0x330] sm:$0xff]  ;;  %v58_v36 = vld [vmem:[%s2091_s0 + $0x148] sm:$0xff] }
  0x36   :  { %v122_v37 = vld [vmem:[%s2091_s0 + $0x348] sm:$0xff] }
  0x38   :  { %446 = vmatmul.mubr.f32.gmra.mxu0 %v25_v38  ;;  %606 = vmatmul.mubr.f32.gmra.mxu1 %v89_v39  ;;  %v57_v38 = vld [vmem:[%s2091_s0 + $0x140] sm:$0xff] }
  0x39   :  { %1027 = vmatprep.mubr.msk.f32.mxu0 %vm164_vm1, %v28_v40  ;;  %1059 = vmatprep.mubr.msk.f32.mxu1 %vm164_vm1, %v92_v41  ;;  %v121_v39 = vld [vmem:[%s2091_s0 + $0x340] sm:$0xff]  ;;  %v60_v40 = vld [vmem:[%s2091_s0 + $0x158] sm:$0xff] }
  0x3a   :  { %v124_v41 = vld [vmem:[%s2091_s0 + $0x358] sm:$0xff] }
  0x3c   :  { %451 = vmatmul.mubr.f32.gmra.mxu0 %v27_v42  ;;  %611 = vmatmul.mubr.f32.gmra.mxu1 %v91_v43  ;;  %v59_v42 = vld [vmem:[%s2091_s0 + $0x150] sm:$0xff] }
  0x3d   :  { %1028 = vmatprep.mubr.msk.f32.mxu0 %vm164_vm1, %v30_v44  ;;  %1060 = vmatprep.mubr.msk.f32.mxu1 %vm164_vm1, %v94_v45  ;;  %v123_v43 = vld [vmem:[%s2091_s0 + $0x350] sm:$0xff]  ;;  %v62_v44 = vld [vmem:[%s2091_s0 + $0x168] sm:$0xff] }
  0x3e   :  { %v126_v45 = vld [vmem:[%s2091_s0 + $0x368] sm:$0xff] }
  0x40   :  { %456 = vmatmul.mubr.f32.gmra.mxu0 %v29_v46  ;;  %616 = vmatmul.mubr.f32.gmra.mxu1 %v93_v47  ;;  %v61_v46 = vld [vmem:[%s2091_s0 + $0x160] sm:$0xff] }
  0x41   :  { %1029 = vmatprep.mubr.msk.f32.mxu0 %vm164_vm1, %v32_v48  ;;  %1061 = vmatprep.mubr.msk.f32.mxu1 %vm164_vm1, %v96_v49  ;;  %v125_v47 = vld [vmem:[%s2091_s0 + $0x360] sm:$0xff]  ;;  %v64_v48 = vld [vmem:[%s2091_s0 + $0x178] sm:$0xff] }
  0x42   :  { %v128_v49 = vld [vmem:[%s2091_s0 + $0x378] sm:$0xff] }
  0x44   :  { %461 = vmatmul.mubr.f32.gmra.mxu0 %v31_v50  ;;  %621 = vmatmul.mubr.f32.gmra.mxu1 %v95_v51  ;;  %v63_v50 = vld [vmem:[%s2091_s0 + $0x170] sm:$0xff] }
  0x45   :  { %1030 = vmatprep.mubr.msk.f32.mxu0 %vm164_vm1, %v34_v52  ;;  %1062 = vmatprep.mubr.msk.f32.mxu1 %vm164_vm1, %v98_v53  ;;  %v127_v51 = vld [vmem:[%s2091_s0 + $0x370] sm:$0xff]  ;;  %v66_v52 = vld [vmem:[%s2091_s0 + $0x188] sm:$0xff] }
  0x46   :  { %v130_v53 = vld [vmem:[%s2091_s0 + $0x388] sm:$0xff] }
  0x48   :  { %466 = vmatmul.mubr.f32.gmra.mxu0 %v33_v54  ;;  %626 = vmatmul.mubr.f32.gmra.mxu1 %v97_v55  ;;  %v65_v54 = vld [vmem:[%s2091_s0 + $0x180] sm:$0xff] }
  0x49   :  { %1031 = vmatprep.mubr.msk.f32.mxu0 %vm164_vm1, %v36_v56  ;;  %1063 = vmatprep.mubr.msk.f32.mxu1 %vm164_vm1, %v100_v57  ;;  %v129_v55 = vld [vmem:[%s2091_s0 + $0x380] sm:$0xff]  ;;  %v68_v56 = vld [vmem:[%s2091_s0 + $0x198] sm:$0xff] }
  0x4a   :  { %v132_v57 = vld [vmem:[%s2091_s0 + $0x398] sm:$0xff] }
  0x4c   :  { %471 = vmatmul.mubr.f32.gmra.mxu0 %v35_v58  ;;  %631 = vmatmul.mubr.f32.gmra.mxu1 %v99_v59  ;;  %v67_v58 = vld [vmem:[%s2091_s0 + $0x190] sm:$0xff] }
  0x4d   :  { %1032 = vmatprep.mubr.msk.f32.mxu0 %vm164_vm1, %v38_v60  ;;  %1064 = vmatprep.mubr.msk.f32.mxu1 %vm164_vm1, %v102_v61  ;;  %v131_v59 = vld [vmem:[%s2091_s0 + $0x390] sm:$0xff]  ;;  %v70_v60 = vld [vmem:[%s2091_s0 + $0x1a8] sm:$0xff] }
  0x4e   :  { %v134_v61 = vld [vmem:[%s2091_s0 + $0x3a8] sm:$0xff] }
  0x50   :  { %476 = vmatmul.mubr.f32.gmra.mxu0 %v37_v62  ;;  %636 = vmatmul.mubr.f32.gmra.mxu1 %v101_v63  ;;  %v69_v62 = vld [vmem:[%s2091_s0 + $0x1a0] sm:$0xff] }
  0x51   :  { %1033 = vmatprep.mubr.msk.f32.mxu0 %vm164_vm1, %v40_v0  ;;  %1065 = vmatprep.mubr.msk.f32.mxu1 %vm164_vm1, %v104_v1  ;;  %v133_v63 = vld [vmem:[%s2091_s0 + $0x3a0] sm:$0xff]  ;;  %v72_v0 = vld [vmem:[%s2091_s0 + $0x1b8] sm:$0xff] }
  0x52   :  { %v136_v1 = vld [vmem:[%s2091_s0 + $0x3b8] sm:$0xff] }
  0x54   :  { %481 = vmatmul.mubr.f32.gmra.mxu0 %v39_v2  ;;  %641 = vmatmul.mubr.f32.gmra.mxu1 %v103_v3  ;;  %v71_v2 = vld [vmem:[%s2091_s0 + $0x1b0] sm:$0xff] }
  0x55   :  { %1034 = vmatprep.mubr.msk.f32.mxu0 %vm164_vm1, %v42_v4  ;;  %1066 = vmatprep.mubr.msk.f32.mxu1 %vm164_vm1, %v106_v5  ;;  %v135_v3 = vld [vmem:[%s2091_s0 + $0x3b0] sm:$0xff]  ;;  %v74_v4 = vld [vmem:[%s2091_s0 + $0x1c8] sm:$0xff] }
  0x56   :  { %v138_v5 = vld [vmem:[%s2091_s0 + $0x3c8] sm:$0xff] }
  0x58   :  { %486 = vmatmul.mubr.f32.gmra.mxu0 %v41_v6  ;;  %646 = vmatmul.mubr.f32.gmra.mxu1 %v105_v7  ;;  %v73_v6 = vld [vmem:[%s2091_s0 + $0x1c0] sm:$0xff] }
  0x59   :  { %1035 = vmatprep.mubr.msk.f32.mxu0 %vm164_vm1, %v44_v8  ;;  %1067 = vmatprep.mubr.msk.f32.mxu1 %vm164_vm1, %v108_v9  ;;  %v137_v7 = vld [vmem:[%s2091_s0 + $0x3c0] sm:$0xff]  ;;  %v76_v8 = vld [vmem:[%s2091_s0 + $0x1d8] sm:$0xff] }
  0x5a   :  { %v140_v9 = vld [vmem:[%s2091_s0 + $0x3d8] sm:$0xff] }
  0x5c   :  { %491 = vmatmul.mubr.f32.gmra.mxu0 %v43_v10  ;;  %651 = vmatmul.mubr.f32.gmra.mxu1 %v107_v11  ;;  %v75_v10 = vld [vmem:[%s2091_s0 + $0x1d0] sm:$0xff] }
  0x5d   :  { %1036 = vmatprep.mubr.msk.f32.mxu0 %vm164_vm1, %v46_v12  ;;  %1068 = vmatprep.mubr.msk.f32.mxu1 %vm164_vm1, %v110_v13  ;;  %v139_v11 = vld [vmem:[%s2091_s0 + $0x3d0] sm:$0xff]  ;;  %v78_v12 = vld [vmem:[%s2091_s0 + $0x1e8] sm:$0xff] }
  0x5e   :  { %v142_v13 = vld [vmem:[%s2091_s0 + $0x3e8] sm:$0xff] }
  0x60   :  { %496 = vmatmul.mubr.f32.gmra.mxu0 %v45_v14  ;;  %656 = vmatmul.mubr.f32.gmra.mxu1 %v109_v15  ;;  %v77_v14 = vld [vmem:[%s2091_s0 + $0x1e0] sm:$0xff] }
  0x61   :  { %1037 = vmatprep.mubr.msk.f32.mxu0 %vm164_vm1, %v48_v16  ;;  %1069 = vmatprep.mubr.msk.f32.mxu1 %vm164_vm1, %v112_v17  ;;  %v141_v15 = vld [vmem:[%s2091_s0 + $0x3e0] sm:$0xff]  ;;  %v80_v16 = vld [vmem:[%s2091_s0 + $0x1f8] sm:$0xff] }
  0x62   :  { %v144_v17 = vld [vmem:[%s2091_s0 + $0x3f8] sm:$0xff] }
  0x64   :  { %501 = vmatmul.mubr.f32.gmra.mxu0 %v47_v18  ;;  %661 = vmatmul.mubr.f32.gmra.mxu1 %v111_v19  ;;  %v79_v18 = vld [vmem:[%s2091_s0 + $0x1f0] sm:$0xff] }
  0x65   :  { %1038 = vmatprep.mubr.msk.f32.mxu0 %vm164_vm1, %v50_v20  ;;  %1070 = vmatprep.mubr.msk.f32.mxu1 %vm164_vm1, %v114_v21  ;;  %v143_v19 = vld [vmem:[%s2091_s0 + $0x3f0] sm:$0xff]  ;;  %v1699_v20 = vld [vmem:[%s2092_s2] ss:$0 sm:$0xff] }
  0x68   :  { %506 = vmatmul.mubr.f32.gmra.mxu0 %v49_v22  ;;  %666 = vmatmul.mubr.f32.gmra.mxu1 %v113_v23  ;;  %v1704_v22 = vld [vmem:[%s2093_s3] ss:$0 sm:$0xff] }
  0x69   :  { %1039 = vmatprep.mubr.msk.f32.mxu0 %vm164_vm1, %v52_v24  ;;  %1071 = vmatprep.mubr.msk.f32.mxu1 %vm164_vm1, %v116_v25 }
  0x6c   :  { %511 = vmatmul.mubr.f32.gmra.mxu0 %v51_v26  ;;  %671 = vmatmul.mubr.f32.gmra.mxu1 %v115_v27 }
  0x6d   :  { %1040 = vmatprep.mubr.msk.f32.mxu0 %vm164_vm1, %v54_v28  ;;  %1072 = vmatprep.mubr.msk.f32.mxu1 %vm164_vm1, %v118_v29 }
  0x70   :  { %516 = vmatmul.mubr.f32.gmra.mxu0 %v53_v30  ;;  %676 = vmatmul.mubr.f32.gmra.mxu1 %v117_v31 }
  0x71   :  { %1041 = vmatprep.mubr.msk.f32.mxu0 %vm164_vm1, %v56_v32  ;;  %1073 = vmatprep.mubr.msk.f32.mxu1 %vm164_vm1, %v120_v33 }
  0x74   :  { %521 = vmatmul.mubr.f32.gmra.mxu0 %v55_v34  ;;  %681 = vmatmul.mubr.f32.gmra.mxu1 %v119_v35 }
  0x75   :  { %1042 = vmatprep.mubr.msk.f32.mxu0 %vm164_vm1, %v58_v36  ;;  %1074 = vmatprep.mubr.msk.f32.mxu1 %vm164_vm1, %v122_v37 }
  0x78   :  { %526 = vmatmul.mubr.f32.gmra.mxu0 %v57_v38  ;;  %686 = vmatmul.mubr.f32.gmra.mxu1 %v121_v39 }
  0x79   :  { %1043 = vmatprep.mubr.msk.f32.mxu0 %vm164_vm1, %v60_v40  ;;  %1075 = vmatprep.mubr.msk.f32.mxu1 %vm164_vm1, %v124_v41 }
  0x7c   :  { %531 = vmatmul.mubr.f32.gmra.mxu0 %v59_v42  ;;  %691 = vmatmul.mubr.f32.gmra.mxu1 %v123_v43 }
  0x7d   :  { %1044 = vmatprep.mubr.msk.f32.mxu0 %vm164_vm1, %v62_v44  ;;  %1076 = vmatprep.mubr.msk.f32.mxu1 %vm164_vm1, %v126_v45 }
  0x80   :  { %536 = vmatmul.mubr.f32.gmra.mxu0 %v61_v46  ;;  %696 = vmatmul.mubr.f32.gmra.mxu1 %v125_v47 }
  0x81   :  { %1045 = vmatprep.mubr.msk.f32.mxu0 %vm164_vm1, %v64_v48  ;;  %1077 = vmatprep.mubr.msk.f32.mxu1 %vm164_vm1, %v128_v49 }
  0x84   :  { %541 = vmatmul.mubr.f32.gmra.mxu0 %v63_v50  ;;  %701 = vmatmul.mubr.f32.gmra.mxu1 %v127_v51 }
  0x85   :  { %1046 = vmatprep.mubr.msk.f32.mxu0 %vm164_vm1, %v66_v52  ;;  %1078 = vmatprep.mubr.msk.f32.mxu1 %vm164_vm1, %v130_v53 }
  0x88   :  { %546 = vmatmul.mubr.f32.gmra.mxu0 %v65_v54  ;;  %706 = vmatmul.mubr.f32.gmra.mxu1 %v129_v55 }
  0x89   :  { %1047 = vmatprep.mubr.msk.f32.mxu0 %vm164_vm1, %v68_v56  ;;  %1079 = vmatprep.mubr.msk.f32.mxu1 %vm164_vm1, %v132_v57 }
  0x8c   :  { %551 = vmatmul.mubr.f32.gmra.mxu0 %v67_v58  ;;  %711 = vmatmul.mubr.f32.gmra.mxu1 %v131_v59 }
  0x8d   :  { %1048 = vmatprep.mubr.msk.f32.mxu0 %vm164_vm1, %v70_v60  ;;  %1080 = vmatprep.mubr.msk.f32.mxu1 %vm164_vm1, %v134_v61 }
  0x90   :  { %556 = vmatmul.mubr.f32.gmra.mxu0 %v69_v62  ;;  %716 = vmatmul.mubr.f32.gmra.mxu1 %v133_v63 }
  0x91   :  { %1049 = vmatprep.mubr.msk.f32.mxu0 %vm164_vm1, %v72_v0  ;;  %1081 = vmatprep.mubr.msk.f32.mxu1 %vm164_vm1, %v136_v1 }
  0x94   :  { %561 = vmatmul.mubr.f32.gmra.mxu0 %v71_v2  ;;  %721 = vmatmul.mubr.f32.gmra.mxu1 %v135_v3 }
  0x95   :  { %1050 = vmatprep.mubr.msk.f32.mxu0 %vm164_vm1, %v74_v4  ;;  %1082 = vmatprep.mubr.msk.f32.mxu1 %vm164_vm1, %v138_v5 }
  0x98   :  { %566 = vmatmul.mubr.f32.gmra.mxu0 %v73_v6  ;;  %726 = vmatmul.mubr.f32.gmra.mxu1 %v137_v7 }
  0x99   :  { %1051 = vmatprep.mubr.msk.f32.mxu0 %vm164_vm1, %v76_v8  ;;  %1083 = vmatprep.mubr.msk.f32.mxu1 %vm164_vm1, %v140_v9 }
  0x9c   :  { %571 = vmatmul.mubr.f32.gmra.mxu0 %v75_v10  ;;  %731 = vmatmul.mubr.f32.gmra.mxu1 %v139_v11 }
  0x9d   :  { %1052 = vmatprep.mubr.msk.f32.mxu0 %vm164_vm1, %v78_v12  ;;  %1084 = vmatprep.mubr.msk.f32.mxu1 %vm164_vm1, %v142_v13 }
  0xa0   :  { %576 = vmatmul.mubr.f32.gmra.mxu0 %v77_v14  ;;  %736 = vmatmul.mubr.f32.gmra.mxu1 %v141_v15 }
  0xa1   :  { %1053 = vmatprep.mubr.msk.f32.mxu0 %vm164_vm1, %v80_v16  ;;  %1085 = vmatprep.mubr.msk.f32.mxu1 %vm164_vm1, %v144_v17 }
  0xa4   :  { %581 = vmatmul.mubr.f32.gmra.mxu0 %v79_v18  ;;  %741 = vmatmul.mubr.f32.gmra.mxu1 %v143_v19 }
  0xe8   :  { %v427_v21 = vpop.f32.mrf.mxu0  ;;  %v587_v23 = vpop.f32.mrf.mxu1 }
  0xe9   :  { %v753_v24 = vmul.f32 %v1699_v20, %v427_v21  ;;  %v785_v25 = vmul.f32 %v1699_v20, %v587_v23 }
  0xea   :  { %v429_v26 = vpop.f32.mrf.mxu0  ;;  %v589_v27 = vpop.f32.mrf.mxu1 }
  0xeb   :  { %v824_v28 = vadd.f32 %v1704_v22, %v753_v24  ;;  %v856_v29 = vadd.f32 %v1704_v22, %v785_v25 }
  0xec   :  { %v432_v30 = vpop.f32.mrf.mxu0  ;;  %v592_v31 = vpop.f32.mrf.mxu1 }
  0xed   :  { %v888_v32 = vmax.f32 %v824_v28, 0.0  ;;  %v920_v33 = vmax.f32 %v856_v29, 0.0  ;;  %v754_v34 = vmul.f32 %v1699_v20, %v432_v30  ;;  %v786_v35 = vmul.f32 %v1699_v20, %v592_v31 }
  0xee   :  { %v434_v36 = vpop.f32.mrf.mxu0  ;;  %v594_v37 = vpop.f32.mrf.mxu1 }
  0xef   :  { %953 = vst.msk [vmem:[%s2094_s4] sm:$0xff] %vm952_vm2, %v888_v32  ;;  %985 = vst.msk [vmem:[%s2094_s4 + $0x100] sm:$0xff] %vm952_vm2, %v920_v33  ;;  %v825_v38 = vadd.f32 %v1704_v22, %v754_v34  ;;  %v857_v39 = vadd.f32 %v1704_v22, %v786_v35 }
  0xf0   :  { %v437_v40 = vpop.f32.mrf.mxu0  ;;  %v597_v41 = vpop.f32.mrf.mxu1 }
  0xf1   :  { %v889_v42 = vmax.f32 %v825_v38, 0.0  ;;  %v921_v43 = vmax.f32 %v857_v39, 0.0  ;;  %v755_v44 = vmul.f32 %v1699_v20, %v437_v40  ;;  %v787_v45 = vmul.f32 %v1699_v20, %v597_v41 }
  0xf2   :  { %v439_v46 = vpop.f32.mrf.mxu0  ;;  %v599_v47 = vpop.f32.mrf.mxu1 }
  0xf3   :  { %954 = vst.msk [vmem:[%s2094_s4 + $0x8] sm:$0xff] %vm952_vm2, %v889_v42  ;;  %986 = vst.msk [vmem:[%s2094_s4 + $0x108] sm:$0xff] %vm952_vm2, %v921_v43  ;;  %v826_v48 = vadd.f32 %v1704_v22, %v755_v44  ;;  %v858_v49 = vadd.f32 %v1704_v22, %v787_v45 }
  0xf4   :  { %v442_v50 = vpop.f32.mrf.mxu0  ;;  %v602_v51 = vpop.f32.mrf.mxu1 }
  0xf5   :  { %v890_v52 = vmax.f32 %v826_v48, 0.0  ;;  %v922_v53 = vmax.f32 %v858_v49, 0.0  ;;  %v756_v54 = vmul.f32 %v1699_v20, %v442_v50  ;;  %v788_v55 = vmul.f32 %v1699_v20, %v602_v51 }
  0xf6   :  { %v444_v56 = vpop.f32.mrf.mxu0  ;;  %v604_v57 = vpop.f32.mrf.mxu1 }
  0xf7   :  { %955 = vst.msk [vmem:[%s2094_s4 + $0x10] sm:$0xff] %vm952_vm2, %v890_v52  ;;  %987 = vst.msk [vmem:[%s2094_s4 + $0x110] sm:$0xff] %vm952_vm2, %v922_v53  ;;  %v827_v58 = vadd.f32 %v1704_v22, %v756_v54  ;;  %v859_v59 = vadd.f32 %v1704_v22, %v788_v55 }
  0xf8   :  { %v447_v60 = vpop.f32.mrf.mxu0  ;;  %v607_v61 = vpop.f32.mrf.mxu1 }
  0xf9   :  { %v891_v62 = vmax.f32 %v827_v58, 0.0  ;;  %v923_v63 = vmax.f32 %v859_v59, 0.0  ;;  %v757_v0 = vmul.f32 %v1699_v20, %v447_v60  ;;  %v789_v1 = vmul.f32 %v1699_v20, %v607_v61 }
  0xfa   :  { %v449_v2 = vpop.f32.mrf.mxu0  ;;  %v609_v3 = vpop.f32.mrf.mxu1 }
  0xfb   :  { %956 = vst.msk [vmem:[%s2094_s4 + $0x18] sm:$0xff] %vm952_vm2, %v891_v62  ;;  %988 = vst.msk [vmem:[%s2094_s4 + $0x118] sm:$0xff] %vm952_vm2, %v923_v63  ;;  %v828_v4 = vadd.f32 %v1704_v22, %v757_v0  ;;  %v860_v5 = vadd.f32 %v1704_v22, %v789_v1 }
  0xfc   :  { %v452_v6 = vpop.f32.mrf.mxu0  ;;  %v612_v7 = vpop.f32.mrf.mxu1 }
  0xfd   :  { %v892_v8 = vmax.f32 %v828_v4, 0.0  ;;  %v924_v9 = vmax.f32 %v860_v5, 0.0  ;;  %v758_v10 = vmul.f32 %v1699_v20, %v452_v6  ;;  %v790_v11 = vmul.f32 %v1699_v20, %v612_v7 }
  0xfe   :  { %v454_v12 = vpop.f32.mrf.mxu0  ;;  %v614_v13 = vpop.f32.mrf.mxu1 }
  0xff   :  { %957 = vst.msk [vmem:[%s2094_s4 + $0x20] sm:$0xff] %vm952_vm2, %v892_v8  ;;  %989 = vst.msk [vmem:[%s2094_s4 + $0x120] sm:$0xff] %vm952_vm2, %v924_v9  ;;  %v829_v14 = vadd.f32 %v1704_v22, %v758_v10  ;;  %v861_v15 = vadd.f32 %v1704_v22, %v790_v11 }
 0x100   :  { %v457_v16 = vpop.f32.mrf.mxu0  ;;  %v617_v17 = vpop.f32.mrf.mxu1 }
 0x101   :  { %v893_v18 = vmax.f32 %v829_v14, 0.0  ;;  %v925_v19 = vmax.f32 %v861_v15, 0.0  ;;  %v759_v21 = vmul.f32 %v1699_v20, %v457_v16  ;;  %v791_v23 = vmul.f32 %v1699_v20, %v617_v17 }
 0x102   :  { %v459_v24 = vpop.f32.mrf.mxu0  ;;  %v619_v25 = vpop.f32.mrf.mxu1 }
 0x103   :  { %958 = vst.msk [vmem:[%s2094_s4 + $0x28] sm:$0xff] %vm952_vm2, %v893_v18  ;;  %990 = vst.msk [vmem:[%s2094_s4 + $0x128] sm:$0xff] %vm952_vm2, %v925_v19  ;;  %v830_v26 = vadd.f32 %v1704_v22, %v759_v21  ;;  %v862_v27 = vadd.f32 %v1704_v22, %v791_v23 }
 0x104   :  { %v462_v28 = vpop.f32.mrf.mxu0  ;;  %v622_v29 = vpop.f32.mrf.mxu1 }
 0x105   :  { %v894_v30 = vmax.f32 %v830_v26, 0.0  ;;  %v926_v31 = vmax.f32 %v862_v27, 0.0  ;;  %v760_v32 = vmul.f32 %v1699_v20, %v462_v28  ;;  %v792_v33 = vmul.f32 %v1699_v20, %v622_v29 }
 0x106   :  { %v464_v34 = vpop.f32.mrf.mxu0  ;;  %v624_v35 = vpop.f32.mrf.mxu1 }
 0x107   :  { %959 = vst.msk [vmem:[%s2094_s4 + $0x30] sm:$0xff] %vm952_vm2, %v894_v30  ;;  %991 = vst.msk [vmem:[%s2094_s4 + $0x130] sm:$0xff] %vm952_vm2, %v926_v31  ;;  %v831_v36 = vadd.f32 %v1704_v22, %v760_v32  ;;  %v863_v37 = vadd.f32 %v1704_v22, %v792_v33 }
 0x108   :  { %v467_v38 = vpop.f32.mrf.mxu0  ;;  %v627_v39 = vpop.f32.mrf.mxu1 }
 0x109   :  { %v895_v40 = vmax.f32 %v831_v36, 0.0  ;;  %v927_v41 = vmax.f32 %v863_v37, 0.0  ;;  %v761_v42 = vmul.f32 %v1699_v20, %v467_v38  ;;  %v793_v43 = vmul.f32 %v1699_v20, %v627_v39 }
 0x10a   :  { %v469_v44 = vpop.f32.mrf.mxu0  ;;  %v629_v45 = vpop.f32.mrf.mxu1 }
 0x10b   :  { %960 = vst.msk [vmem:[%s2094_s4 + $0x38] sm:$0xff] %vm952_vm2, %v895_v40  ;;  %992 = vst.msk [vmem:[%s2094_s4 + $0x138] sm:$0xff] %vm952_vm2, %v927_v41  ;;  %v832_v46 = vadd.f32 %v1704_v22, %v761_v42  ;;  %v864_v47 = vadd.f32 %v1704_v22, %v793_v43 }
 0x10c   :  { %v472_v48 = vpop.f32.mrf.mxu0  ;;  %v632_v49 = vpop.f32.mrf.mxu1 }
 0x10d   :  { %v896_v50 = vmax.f32 %v832_v46, 0.0  ;;  %v928_v51 = vmax.f32 %v864_v47, 0.0  ;;  %v762_v52 = vmul.f32 %v1699_v20, %v472_v48  ;;  %v794_v53 = vmul.f32 %v1699_v20, %v632_v49 }
 0x10e   :  { %v474_v54 = vpop.f32.mrf.mxu0  ;;  %v634_v55 = vpop.f32.mrf.mxu1 }
 0x10f   :  { %961 = vst.msk [vmem:[%s2094_s4 + $0x40] sm:$0xff] %vm952_vm2, %v896_v50  ;;  %993 = vst.msk [vmem:[%s2094_s4 + $0x140] sm:$0xff] %vm952_vm2, %v928_v51  ;;  %v833_v56 = vadd.f32 %v1704_v22, %v762_v52  ;;  %v865_v57 = vadd.f32 %v1704_v22, %v794_v53 }
 0x110   :  { %v477_v58 = vpop.f32.mrf.mxu0  ;;  %v637_v59 = vpop.f32.mrf.mxu1 }
 0x111   :  { %v897_v60 = vmax.f32 %v833_v56, 0.0  ;;  %v929_v61 = vmax.f32 %v865_v57, 0.0  ;;  %v763_v62 = vmul.f32 %v1699_v20, %v477_v58  ;;  %v795_v63 = vmul.f32 %v1699_v20, %v637_v59 }
 0x112   :  { %v479_v0 = vpop.f32.mrf.mxu0  ;;  %v639_v1 = vpop.f32.mrf.mxu1 }
 0x113   :  { %962 = vst.msk [vmem:[%s2094_s4 + $0x48] sm:$0xff] %vm952_vm2, %v897_v60  ;;  %994 = vst.msk [vmem:[%s2094_s4 + $0x148] sm:$0xff] %vm952_vm2, %v929_v61  ;;  %v834_v2 = vadd.f32 %v1704_v22, %v763_v62  ;;  %v866_v3 = vadd.f32 %v1704_v22, %v795_v63 }
 0x114   :  { %v482_v4 = vpop.f32.mrf.mxu0  ;;  %v642_v5 = vpop.f32.mrf.mxu1 }
 0x115   :  { %v898_v6 = vmax.f32 %v834_v2, 0.0  ;;  %v930_v7 = vmax.f32 %v866_v3, 0.0  ;;  %v764_v8 = vmul.f32 %v1699_v20, %v482_v4  ;;  %v796_v9 = vmul.f32 %v1699_v20, %v642_v5 }
 0x116   :  { %v484_v10 = vpop.f32.mrf.mxu0  ;;  %v644_v11 = vpop.f32.mrf.mxu1 }
 0x117   :  { %963 = vst.msk [vmem:[%s2094_s4 + $0x50] sm:$0xff] %vm952_vm2, %v898_v6  ;;  %995 = vst.msk [vmem:[%s2094_s4 + $0x150] sm:$0xff] %vm952_vm2, %v930_v7  ;;  %v835_v12 = vadd.f32 %v1704_v22, %v764_v8  ;;  %v867_v13 = vadd.f32 %v1704_v22, %v796_v9 }
 0x118   :  { %v487_v14 = vpop.f32.mrf.mxu0  ;;  %v647_v15 = vpop.f32.mrf.mxu1 }
 0x119   :  { %v899_v16 = vmax.f32 %v835_v12, 0.0  ;;  %v931_v17 = vmax.f32 %v867_v13, 0.0  ;;  %v765_v18 = vmul.f32 %v1699_v20, %v487_v14  ;;  %v797_v19 = vmul.f32 %v1699_v20, %v647_v15 }
 0x11a   :  { %v489_v21 = vpop.f32.mrf.mxu0  ;;  %v649_v23 = vpop.f32.mrf.mxu1 }
 0x11b   :  { %964 = vst.msk [vmem:[%s2094_s4 + $0x58] sm:$0xff] %vm952_vm2, %v899_v16  ;;  %996 = vst.msk [vmem:[%s2094_s4 + $0x158] sm:$0xff] %vm952_vm2, %v931_v17  ;;  %v836_v24 = vadd.f32 %v1704_v22, %v765_v18  ;;  %v868_v25 = vadd.f32 %v1704_v22, %v797_v19 }
 0x11c   :  { %v492_v26 = vpop.f32.mrf.mxu0  ;;  %v652_v27 = vpop.f32.mrf.mxu1 }
 0x11d   :  { %v900_v28 = vmax.f32 %v836_v24, 0.0  ;;  %v932_v29 = vmax.f32 %v868_v25, 0.0  ;;  %v766_v30 = vmul.f32 %v1699_v20, %v492_v26  ;;  %v798_v31 = vmul.f32 %v1699_v20, %v652_v27 }
 0x11e   :  { %v494_v32 = vpop.f32.mrf.mxu0  ;;  %v654_v33 = vpop.f32.mrf.mxu1 }
 0x11f   :  { %965 = vst.msk [vmem:[%s2094_s4 + $0x60] sm:$0xff] %vm952_vm2, %v900_v28  ;;  %997 = vst.msk [vmem:[%s2094_s4 + $0x160] sm:$0xff] %vm952_vm2, %v932_v29  ;;  %v837_v34 = vadd.f32 %v1704_v22, %v766_v30  ;;  %v869_v35 = vadd.f32 %v1704_v22, %v798_v31 }
 0x120   :  { %v497_v36 = vpop.f32.mrf.mxu0  ;;  %v657_v37 = vpop.f32.mrf.mxu1 }
 0x121   :  { %v901_v38 = vmax.f32 %v837_v34, 0.0  ;;  %v933_v39 = vmax.f32 %v869_v35, 0.0  ;;  %v767_v40 = vmul.f32 %v1699_v20, %v497_v36  ;;  %v799_v41 = vmul.f32 %v1699_v20, %v657_v37 }
 0x122   :  { %v499_v42 = vpop.f32.mrf.mxu0  ;;  %v659_v43 = vpop.f32.mrf.mxu1 }
 0x123   :  { %966 = vst.msk [vmem:[%s2094_s4 + $0x68] sm:$0xff] %vm952_vm2, %v901_v38  ;;  %998 = vst.msk [vmem:[%s2094_s4 + $0x168] sm:$0xff] %vm952_vm2, %v933_v39  ;;  %v838_v44 = vadd.f32 %v1704_v22, %v767_v40  ;;  %v870_v45 = vadd.f32 %v1704_v22, %v799_v41 }
 0x124   :  { %v502_v46 = vpop.f32.mrf.mxu0  ;;  %v662_v47 = vpop.f32.mrf.mxu1 }
 0x125   :  { %v902_v48 = vmax.f32 %v838_v44, 0.0  ;;  %v934_v49 = vmax.f32 %v870_v45, 0.0  ;;  %v768_v50 = vmul.f32 %v1699_v20, %v502_v46  ;;  %v800_v51 = vmul.f32 %v1699_v20, %v662_v47 }
 0x126   :  { %v504_v52 = vpop.f32.mrf.mxu0  ;;  %v664_v53 = vpop.f32.mrf.mxu1 }
 0x127   :  { %967 = vst.msk [vmem:[%s2094_s4 + $0x70] sm:$0xff] %vm952_vm2, %v902_v48  ;;  %999 = vst.msk [vmem:[%s2094_s4 + $0x170] sm:$0xff] %vm952_vm2, %v934_v49  ;;  %v839_v54 = vadd.f32 %v1704_v22, %v768_v50  ;;  %v871_v55 = vadd.f32 %v1704_v22, %v800_v51 }
 0x128   :  { %v507_v56 = vpop.f32.mrf.mxu0  ;;  %v667_v57 = vpop.f32.mrf.mxu1 }
 0x129   :  { %v903_v58 = vmax.f32 %v839_v54, 0.0  ;;  %v935_v59 = vmax.f32 %v871_v55, 0.0  ;;  %v769_v60 = vmul.f32 %v1699_v20, %v507_v56  ;;  %v801_v61 = vmul.f32 %v1699_v20, %v667_v57 }
 0x12a   :  { %v509_v62 = vpop.f32.mrf.mxu0  ;;  %v669_v63 = vpop.f32.mrf.mxu1 }
 0x12b   :  { %968 = vst.msk [vmem:[%s2094_s4 + $0x78] sm:$0xff] %vm952_vm2, %v903_v58  ;;  %1000 = vst.msk [vmem:[%s2094_s4 + $0x178] sm:$0xff] %vm952_vm2, %v935_v59  ;;  %v840_v0 = vadd.f32 %v1704_v22, %v769_v60  ;;  %v872_v1 = vadd.f32 %v1704_v22, %v801_v61 }
 0x12c   :  { %v512_v2 = vpop.f32.mrf.mxu0  ;;  %v672_v3 = vpop.f32.mrf.mxu1 }
 0x12d   :  { %v904_v4 = vmax.f32 %v840_v0, 0.0  ;;  %v936_v5 = vmax.f32 %v872_v1, 0.0  ;;  %v770_v6 = vmul.f32 %v1699_v20, %v512_v2  ;;  %v802_v7 = vmul.f32 %v1699_v20, %v672_v3 }
 0x12e   :  { %v514_v8 = vpop.f32.mrf.mxu0  ;;  %v674_v9 = vpop.f32.mrf.mxu1 }
 0x12f   :  { %969 = vst.msk [vmem:[%s2094_s4 + $0x80] sm:$0xff] %vm952_vm2, %v904_v4  ;;  %1001 = vst.msk [vmem:[%s2094_s4 + $0x180] sm:$0xff] %vm952_vm2, %v936_v5  ;;  %v841_v10 = vadd.f32 %v1704_v22, %v770_v6  ;;  %v873_v11 = vadd.f32 %v1704_v22, %v802_v7 }
 0x130   :  { %v517_v12 = vpop.f32.mrf.mxu0  ;;  %v677_v13 = vpop.f32.mrf.mxu1 }
 0x131   :  { %v905_v14 = vmax.f32 %v841_v10, 0.0  ;;  %v937_v15 = vmax.f32 %v873_v11, 0.0  ;;  %v771_v16 = vmul.f32 %v1699_v20, %v517_v12  ;;  %v803_v17 = vmul.f32 %v1699_v20, %v677_v13 }
 0x132   :  { %v519_v18 = vpop.f32.mrf.mxu0  ;;  %v679_v19 = vpop.f32.mrf.mxu1 }
 0x133   :  { %970 = vst.msk [vmem:[%s2094_s4 + $0x88] sm:$0xff] %vm952_vm2, %v905_v14  ;;  %1002 = vst.msk [vmem:[%s2094_s4 + $0x188] sm:$0xff] %vm952_vm2, %v937_v15  ;;  %v842_v21 = vadd.f32 %v1704_v22, %v771_v16  ;;  %v874_v23 = vadd.f32 %v1704_v22, %v803_v17 }
 0x134   :  { %v522_v24 = vpop.f32.mrf.mxu0  ;;  %v682_v25 = vpop.f32.mrf.mxu1 }
 0x135   :  { %v906_v26 = vmax.f32 %v842_v21, 0.0  ;;  %v938_v27 = vmax.f32 %v874_v23, 0.0  ;;  %v772_v28 = vmul.f32 %v1699_v20, %v522_v24  ;;  %v804_v29 = vmul.f32 %v1699_v20, %v682_v25 }
 0x136   :  { %v524_v30 = vpop.f32.mrf.mxu0  ;;  %v684_v31 = vpop.f32.mrf.mxu1 }
 0x137   :  { %971 = vst.msk [vmem:[%s2094_s4 + $0x90] sm:$0xff] %vm952_vm2, %v906_v26  ;;  %1003 = vst.msk [vmem:[%s2094_s4 + $0x190] sm:$0xff] %vm952_vm2, %v938_v27  ;;  %v843_v32 = vadd.f32 %v1704_v22, %v772_v28  ;;  %v875_v33 = vadd.f32 %v1704_v22, %v804_v29 }
 0x138   :  { %v527_v34 = vpop.f32.mrf.mxu0  ;;  %v687_v35 = vpop.f32.mrf.mxu1 }
 0x139   :  { %v907_v36 = vmax.f32 %v843_v32, 0.0  ;;  %v939_v37 = vmax.f32 %v875_v33, 0.0  ;;  %v773_v38 = vmul.f32 %v1699_v20, %v527_v34  ;;  %v805_v39 = vmul.f32 %v1699_v20, %v687_v35 }
 0x13a   :  { %v529_v40 = vpop.f32.mrf.mxu0  ;;  %v689_v41 = vpop.f32.mrf.mxu1 }
 0x13b   :  { %972 = vst.msk [vmem:[%s2094_s4 + $0x98] sm:$0xff] %vm952_vm2, %v907_v36  ;;  %1004 = vst.msk [vmem:[%s2094_s4 + $0x198] sm:$0xff] %vm952_vm2, %v939_v37  ;;  %v844_v42 = vadd.f32 %v1704_v22, %v773_v38  ;;  %v876_v43 = vadd.f32 %v1704_v22, %v805_v39 }
 0x13c   :  { %v532_v44 = vpop.f32.mrf.mxu0  ;;  %v692_v45 = vpop.f32.mrf.mxu1 }
 0x13d   :  { %v908_v46 = vmax.f32 %v844_v42, 0.0  ;;  %v940_v47 = vmax.f32 %v876_v43, 0.0  ;;  %v774_v48 = vmul.f32 %v1699_v20, %v532_v44  ;;  %v806_v49 = vmul.f32 %v1699_v20, %v692_v45 }
 0x13e   :  { %v534_v50 = vpop.f32.mrf.mxu0  ;;  %v694_v51 = vpop.f32.mrf.mxu1 }
 0x13f   :  { %973 = vst.msk [vmem:[%s2094_s4 + $0xa0] sm:$0xff] %vm952_vm2, %v908_v46  ;;  %1005 = vst.msk [vmem:[%s2094_s4 + $0x1a0] sm:$0xff] %vm952_vm2, %v940_v47  ;;  %v845_v52 = vadd.f32 %v1704_v22, %v774_v48  ;;  %v877_v53 = vadd.f32 %v1704_v22, %v806_v49 }
 0x140   :  { %v537_v54 = vpop.f32.mrf.mxu0  ;;  %v697_v55 = vpop.f32.mrf.mxu1 }
 0x141   :  { %v909_v56 = vmax.f32 %v845_v52, 0.0  ;;  %v941_v57 = vmax.f32 %v877_v53, 0.0  ;;  %v775_v58 = vmul.f32 %v1699_v20, %v537_v54  ;;  %v807_v59 = vmul.f32 %v1699_v20, %v697_v55 }
 0x142   :  { %v539_v60 = vpop.f32.mrf.mxu0  ;;  %v699_v61 = vpop.f32.mrf.mxu1 }
 0x143   :  { %974 = vst.msk [vmem:[%s2094_s4 + $0xa8] sm:$0xff] %vm952_vm2, %v909_v56  ;;  %1006 = vst.msk [vmem:[%s2094_s4 + $0x1a8] sm:$0xff] %vm952_vm2, %v941_v57  ;;  %v846_v62 = vadd.f32 %v1704_v22, %v775_v58  ;;  %v878_v63 = vadd.f32 %v1704_v22, %v807_v59 }
 0x144   :  { %v542_v0 = vpop.f32.mrf.mxu0  ;;  %v702_v1 = vpop.f32.mrf.mxu1 }
 0x145   :  { %v910_v2 = vmax.f32 %v846_v62, 0.0  ;;  %v942_v3 = vmax.f32 %v878_v63, 0.0  ;;  %v776_v4 = vmul.f32 %v1699_v20, %v542_v0  ;;  %v808_v5 = vmul.f32 %v1699_v20, %v702_v1 }
 0x146   :  { %v544_v6 = vpop.f32.mrf.mxu0  ;;  %v704_v7 = vpop.f32.mrf.mxu1 }
 0x147   :  { %975 = vst.msk [vmem:[%s2094_s4 + $0xb0] sm:$0xff] %vm952_vm2, %v910_v2  ;;  %1007 = vst.msk [vmem:[%s2094_s4 + $0x1b0] sm:$0xff] %vm952_vm2, %v942_v3  ;;  %v847_v8 = vadd.f32 %v1704_v22, %v776_v4  ;;  %v879_v9 = vadd.f32 %v1704_v22, %v808_v5 }
 0x148   :  { %v547_v10 = vpop.f32.mrf.mxu0  ;;  %v707_v11 = vpop.f32.mrf.mxu1 }
 0x149   :  { %v911_v12 = vmax.f32 %v847_v8, 0.0  ;;  %v943_v13 = vmax.f32 %v879_v9, 0.0  ;;  %v777_v14 = vmul.f32 %v1699_v20, %v547_v10  ;;  %v809_v15 = vmul.f32 %v1699_v20, %v707_v11 }
 0x14a   :  { %v549_v16 = vpop.f32.mrf.mxu0  ;;  %v709_v17 = vpop.f32.mrf.mxu1 }
 0x14b   :  { %976 = vst.msk [vmem:[%s2094_s4 + $0xb8] sm:$0xff] %vm952_vm2, %v911_v12  ;;  %1008 = vst.msk [vmem:[%s2094_s4 + $0x1b8] sm:$0xff] %vm952_vm2, %v943_v13  ;;  %v848_v18 = vadd.f32 %v1704_v22, %v777_v14  ;;  %v880_v19 = vadd.f32 %v1704_v22, %v809_v15 }
 0x14c   :  { %v552_v21 = vpop.f32.mrf.mxu0  ;;  %v712_v23 = vpop.f32.mrf.mxu1 }
 0x14d   :  { %v912_v24 = vmax.f32 %v848_v18, 0.0  ;;  %v944_v25 = vmax.f32 %v880_v19, 0.0  ;;  %v778_v26 = vmul.f32 %v1699_v20, %v552_v21  ;;  %v810_v27 = vmul.f32 %v1699_v20, %v712_v23 }
 0x14e   :  { %v554_v28 = vpop.f32.mrf.mxu0  ;;  %v714_v29 = vpop.f32.mrf.mxu1 }
 0x14f   :  { %977 = vst.msk [vmem:[%s2094_s4 + $0xc0] sm:$0xff] %vm952_vm2, %v912_v24  ;;  %1009 = vst.msk [vmem:[%s2094_s4 + $0x1c0] sm:$0xff] %vm952_vm2, %v944_v25  ;;  %v849_v30 = vadd.f32 %v1704_v22, %v778_v26  ;;  %v881_v31 = vadd.f32 %v1704_v22, %v810_v27 }
 0x150   :  { %v557_v32 = vpop.f32.mrf.mxu0  ;;  %v717_v33 = vpop.f32.mrf.mxu1 }
 0x151   :  { %v913_v34 = vmax.f32 %v849_v30, 0.0  ;;  %v945_v35 = vmax.f32 %v881_v31, 0.0  ;;  %v779_v36 = vmul.f32 %v1699_v20, %v557_v32  ;;  %v811_v37 = vmul.f32 %v1699_v20, %v717_v33 }
 0x152   :  { %v559_v38 = vpop.f32.mrf.mxu0  ;;  %v719_v39 = vpop.f32.mrf.mxu1 }
 0x153   :  { %978 = vst.msk [vmem:[%s2094_s4 + $0xc8] sm:$0xff] %vm952_vm2, %v913_v34  ;;  %1010 = vst.msk [vmem:[%s2094_s4 + $0x1c8] sm:$0xff] %vm952_vm2, %v945_v35  ;;  %v850_v40 = vadd.f32 %v1704_v22, %v779_v36  ;;  %v882_v41 = vadd.f32 %v1704_v22, %v811_v37 }
 0x154   :  { %v562_v42 = vpop.f32.mrf.mxu0  ;;  %v722_v43 = vpop.f32.mrf.mxu1 }
 0x155   :  { %v914_v44 = vmax.f32 %v850_v40, 0.0  ;;  %v946_v45 = vmax.f32 %v882_v41, 0.0  ;;  %v780_v46 = vmul.f32 %v1699_v20, %v562_v42  ;;  %v812_v47 = vmul.f32 %v1699_v20, %v722_v43 }
 0x156   :  { %v564_v48 = vpop.f32.mrf.mxu0  ;;  %v724_v49 = vpop.f32.mrf.mxu1 }
 0x157   :  { %979 = vst.msk [vmem:[%s2094_s4 + $0xd0] sm:$0xff] %vm952_vm2, %v914_v44  ;;  %1011 = vst.msk [vmem:[%s2094_s4 + $0x1d0] sm:$0xff] %vm952_vm2, %v946_v45  ;;  %v851_v50 = vadd.f32 %v1704_v22, %v780_v46  ;;  %v883_v51 = vadd.f32 %v1704_v22, %v812_v47 }
 0x158   :  { %v567_v52 = vpop.f32.mrf.mxu0  ;;  %v727_v53 = vpop.f32.mrf.mxu1 }
 0x159   :  { %v915_v54 = vmax.f32 %v851_v50, 0.0  ;;  %v947_v55 = vmax.f32 %v883_v51, 0.0  ;;  %v781_v56 = vmul.f32 %v1699_v20, %v567_v52  ;;  %v813_v57 = vmul.f32 %v1699_v20, %v727_v53 }
 0x15a   :  { %v569_v58 = vpop.f32.mrf.mxu0  ;;  %v729_v59 = vpop.f32.mrf.mxu1 }
 0x15b   :  { %980 = vst.msk [vmem:[%s2094_s4 + $0xd8] sm:$0xff] %vm952_vm2, %v915_v54  ;;  %1012 = vst.msk [vmem:[%s2094_s4 + $0x1d8] sm:$0xff] %vm952_vm2, %v947_v55  ;;  %v852_v60 = vadd.f32 %v1704_v22, %v781_v56  ;;  %v884_v61 = vadd.f32 %v1704_v22, %v813_v57 }
 0x15c   :  { %v572_v62 = vpop.f32.mrf.mxu0  ;;  %v732_v63 = vpop.f32.mrf.mxu1 }
 0x15d   :  { %v916_v0 = vmax.f32 %v852_v60, 0.0  ;;  %v948_v1 = vmax.f32 %v884_v61, 0.0  ;;  %v782_v2 = vmul.f32 %v1699_v20, %v572_v62  ;;  %v814_v3 = vmul.f32 %v1699_v20, %v732_v63 }
 0x15e   :  { %v574_v4 = vpop.f32.mrf.mxu0  ;;  %v734_v5 = vpop.f32.mrf.mxu1 }
 0x15f   :  { %981 = vst.msk [vmem:[%s2094_s4 + $0xe0] sm:$0xff] %vm952_vm2, %v916_v0  ;;  %1013 = vst.msk [vmem:[%s2094_s4 + $0x1e0] sm:$0xff] %vm952_vm2, %v948_v1  ;;  %v853_v6 = vadd.f32 %v1704_v22, %v782_v2  ;;  %v885_v7 = vadd.f32 %v1704_v22, %v814_v3 }
 0x160   :  { %v577_v8 = vpop.f32.mrf.mxu0  ;;  %v737_v9 = vpop.f32.mrf.mxu1 }
 0x161   :  { %v917_v10 = vmax.f32 %v853_v6, 0.0  ;;  %v949_v11 = vmax.f32 %v885_v7, 0.0  ;;  %v783_v12 = vmul.f32 %v1699_v20, %v577_v8  ;;  %v815_v13 = vmul.f32 %v1699_v20, %v737_v9 }
 0x162   :  { %v579_v14 = vpop.f32.mrf.mxu0  ;;  %v739_v15 = vpop.f32.mrf.mxu1 }
 0x163   :  { %982 = vst.msk [vmem:[%s2094_s4 + $0xe8] sm:$0xff] %vm952_vm2, %v917_v10  ;;  %1014 = vst.msk [vmem:[%s2094_s4 + $0x1e8] sm:$0xff] %vm952_vm2, %v949_v11  ;;  %v854_v16 = vadd.f32 %v1704_v22, %v783_v12  ;;  %v886_v17 = vadd.f32 %v1704_v22, %v815_v13 }
 0x164   :  { %v582_v18 = vpop.f32.mrf.mxu0  ;;  %v742_v19 = vpop.f32.mrf.mxu1 }
 0x165   :  { %v918_v21 = vmax.f32 %v854_v16, 0.0  ;;  %v950_v23 = vmax.f32 %v886_v17, 0.0  ;;  %v784_v24 = vmul.f32 %v1699_v20, %v582_v18  ;;  %v816_v25 = vmul.f32 %v1699_v20, %v742_v19 }
 0x166   :  { %v584_v26 = vpop.f32.mrf.mxu0  ;;  %v744_v27 = vpop.f32.mrf.mxu1 }
 0x167   :  { %983 = vst.msk [vmem:[%s2094_s4 + $0xf0] sm:$0xff] %vm952_vm2, %v918_v21  ;;  %1015 = vst.msk [vmem:[%s2094_s4 + $0x1f0] sm:$0xff] %vm952_vm2, %v950_v23  ;;  %v855_v28 = vadd.f32 %v1704_v22, %v784_v24  ;;  %v887_v29 = vadd.f32 %v1704_v22, %v816_v25 }
 0x169   :  { %v919_v30 = vmax.f32 %v855_v28, 0.0  ;;  %v951_v31 = vmax.f32 %v887_v29, 0.0 }
 0x16b   :  { %984 = vst.msk [vmem:[%s2094_s4 + $0xf8] sm:$0xff] %vm952_vm2, %v919_v30  ;;  %1016 = vst.msk [vmem:[%s2094_s4 + $0x1f8] sm:$0xff] %vm952_vm2, %v951_v31 }

// kernel: resnet_generator_enc_forward.4
= control target key start
LH: loop header
LB: loop body
LE: loop exit
PB: predicated region body
PF: predicated region fallthrough
CT: control target
= control target key end

     0   :  { %vm169_vm0 = vcmask 523264   ;;  %s1589_s1 = inlined_call_operand.vmem [shape: f32[576,128], index: 1, kind: input, shape index: {}]   ;;  %s1590_s0 = inlined_call_operand.vmem [shape: f32[128,576], index: 0, kind: input, shape index: {}]   ;;  %s1591_s2 = inlined_call_operand.vmem [shape: f32[1,128], index: 2, kind: input, shape index: {}]   ;;  %s1592_s3 = inlined_call_operand.vmem [shape: f32[1,128], index: 3, kind: input, shape index: {}]   ;;  %s1593_s4 = inlined_call_operand.vmem [shape: f32[128,128], index: 4, kind: output, shape index: {}]  }
   0x1   :  { %v128_v0 = vld [vmem:[%s1589_s1 + $0xf8] sm:$0xff]  ;;  %v127_v4 = vld [vmem:[%s1589_s1 + $0xf0] sm:$0xff]  ;;  %v126_v8 = vld [vmem:[%s1589_s1 + $0xe8] sm:$0xff] }
   0x2   :  { %v160_v1 = vld [vmem:[%s1589_s1 + $0x1f8] sm:$0xff]  ;;  %753 = vmatprep.subr.mxu0 %v128_v0  ;;  %v159_v5 = vld [vmem:[%s1589_s1 + $0x1f0] sm:$0xff]  ;;  %v158_v9 = vld [vmem:[%s1589_s1 + $0x1e8] sm:$0xff] }
   0x3   :  { %v112_v2 = vld [vmem:[%s1589_s1 + $0x78] sm:$0xff]  ;;  %833 = vmatprep.subr.mxu1 %v160_v1  ;;  %v111_v6 = vld [vmem:[%s1589_s1 + $0x70] sm:$0xff]  ;;  %v110_v10 = vld [vmem:[%s1589_s1 + $0x68] sm:$0xff] }
   0x4   :  { %v144_v3 = vld [vmem:[%s1589_s1 + $0x178] sm:$0xff]  ;;  %754 = vmatpush3.msra.mxu0 %v112_v2  ;;  %v143_v7 = vld [vmem:[%s1589_s1 + $0x170] sm:$0xff]  ;;  %v142_v11 = vld [vmem:[%s1589_s1 + $0x168] sm:$0xff] }
   0x5   :  { %834 = vmatpush3.msra.mxu1 %v144_v3  ;;  %755 = vmatprep.subr.mxu0 %v127_v4  ;;  %v125_v12 = vld [vmem:[%s1589_s1 + $0xe0] sm:$0xff]  ;;  %v124_v16 = vld [vmem:[%s1589_s1 + $0xd8] sm:$0xff]  ;;  %v123_v20 = vld [vmem:[%s1589_s1 + $0xd0] sm:$0xff] }
   0x6   :  { %835 = vmatprep.subr.mxu1 %v159_v5  ;;  %756 = vmatpush3.msra.mxu0 %v111_v6  ;;  %v157_v13 = vld [vmem:[%s1589_s1 + $0x1e0] sm:$0xff]  ;;  %v156_v17 = vld [vmem:[%s1589_s1 + $0x1d8] sm:$0xff]  ;;  %v155_v21 = vld [vmem:[%s1589_s1 + $0x1d0] sm:$0xff] }
   0x7   :  { %836 = vmatpush3.msra.mxu1 %v143_v7  ;;  %757 = vmatprep.subr.mxu0 %v126_v8  ;;  %v109_v14 = vld [vmem:[%s1589_s1 + $0x60] sm:$0xff]  ;;  %v108_v18 = vld [vmem:[%s1589_s1 + $0x58] sm:$0xff]  ;;  %v107_v22 = vld [vmem:[%s1589_s1 + $0x50] sm:$0xff] }
   0x8   :  { %837 = vmatprep.subr.mxu1 %v158_v9  ;;  %v141_v15 = vld [vmem:[%s1589_s1 + $0x160] sm:$0xff]  ;;  %758 = vmatpush3.msra.mxu0 %v110_v10  ;;  %v140_v19 = vld [vmem:[%s1589_s1 + $0x158] sm:$0xff]  ;;  %v139_v23 = vld [vmem:[%s1589_s1 + $0x150] sm:$0xff] }
   0x9   :  { %838 = vmatpush3.msra.mxu1 %v142_v11  ;;  %759 = vmatprep.subr.mxu0 %v125_v12  ;;  %v122_v24 = vld [vmem:[%s1589_s1 + $0xc8] sm:$0xff]  ;;  %v121_v28 = vld [vmem:[%s1589_s1 + $0xc0] sm:$0xff]  ;;  %v120_v32 = vld [vmem:[%s1589_s1 + $0xb8] sm:$0xff] }
   0xa   :  { %839 = vmatprep.subr.mxu1 %v157_v13  ;;  %760 = vmatpush3.msra.mxu0 %v109_v14  ;;  %v154_v25 = vld [vmem:[%s1589_s1 + $0x1c8] sm:$0xff]  ;;  %v153_v29 = vld [vmem:[%s1589_s1 + $0x1c0] sm:$0xff]  ;;  %v152_v33 = vld [vmem:[%s1589_s1 + $0x1b8] sm:$0xff] }
   0xb   :  { %840 = vmatpush3.msra.mxu1 %v141_v15  ;;  %761 = vmatprep.subr.mxu0 %v124_v16  ;;  %v106_v26 = vld [vmem:[%s1589_s1 + $0x48] sm:$0xff]  ;;  %v105_v30 = vld [vmem:[%s1589_s1 + $0x40] sm:$0xff]  ;;  %v104_v34 = vld [vmem:[%s1589_s1 + $0x38] sm:$0xff] }
   0xc   :  { %841 = vmatprep.subr.mxu1 %v156_v17  ;;  %762 = vmatpush3.msra.mxu0 %v108_v18  ;;  %v138_v27 = vld [vmem:[%s1589_s1 + $0x148] sm:$0xff]  ;;  %v137_v31 = vld [vmem:[%s1589_s1 + $0x140] sm:$0xff]  ;;  %v136_v35 = vld [vmem:[%s1589_s1 + $0x138] sm:$0xff] }
   0xd   :  { %842 = vmatpush3.msra.mxu1 %v140_v19  ;;  %763 = vmatprep.subr.mxu0 %v123_v20  ;;  %v119_v36 = vld [vmem:[%s1589_s1 + $0xb0] sm:$0xff]  ;;  %v118_v40 = vld [vmem:[%s1589_s1 + $0xa8] sm:$0xff]  ;;  %v117_v44 = vld [vmem:[%s1589_s1 + $0xa0] sm:$0xff] }
   0xe   :  { %843 = vmatprep.subr.mxu1 %v155_v21  ;;  %764 = vmatpush3.msra.mxu0 %v107_v22  ;;  %v151_v37 = vld [vmem:[%s1589_s1 + $0x1b0] sm:$0xff]  ;;  %v150_v41 = vld [vmem:[%s1589_s1 + $0x1a8] sm:$0xff]  ;;  %v149_v45 = vld [vmem:[%s1589_s1 + $0x1a0] sm:$0xff] }
   0xf   :  { %844 = vmatpush3.msra.mxu1 %v139_v23  ;;  %765 = vmatprep.subr.mxu0 %v122_v24  ;;  %v103_v38 = vld [vmem:[%s1589_s1 + $0x30] sm:$0xff]  ;;  %v102_v42 = vld [vmem:[%s1589_s1 + $0x28] sm:$0xff]  ;;  %v101_v46 = vld [vmem:[%s1589_s1 + $0x20] sm:$0xff] }
  0x10   :  { %845 = vmatprep.subr.mxu1 %v154_v25  ;;  %766 = vmatpush3.msra.mxu0 %v106_v26  ;;  %v135_v39 = vld [vmem:[%s1589_s1 + $0x130] sm:$0xff]  ;;  %v134_v43 = vld [vmem:[%s1589_s1 + $0x128] sm:$0xff]  ;;  %v133_v47 = vld [vmem:[%s1589_s1 + $0x120] sm:$0xff] }
  0x11   :  { %846 = vmatpush3.msra.mxu1 %v138_v27  ;;  %767 = vmatprep.subr.mxu0 %v121_v28  ;;  %v116_v48 = vld [vmem:[%s1589_s1 + $0x98] sm:$0xff]  ;;  %v115_v52 = vld [vmem:[%s1589_s1 + $0x90] sm:$0xff]  ;;  %v114_v56 = vld [vmem:[%s1589_s1 + $0x88] sm:$0xff] }
  0x12   :  { %847 = vmatprep.subr.mxu1 %v153_v29  ;;  %768 = vmatpush3.msra.mxu0 %v105_v30  ;;  %v148_v49 = vld [vmem:[%s1589_s1 + $0x198] sm:$0xff]  ;;  %v147_v53 = vld [vmem:[%s1589_s1 + $0x190] sm:$0xff]  ;;  %v146_v57 = vld [vmem:[%s1589_s1 + $0x188] sm:$0xff] }
  0x13   :  { %848 = vmatpush3.msra.mxu1 %v137_v31  ;;  %769 = vmatprep.subr.mxu0 %v120_v32  ;;  %v100_v50 = vld [vmem:[%s1589_s1 + $0x18] sm:$0xff]  ;;  %v99_v54 = vld [vmem:[%s1589_s1 + $0x10] sm:$0xff]  ;;  %v98_v58 = vld [vmem:[%s1589_s1 + $0x8] sm:$0xff] }
  0x14   :  { %849 = vmatprep.subr.mxu1 %v152_v33  ;;  %770 = vmatpush3.msra.mxu0 %v104_v34  ;;  %v132_v51 = vld [vmem:[%s1589_s1 + $0x118] sm:$0xff]  ;;  %v131_v55 = vld [vmem:[%s1589_s1 + $0x110] sm:$0xff]  ;;  %v130_v59 = vld [vmem:[%s1589_s1 + $0x108] sm:$0xff] }
  0x15   :  { %850 = vmatpush3.msra.mxu1 %v136_v35  ;;  %771 = vmatprep.subr.mxu0 %v119_v36  ;;  %v113_v60 = vld [vmem:[%s1589_s1 + $0x80] sm:$0xff]  ;;  %v18_v63 = vld [vmem:[%s1590_s0 + $0x8] sm:$0xff]  ;;  %v20_v1 = vld [vmem:[%s1590_s0 + $0x18] sm:$0xff] }
  0x16   :  { %851 = vmatprep.subr.mxu1 %v151_v37  ;;  %772 = vmatpush3.msra.mxu0 %v103_v38  ;;  %v145_v61 = vld [vmem:[%s1589_s1 + $0x180] sm:$0xff]  ;;  %v19_v3 = vld [vmem:[%s1590_s0 + $0x10] sm:$0xff]  ;;  %v168_v4 = vld [vmem:[%s1589_s1 + $0x238] sm:$0xff] }
  0x17   :  { %852 = vmatpush3.msra.mxu1 %v135_v39  ;;  %773 = vmatprep.subr.mxu0 %v118_v40  ;;  %v97_v62 = vld [vmem:[%s1589_s1] sm:$0xff]  ;;  %v23_v5 = vld [vmem:[%s1590_s0 + $0x30] sm:$0xff]  ;;  %v22_v7 = vld [vmem:[%s1590_s0 + $0x28] sm:$0xff] }
  0x18   :  { %853 = vmatprep.subr.mxu1 %v150_v41  ;;  %774 = vmatpush3.msra.mxu0 %v102_v42  ;;  %v129_v0 = vld [vmem:[%s1589_s1 + $0x100] sm:$0xff]  ;;  %v24_v8 = vld [vmem:[%s1590_s0 + $0x38] sm:$0xff]  ;;  %v30_v10 = vld [vmem:[%s1590_s0 + $0x68] sm:$0xff] }
  0x19   :  { %854 = vmatpush3.msra.mxu1 %v134_v43  ;;  %775 = vmatprep.subr.mxu0 %v117_v44  ;;  %v17_v2 = vld [vmem:[%s1590_s0] sm:$0xff]  ;;  %v28_v9 = vld [vmem:[%s1590_s0 + $0x58] sm:$0xff]  ;;  %v167_v11 = vld [vmem:[%s1589_s1 + $0x230] sm:$0xff] }
  0x1a   :  { %855 = vmatprep.subr.mxu1 %v149_v45  ;;  %776 = vmatpush3.msra.mxu0 %v101_v46  ;;  %v25_v6 = vld [vmem:[%s1590_s0 + $0x40] sm:$0xff]  ;;  %v27_v12 = vld [vmem:[%s1590_s0 + $0x50] sm:$0xff]  ;;  %v166_v16 = vld [vmem:[%s1589_s1 + $0x228] sm:$0xff] }
  0x1b   :  { %856 = vmatpush3.msra.mxu1 %v133_v47  ;;  %777 = vmatprep.subr.mxu0 %v116_v48  ;;  %v29_v13 = vld [vmem:[%s1590_s0 + $0x60] sm:$0xff]  ;;  %v35_v15 = vld [vmem:[%s1590_s0 + $0x90] sm:$0xff]  ;;  %v32_v17 = vld [vmem:[%s1590_s0 + $0x78] sm:$0xff] }
  0x1c   :  { %857 = vmatprep.subr.mxu1 %v148_v49  ;;  %778 = vmatpush3.msra.mxu0 %v100_v50  ;;  %v33_v14 = vld [vmem:[%s1590_s0 + $0x80] sm:$0xff]  ;;  %v34_v18 = vld [vmem:[%s1590_s0 + $0x88] sm:$0xff]  ;;  %v40_v20 = vld [vmem:[%s1590_s0 + $0xb8] sm:$0xff] }
  0x1d   :  { %858 = vmatpush3.msra.mxu1 %v132_v51  ;;  %779 = vmatprep.subr.mxu0 %v115_v52  ;;  %v38_v19 = vld [vmem:[%s1590_s0 + $0xa8] sm:$0xff]  ;;  %v165_v21 = vld [vmem:[%s1589_s1 + $0x220] sm:$0xff]  ;;  %v39_v23 = vld [vmem:[%s1590_s0 + $0xb0] sm:$0xff] }
  0x1e   :  { %859 = vmatprep.subr.mxu1 %v147_v53  ;;  %780 = vmatpush3.msra.mxu0 %v99_v54  ;;  %v37_v22 = vld [vmem:[%s1590_s0 + $0xa0] sm:$0xff]  ;;  %v43_v24 = vld [vmem:[%s1590_s0 + $0xd0] sm:$0xff]  ;;  %v164_v26 = vld [vmem:[%s1589_s1 + $0x218] sm:$0xff] }
  0x1f   :  { %860 = vmatpush3.msra.mxu1 %v131_v55  ;;  %781 = vmatprep.subr.mxu0 %v114_v56  ;;  %v45_v25 = vld [vmem:[%s1590_s0 + $0xe0] sm:$0xff]  ;;  %v42_v27 = vld [vmem:[%s1590_s0 + $0xc8] sm:$0xff]  ;;  %v44_v28 = vld [vmem:[%s1590_s0 + $0xd8] sm:$0xff] }
  0x20   :  { %861 = vmatprep.subr.mxu1 %v146_v57  ;;  %782 = vmatpush3.msra.mxu0 %v98_v58  ;;  %v48_v29 = vld [vmem:[%s1590_s0 + $0xf8] sm:$0xff]  ;;  %v50_v30 = vld [vmem:[%s1590_s0 + $0x108] sm:$0xff]  ;;  %v163_v31 = vld [vmem:[%s1589_s1 + $0x210] sm:$0xff] }
  0x21   :  { %862 = vmatpush3.msra.mxu1 %v130_v59  ;;  %783 = vmatprep.subr.mxu0 %v113_v60  ;;  %v47_v32 = vld [vmem:[%s1590_s0 + $0xf0] sm:$0xff]  ;;  %v49_v33 = vld [vmem:[%s1590_s0 + $0x100] sm:$0xff]  ;;  %v162_v36 = vld [vmem:[%s1589_s1 + $0x208] sm:$0xff] }
  0x22   :  { %863 = vmatprep.subr.mxu1 %v145_v61  ;;  %784 = vmatpush3.msra.mxu0 %v97_v62  ;;  %v53_v34 = vld [vmem:[%s1590_s0 + $0x120] sm:$0xff]  ;;  %v55_v35 = vld [vmem:[%s1590_s0 + $0x130] sm:$0xff]  ;;  %v52_v37 = vld [vmem:[%s1590_s0 + $0x118] sm:$0xff] }
  0x23   :  { %282 = vmatprep.mubr.f32.mxu0 %v18_v63  ;;  %864 = vmatpush3.msra.mxu1 %v129_v0  ;;  %v54_v38 = vld [vmem:[%s1590_s0 + $0x128] sm:$0xff]  ;;  %v60_v40 = vld [vmem:[%s1590_s0 + $0x158] sm:$0xff]  ;;  %v161_v41 = vld [vmem:[%s1589_s1 + $0x200] sm:$0xff] }
  0x24   :  { %427 = vmatprep.mubr.f32.mxu1 %v20_v1  ;;  %283 = vmatmul.mubr.f32.vlgmr.msra.gmra.mxu0 %v17_v2  ;;  %v58_v39 = vld [vmem:[%s1590_s0 + $0x148] sm:$0xff]  ;;  %v57_v42 = vld [vmem:[%s1590_s0 + $0x140] sm:$0xff]  ;;  %v59_v43 = vld [vmem:[%s1590_s0 + $0x150] sm:$0xff] }
  0x25   :  { %428 = vmatmul.mubr.f32.vlgmr.msra.gmra.mxu1 %v19_v3  ;;  %937 = vmatprep.subr.mxu0 %v168_v4  ;;  %v63_v44 = vld [vmem:[%s1590_s0 + $0x170] sm:$0xff]  ;;  %v65_v45 = vld [vmem:[%s1590_s0 + $0x180] sm:$0xff]  ;;  %v62_v46 = vld [vmem:[%s1590_s0 + $0x168] sm:$0xff] }
  0x26   :  { %977 = vmatprep.subr.mxu1 %v168_v4  ;;  %938 = vmatpush3.msra.mxu0 %v168_v4  ;;  %v64_v47 = vld [vmem:[%s1590_s0 + $0x178] sm:$0xff]  ;;  %v70_v49 = vld [vmem:[%s1590_s0 + $0x1a8] sm:$0xff]  ;;  %v67_v50 = vld [vmem:[%s1590_s0 + $0x190] sm:$0xff] }
  0x27   :  { %985 = vmatpush3.msra.mxu1 %v168_v4  ;;  %287 = vmatprep.mubr.f32.mxu0 %v23_v5  ;;  %v68_v48 = vld [vmem:[%s1590_s0 + $0x198] sm:$0xff]  ;;  %v69_v51 = vld [vmem:[%s1590_s0 + $0x1a0] sm:$0xff]  ;;  %v75_v53 = vld [vmem:[%s1590_s0 + $0x1d0] sm:$0xff] }
  0x28   :  { %432 = vmatprep.mubr.f32.mxu1 %v25_v6  ;;  %288 = vmatmul.mubr.f32.gmra.mxu0 %v22_v7  ;;  %v73_v52 = vld [vmem:[%s1590_s0 + $0x1c0] sm:$0xff]  ;;  %v72_v54 = vld [vmem:[%s1590_s0 + $0x1b8] sm:$0xff]  ;;  %v74_v55 = vld [vmem:[%s1590_s0 + $0x1c8] sm:$0xff] }
  0x29   :  { %433 = vmatmul.mubr.f32.gmra.mxu1 %v24_v8  ;;  %292 = vmatprep.mubr.f32.mxu0 %v28_v9  ;;  %v78_v56 = vld [vmem:[%s1590_s0 + $0x1e8] sm:$0xff]  ;;  %v80_v57 = vld [vmem:[%s1590_s0 + $0x1f8] sm:$0xff]  ;;  %v77_v58 = vld [vmem:[%s1590_s0 + $0x1e0] sm:$0xff] }
  0x2a   :  { %437 = vmatprep.mubr.f32.mxu1 %v30_v10  ;;  %939 = vmatprep.subr.mxu0 %v167_v11  ;;  %v79_v59 = vld [vmem:[%s1590_s0 + $0x1f0] sm:$0xff]  ;;  %v85_v61 = vld [vmem:[%s1590_s0 + $0x220] sm:$0xff]  ;;  %v82_v62 = vld [vmem:[%s1590_s0 + $0x208] sm:$0xff] }
  0x2b   :  { %978 = vmatprep.subr.mxu1 %v167_v11  ;;  %940 = vmatpush3.msra.mxu0 %v167_v11  ;;  %v83_v60 = vld [vmem:[%s1590_s0 + $0x210] sm:$0xff]  ;;  %v84_v63 = vld [vmem:[%s1590_s0 + $0x218] sm:$0xff]  ;;  %v90_v1 = vld [vmem:[%s1590_s0 + $0x248] sm:$0xff] }
  0x2c   :  { %986 = vmatpush3.msra.mxu1 %v167_v11  ;;  %293 = vmatmul.mubr.f32.gmra.mxu0 %v27_v12  ;;  %v88_v0 = vld [vmem:[%s1590_s0 + $0x238] sm:$0xff]  ;;  %v87_v2 = vld [vmem:[%s1590_s0 + $0x230] sm:$0xff]  ;;  %v89_v3 = vld [vmem:[%s1590_s0 + $0x240] sm:$0xff] }
  0x2d   :  { %438 = vmatmul.mubr.f32.gmra.mxu1 %v29_v13  ;;  %297 = vmatprep.mubr.f32.mxu0 %v33_v14  ;;  %v93_v4 = vld [vmem:[%s1590_s0 + $0x260] sm:$0xff]  ;;  %v95_v5 = vld [vmem:[%s1590_s0 + $0x270] sm:$0xff]  ;;  %v92_v6 = vld [vmem:[%s1590_s0 + $0x258] sm:$0xff] }
  0x2e   :  { %442 = vmatprep.mubr.f32.mxu1 %v35_v15  ;;  %941 = vmatprep.subr.mxu0 %v166_v16  ;;  %v94_v7 = vld [vmem:[%s1590_s0 + $0x268] sm:$0xff]  ;;  %v21_v8 = vld [vmem:[%s1590_s0 + $0x20] sm:$0xff]  ;;  %v31_v12 = vld [vmem:[%s1590_s0 + $0x70] sm:$0xff] }
  0x2f   :  { %979 = vmatprep.subr.mxu1 %v166_v16  ;;  %942 = vmatpush3.msra.mxu0 %v166_v16  ;;  %v61_v9 = vld [vmem:[%s1590_s0 + $0x160] sm:$0xff]  ;;  %v26_v10 = vld [vmem:[%s1590_s0 + $0x48] sm:$0xff]  ;;  %v71_v13 = vld [vmem:[%s1590_s0 + $0x1b0] sm:$0xff] }
  0x30   :  { %987 = vmatpush3.msra.mxu1 %v166_v16  ;;  %298 = vmatmul.mubr.f32.gmra.mxu0 %v32_v17  ;;  %v66_v11 = vld [vmem:[%s1590_s0 + $0x188] sm:$0xff]  ;;  %v36_v14 = vld [vmem:[%s1590_s0 + $0x98] sm:$0xff]  ;;  %v41_v16 = vld [vmem:[%s1590_s0 + $0xc0] sm:$0xff] }
  0x31   :  { %443 = vmatmul.mubr.f32.gmra.mxu1 %v34_v18  ;;  %302 = vmatprep.mubr.f32.mxu0 %v38_v19  ;;  %v76_v15 = vld [vmem:[%s1590_s0 + $0x1d8] sm:$0xff]  ;;  %v81_v17 = vld [vmem:[%s1590_s0 + $0x200] sm:$0xff]  ;;  %v46_v18 = vld [vmem:[%s1590_s0 + $0xe8] sm:$0xff] }
  0x32   :  { %447 = vmatprep.mubr.f32.mxu1 %v40_v20  ;;  %943 = vmatprep.subr.mxu0 %v165_v21  ;;  %v86_v19 = vld [vmem:[%s1590_s0 + $0x228] sm:$0xff]  ;;  %v51_v20 = vld [vmem:[%s1590_s0 + $0x110] sm:$0xff] }
  0x33   :  { %980 = vmatprep.subr.mxu1 %v165_v21  ;;  %944 = vmatpush3.msra.mxu0 %v165_v21 }
  0x34   :  { %988 = vmatpush3.msra.mxu1 %v165_v21  ;;  %303 = vmatmul.mubr.f32.gmra.mxu0 %v37_v22  ;;  %v91_v21 = vld [vmem:[%s1590_s0 + $0x250] sm:$0xff]  ;;  %v56_v22 = vld [vmem:[%s1590_s0 + $0x138] sm:$0xff] }
  0x35   :  { %448 = vmatmul.mubr.f32.gmra.mxu1 %v39_v23  ;;  %307 = vmatprep.mubr.f32.mxu0 %v43_v24  ;;  %v96_v23 = vld [vmem:[%s1590_s0 + $0x278] sm:$0xff] }
  0x36   :  { %452 = vmatprep.mubr.f32.mxu1 %v45_v25  ;;  %945 = vmatprep.subr.mxu0 %v164_v26 }
  0x37   :  { %981 = vmatprep.subr.mxu1 %v164_v26  ;;  %946 = vmatpush3.msra.mxu0 %v164_v26 }
  0x38   :  { %989 = vmatpush3.msra.mxu1 %v164_v26  ;;  %308 = vmatmul.mubr.f32.gmra.mxu0 %v42_v27 }
  0x39   :  { %453 = vmatmul.mubr.f32.gmra.mxu1 %v44_v28  ;;  %312 = vmatprep.mubr.f32.mxu0 %v48_v29 }
  0x3a   :  { %457 = vmatprep.mubr.f32.mxu1 %v50_v30  ;;  %947 = vmatprep.subr.mxu0 %v163_v31 }
  0x3b   :  { %982 = vmatprep.subr.mxu1 %v163_v31  ;;  %948 = vmatpush3.msra.mxu0 %v163_v31 }
  0x3c   :  { %990 = vmatpush3.msra.mxu1 %v163_v31  ;;  %313 = vmatmul.mubr.f32.gmra.mxu0 %v47_v32 }
  0x3d   :  { %458 = vmatmul.mubr.f32.gmra.mxu1 %v49_v33  ;;  %317 = vmatprep.mubr.f32.mxu0 %v53_v34 }
  0x3e   :  { %462 = vmatprep.mubr.f32.mxu1 %v55_v35  ;;  %949 = vmatprep.subr.mxu0 %v162_v36 }
  0x3f   :  { %983 = vmatprep.subr.mxu1 %v162_v36  ;;  %950 = vmatpush3.msra.mxu0 %v162_v36 }
  0x40   :  { %991 = vmatpush3.msra.mxu1 %v162_v36  ;;  %318 = vmatmul.mubr.f32.gmra.mxu0 %v52_v37 }
  0x41   :  { %463 = vmatmul.mubr.f32.gmra.mxu1 %v54_v38  ;;  %322 = vmatprep.mubr.f32.mxu0 %v58_v39 }
  0x42   :  { %467 = vmatprep.mubr.f32.mxu1 %v60_v40  ;;  %951 = vmatprep.subr.mxu0 %v161_v41 }
  0x43   :  { %984 = vmatprep.subr.mxu1 %v161_v41  ;;  %952 = vmatpush3.msra.mxu0 %v161_v41 }
  0x44   :  { %992 = vmatpush3.msra.mxu1 %v161_v41  ;;  %323 = vmatmul.mubr.f32.gmra.mxu0 %v57_v42 }
  0x45   :  { %468 = vmatmul.mubr.f32.gmra.mxu1 %v59_v43  ;;  %327 = vmatprep.mubr.f32.mxu0 %v63_v44 }
  0x46   :  { %472 = vmatprep.mubr.f32.mxu1 %v65_v45 }
  0x48   :  { %328 = vmatmul.mubr.f32.gmra.mxu0 %v62_v46 }
  0x49   :  { %473 = vmatmul.mubr.f32.gmra.mxu1 %v64_v47  ;;  %332 = vmatprep.mubr.f32.mxu0 %v68_v48 }
  0x4a   :  { %477 = vmatprep.mubr.f32.mxu1 %v70_v49 }
  0x4c   :  { %333 = vmatmul.mubr.f32.gmra.mxu0 %v67_v50 }
  0x4d   :  { %478 = vmatmul.mubr.f32.gmra.mxu1 %v69_v51  ;;  %337 = vmatprep.mubr.f32.mxu0 %v73_v52 }
  0x4e   :  { %482 = vmatprep.mubr.f32.mxu1 %v75_v53 }
  0x50   :  { %338 = vmatmul.mubr.f32.gmra.mxu0 %v72_v54 }
  0x51   :  { %483 = vmatmul.mubr.f32.gmra.mxu1 %v74_v55  ;;  %342 = vmatprep.mubr.f32.mxu0 %v78_v56 }
  0x52   :  { %487 = vmatprep.mubr.f32.mxu1 %v80_v57 }
  0x54   :  { %343 = vmatmul.mubr.f32.gmra.mxu0 %v77_v58 }
  0x55   :  { %488 = vmatmul.mubr.f32.gmra.mxu1 %v79_v59  ;;  %347 = vmatprep.mubr.f32.mxu0 %v83_v60 }
  0x56   :  { %492 = vmatprep.mubr.f32.mxu1 %v85_v61 }
  0x58   :  { %348 = vmatmul.mubr.f32.gmra.mxu0 %v82_v62 }
  0x59   :  { %493 = vmatmul.mubr.f32.gmra.mxu1 %v84_v63  ;;  %352 = vmatprep.mubr.f32.mxu0 %v88_v0 }
  0x5a   :  { %497 = vmatprep.mubr.f32.mxu1 %v90_v1 }
  0x5c   :  { %353 = vmatmul.mubr.f32.gmra.mxu0 %v87_v2 }
  0x5d   :  { %498 = vmatmul.mubr.f32.gmra.mxu1 %v89_v3  ;;  %357 = vmatprep.mubr.f32.mxu0 %v93_v4 }
  0x5e   :  { %502 = vmatprep.mubr.f32.mxu1 %v95_v5 }
  0x60   :  { %358 = vmatmul.mubr.f32.gmra.mxu0 %v92_v6 }
  0x61   :  { %503 = vmatmul.mubr.f32.gmra.mxu1 %v94_v7  ;;  %953 = vmatprep.mubr.msk.f32.mxu0 %vm169_vm0, %v21_v8 }
  0x62   :  { %965 = vmatprep.mubr.msk.f32.mxu1 %vm169_vm0, %v61_v9 }
  0x64   :  { %954 = vmatmul.mubr.msk.f32.vlgmr.msra.gmra.mxu0 %vm169_vm0, %v26_v10 }
  0x65   :  { %966 = vmatmul.mubr.msk.f32.vlgmr.msra.gmra.mxu1 %vm169_vm0, %v66_v11  ;;  %956 = vmatprep.mubr.msk.f32.mxu0 %vm169_vm0, %v31_v12 }
  0x66   :  { %968 = vmatprep.mubr.msk.f32.mxu1 %vm169_vm0, %v71_v13 }
  0x68   :  { %957 = vmatmul.mubr.msk.f32.gmra.mxu0 %vm169_vm0, %v36_v14 }
  0x69   :  { %969 = vmatmul.mubr.msk.f32.gmra.mxu1 %vm169_vm0, %v76_v15  ;;  %959 = vmatprep.mubr.msk.f32.mxu0 %vm169_vm0, %v41_v16 }
  0x6a   :  { %971 = vmatprep.mubr.msk.f32.mxu1 %vm169_vm0, %v81_v17 }
  0x6c   :  { %960 = vmatmul.mubr.msk.f32.gmra.mxu0 %vm169_vm0, %v46_v18 }
  0x6d   :  { %972 = vmatmul.mubr.msk.f32.gmra.mxu1 %vm169_vm0, %v86_v19  ;;  %962 = vmatprep.mubr.msk.f32.mxu0 %vm169_vm0, %v51_v20 }
  0x6e   :  { %974 = vmatprep.mubr.msk.f32.mxu1 %vm169_vm0, %v91_v21 }
  0x70   :  { %963 = vmatmul.mubr.msk.f32.gmra.mxu0 %vm169_vm0, %v56_v22 }
  0x71   :  { %975 = vmatmul.mubr.msk.f32.gmra.mxu1 %vm169_vm0, %v96_v23 }
  0xe4   :  { %v785_v24 = vpop.f32.mrf.mxu0 }
  0xe5   :  { %v865_v25 = vpop.f32.mrf.mxu1 }
  0xe6   :  { %v786_v26 = vpop.f32.mrf.mxu0 }
  0xe7   :  { %v866_v27 = vpop.f32.mrf.mxu1  ;;  %v787_v16 = vadd.f32 %v786_v26, %v785_v24 }
  0xe8   :  { %v788_v28 = vpop.f32.mrf.mxu0  ;;  %v867_v17 = vadd.f32 %v866_v27, %v865_v25 }
  0xe9   :  { %v868_v29 = vpop.f32.mrf.mxu1 }
  0xea   :  { %v789_v30 = vpop.f32.mrf.mxu0 }
  0xeb   :  { %v869_v31 = vpop.f32.mrf.mxu1  ;;  %v790_v18 = vadd.f32 %v789_v30, %v788_v28 }
  0xec   :  { %v791_v32 = vpop.f32.mrf.mxu0  ;;  %v870_v19 = vadd.f32 %v869_v31, %v868_v29 }
  0xed   :  { %v871_v33 = vpop.f32.mrf.mxu1 }
  0xee   :  { %v792_v34 = vpop.f32.mrf.mxu0 }
  0xef   :  { %v872_v35 = vpop.f32.mrf.mxu1  ;;  %v793_v20 = vadd.f32 %v792_v34, %v791_v32 }
  0xf0   :  { %v794_v36 = vpop.f32.mrf.mxu0  ;;  %v873_v21 = vadd.f32 %v872_v35, %v871_v33 }
  0xf1   :  { %v874_v37 = vpop.f32.mrf.mxu1 }
  0xf2   :  { %v795_v38 = vpop.f32.mrf.mxu0 }
  0xf3   :  { %v875_v39 = vpop.f32.mrf.mxu1  ;;  %v796_v22 = vadd.f32 %v795_v38, %v794_v36 }
  0xf4   :  { %v797_v40 = vpop.f32.mrf.mxu0  ;;  %v876_v23 = vadd.f32 %v875_v39, %v874_v37  ;;  %v435_v37 = vadd.f32 %v870_v19, %v790_v18  ;;  %v430_v39 = vadd.f32 %v867_v17, %v787_v16 }
  0xf5   :  { %v877_v41 = vpop.f32.mrf.mxu1 }
  0xf6   :  { %v798_v42 = vpop.f32.mrf.mxu0 }
  0xf7   :  { %v878_v43 = vpop.f32.mrf.mxu1  ;;  %v799_v25 = vadd.f32 %v798_v42, %v797_v40  ;;  %v445_v40 = vadd.f32 %v876_v23, %v796_v22  ;;  %v440_v42 = vadd.f32 %v873_v21, %v793_v20 }
  0xf8   :  { %v800_v44 = vpop.f32.mrf.mxu0  ;;  %v879_v27 = vadd.f32 %v878_v43, %v877_v41 }
  0xf9   :  { %v880_v45 = vpop.f32.mrf.mxu1 }
  0xfa   :  { %v801_v46 = vpop.f32.mrf.mxu0 }
  0xfb   :  { %v881_v47 = vpop.f32.mrf.mxu1  ;;  %v802_v28 = vadd.f32 %v801_v46, %v800_v44 }
  0xfc   :  { %v803_v48 = vpop.f32.mrf.mxu0  ;;  %v882_v30 = vadd.f32 %v881_v47, %v880_v45 }
  0xfd   :  { %v883_v49 = vpop.f32.mrf.mxu1 }
  0xfe   :  { %v804_v50 = vpop.f32.mrf.mxu0 }
  0xff   :  { %v884_v51 = vpop.f32.mrf.mxu1  ;;  %v805_v29 = vadd.f32 %v804_v50, %v803_v48  ;;  %v455_v50 = vadd.f32 %v882_v30, %v802_v28 }
 0x100   :  { %v806_v52 = vpop.f32.mrf.mxu0  ;;  %v885_v31 = vadd.f32 %v884_v51, %v883_v49  ;;  %v1490_v49 = vadd.f32 %v879_v27, %v799_v25 }
 0x101   :  { %v886_v53 = vpop.f32.mrf.mxu1 }
 0x102   :  { %v807_v54 = vpop.f32.mrf.mxu0  ;;  %v1492_v51 = vadd.f32 %v885_v31, %v805_v29 }
 0x103   :  { %v887_v55 = vpop.f32.mrf.mxu1  ;;  %v808_v41 = vadd.f32 %v807_v54, %v806_v52 }
 0x104   :  { %v809_v56 = vpop.f32.mrf.mxu0  ;;  %v888_v43 = vadd.f32 %v887_v55, %v886_v53  ;;  %v1497_v53 = vld [vmem:[%s1591_s2] ss:$0 sm:$0xff] }
 0x105   :  { %v889_v57 = vpop.f32.mrf.mxu1 }
 0x106   :  { %v810_v58 = vpop.f32.mrf.mxu0 }
 0x107   :  { %v890_v59 = vpop.f32.mrf.mxu1  ;;  %v811_v44 = vadd.f32 %v810_v58, %v809_v56  ;;  %v1499_v58 = vadd.f32 %v888_v43, %v808_v41 }
 0x108   :  { %v812_v60 = vpop.f32.mrf.mxu0  ;;  %v891_v46 = vadd.f32 %v890_v59, %v889_v57 }
 0x109   :  { %v892_v61 = vpop.f32.mrf.mxu1 }
 0x10a   :  { %v813_v62 = vpop.f32.mrf.mxu0  ;;  %v470_v57 = vadd.f32 %v891_v46, %v811_v44 }
 0x10b   :  { %v893_v63 = vpop.f32.mrf.mxu1  ;;  %v814_v32 = vadd.f32 %v813_v62, %v812_v60 }
 0x10c   :  { %v815_v0 = vpop.f32.mrf.mxu0  ;;  %v894_v34 = vadd.f32 %v893_v63, %v892_v61 }
 0x10d   :  { %v895_v1 = vpop.f32.mrf.mxu1 }
 0x10e   :  { %v816_v2 = vpop.f32.mrf.mxu0  ;;  %v475_v48 = vadd.f32 %v894_v34, %v814_v32 }
 0x10f   :  { %v896_v3 = vpop.f32.mrf.mxu1  ;;  %v817_v60 = vadd.f32 %v816_v2, %v815_v0 }
 0x110   :  { %v818_v4 = vpop.f32.mrf.mxu0  ;;  %v897_v61 = vadd.f32 %v896_v3, %v895_v1  ;;  %v1504_v3 = vld [vmem:[%s1592_s3] ss:$0 sm:$0xff] }
 0x111   :  { %v898_v5 = vpop.f32.mrf.mxu1 }
 0x112   :  { %v819_v6 = vpop.f32.mrf.mxu0 }
 0x113   :  { %v899_v7 = vpop.f32.mrf.mxu1  ;;  %v820_v62 = vadd.f32 %v819_v6, %v818_v4 }
 0x114   :  { %v821_v8 = vpop.f32.mrf.mxu0  ;;  %v900_v63 = vadd.f32 %v899_v7, %v898_v5 }
 0x115   :  { %v901_v9 = vpop.f32.mrf.mxu1 }
 0x116   :  { %v822_v10 = vpop.f32.mrf.mxu0 }
 0x117   :  { %v902_v11 = vpop.f32.mrf.mxu1  ;;  %v823_v18 = vadd.f32 %v822_v10, %v821_v8 }
 0x118   :  { %v824_v12 = vpop.f32.mrf.mxu0  ;;  %v903_v16 = vadd.f32 %v902_v11, %v901_v9  ;;  %v485_v11 = vadd.f32 %v900_v63, %v820_v62 }
 0x119   :  { %v904_v13 = vpop.f32.mrf.mxu1 }
 0x11a   :  { %v825_v14 = vpop.f32.mrf.mxu0 }
 0x11b   :  { %v905_v15 = vpop.f32.mrf.mxu1  ;;  %v826_v17 = vadd.f32 %v825_v14, %v824_v12 }
 0x11c   :  { %v827_v24 = vpop.f32.mrf.mxu0  ;;  %v906_v19 = vadd.f32 %v905_v15, %v904_v13  ;;  %v480_v13 = vadd.f32 %v897_v61, %v817_v60  ;;  %v490_v15 = vadd.f32 %v903_v16, %v823_v18 }
 0x11d   :  { %v907_v26 = vpop.f32.mrf.mxu1 }
 0x11e   :  { %v828_v33 = vpop.f32.mrf.mxu0  ;;  %v495_v14 = vadd.f32 %v906_v19, %v826_v17 }
 0x11f   :  { %v908_v35 = vpop.f32.mrf.mxu1  ;;  %v829_v59 = vadd.f32 %v828_v33, %v827_v24 }
 0x120   :  { %v830_v36 = vpop.f32.mrf.mxu0  ;;  %v909_v0 = vadd.f32 %v908_v35, %v907_v26 }
 0x121   :  { %v910_v38 = vpop.f32.mrf.mxu1 }
 0x122   :  { %v831_v45 = vpop.f32.mrf.mxu0  ;;  %v500_v30 = vadd.f32 %v909_v0, %v829_v59 }
 0x123   :  { %v911_v47 = vpop.f32.mrf.mxu1  ;;  %v832_v1 = vadd.f32 %v831_v45, %v830_v36 }
 0x124   :  { %v955_v52 = vpop.f32.mrf.mxu0  ;;  %v912_v2 = vadd.f32 %v911_v47, %v910_v38 }
 0x125   :  { %v967_v54 = vpop.f32.mrf.mxu1  ;;  %v580_v55 = vadd.f32 %v955_v52, %v435_v37 }
 0x126   :  { %v620_v56 = vadd.f32 %v967_v54, %v475_v48  ;;  %v574_v4 = vpop.f32.mrf.mxu0  ;;  %v505_v28 = vadd.f32 %v912_v2, %v832_v1 }
 0x127   :  { %v614_v5 = vpop.f32.mrf.mxu1  ;;  %v661_v6 = vmul.f32 %v1497_v53, %v580_v55  ;;  %v575_v8 = vadd.f32 %v574_v4, %v430_v39 }
 0x128   :  { %v669_v7 = vmul.f32 %v1497_v53, %v620_v56  ;;  %v615_v9 = vadd.f32 %v614_v5, %v470_v57  ;;  %v958_v10 = vpop.f32.mrf.mxu0 }
 0x129   :  { %v970_v12 = vpop.f32.mrf.mxu1  ;;  %v684_v20 = vadd.f32 %v1504_v3, %v661_v6  ;;  %v660_v22 = vmul.f32 %v1497_v53, %v575_v8  ;;  %v590_v24 = vadd.f32 %v958_v10, %v445_v40 }
 0x12a   :  { %v692_v21 = vadd.f32 %v1504_v3, %v669_v7  ;;  %v668_v23 = vmul.f32 %v1497_v53, %v615_v9  ;;  %v630_v26 = vadd.f32 %v970_v12, %v485_v11  ;;  %v584_v25 = vpop.f32.mrf.mxu0 }
 0x12b   :  { %v624_v27 = vpop.f32.mrf.mxu1  ;;  %v700_v29 = vmax.f32 %v684_v20, 0.0  ;;  %v683_v32 = vadd.f32 %v1504_v3, %v660_v22  ;;  %v663_v33 = vmul.f32 %v1497_v53, %v590_v24  ;;  %v585_v36 = vadd.f32 %v584_v25, %v440_v42 }
 0x12c   :  { %v708_v31 = vmax.f32 %v692_v21, 0.0  ;;  %v691_v34 = vadd.f32 %v1504_v3, %v668_v23  ;;  %v671_v35 = vmul.f32 %v1497_v53, %v630_v26  ;;  %v625_v38 = vadd.f32 %v624_v27, %v480_v13  ;;  %v961_v37 = vpop.f32.mrf.mxu0 }
 0x12d   :  { %v973_v39 = vpop.f32.mrf.mxu1  ;;  %716 = vst [vmem:[%s1593_s4 + $0x8] sm:$0xff] %v700_v29  ;;  %v699_v40 = vmax.f32 %v683_v32, 0.0  ;;  %v600_v43 = vadd.f32 %v961_v37, %v455_v50  ;;  %v686_v46 = vadd.f32 %v1504_v3, %v663_v33  ;;  %v662_v42 = vmul.f32 %v1497_v53, %v585_v36 }
 0x12e   :  { %724 = vst [vmem:[%s1593_s4 + $0x48] sm:$0xff] %v708_v31  ;;  %v707_v41 = vmax.f32 %v691_v34, 0.0  ;;  %v640_v44 = vadd.f32 %v973_v39, %v495_v14  ;;  %v694_v45 = vadd.f32 %v1504_v3, %v671_v35  ;;  %v670_v47 = vmul.f32 %v1497_v53, %v625_v38  ;;  %v594_v48 = vpop.f32.mrf.mxu0 }
 0x12f   :  { %v634_v60 = vpop.f32.mrf.mxu1  ;;  %715 = vst [vmem:[%s1593_s4] sm:$0xff] %v699_v40  ;;  %v665_v50 = vmul.f32 %v1497_v53, %v600_v43  ;;  %v595_v62 = vadd.f32 %v594_v48, %v1490_v49  ;;  %v702_v18 = vmax.f32 %v686_v46, 0.0  ;;  %v685_v17 = vadd.f32 %v1504_v3, %v662_v42 }
 0x130   :  { %723 = vst [vmem:[%s1593_s4 + $0x40] sm:$0xff] %v707_v41  ;;  %v673_v61 = vmul.f32 %v1497_v53, %v640_v44  ;;  %v635_v63 = vadd.f32 %v634_v60, %v490_v15  ;;  %v710_v16 = vmax.f32 %v694_v45, 0.0  ;;  %v693_v19 = vadd.f32 %v1504_v3, %v670_v47  ;;  %v964_v52 = vpop.f32.mrf.mxu0 }
 0x131   :  { %v976_v54 = vpop.f32.mrf.mxu1  ;;  %v688_v55 = vadd.f32 %v1504_v3, %v665_v50  ;;  %v664_v57 = vmul.f32 %v1497_v53, %v595_v62  ;;  %718 = vst [vmem:[%s1593_s4 + $0x18] sm:$0xff] %v702_v18  ;;  %v701_v49 = vmax.f32 %v685_v17, 0.0  ;;  %v610_v1 = vadd.f32 %v964_v52, %v1499_v58 }
 0x132   :  { %v696_v56 = vadd.f32 %v1504_v3, %v673_v61  ;;  %v672_v59 = vmul.f32 %v1497_v53, %v635_v63  ;;  %726 = vst [vmem:[%s1593_s4 + $0x58] sm:$0xff] %v710_v16  ;;  %v709_v0 = vmax.f32 %v693_v19, 0.0  ;;  %v650_v2 = vadd.f32 %v976_v54, %v505_v28  ;;  %v604_v4 = vpop.f32.mrf.mxu0 }
 0x133   :  { %v644_v5 = vpop.f32.mrf.mxu1  ;;  %v704_v6 = vmax.f32 %v688_v55, 0.0  ;;  %v687_v8 = vadd.f32 %v1504_v3, %v664_v57  ;;  %717 = vst [vmem:[%s1593_s4 + $0x10] sm:$0xff] %v701_v49  ;;  %v667_v10 = vmul.f32 %v1497_v53, %v610_v1  ;;  %v605_v11 = vadd.f32 %v604_v4, %v1492_v51 }
 0x134   :  { %v712_v7 = vmax.f32 %v696_v56, 0.0  ;;  %v695_v9 = vadd.f32 %v1504_v3, %v672_v59  ;;  %725 = vst [vmem:[%s1593_s4 + $0x50] sm:$0xff] %v709_v0  ;;  %v675_v58 = vmul.f32 %v1497_v53, %v650_v2  ;;  %v645_v12 = vadd.f32 %v644_v5, %v500_v30 }
 0x135   :  { %720 = vst [vmem:[%s1593_s4 + $0x28] sm:$0xff] %v704_v6  ;;  %v703_v13 = vmax.f32 %v687_v8, 0.0  ;;  %v690_v15 = vadd.f32 %v1504_v3, %v667_v10  ;;  %v666_v21 = vmul.f32 %v1497_v53, %v605_v11 }
 0x136   :  { %728 = vst [vmem:[%s1593_s4 + $0x68] sm:$0xff] %v712_v7  ;;  %v711_v14 = vmax.f32 %v695_v9, 0.0  ;;  %v698_v20 = vadd.f32 %v1504_v3, %v675_v58  ;;  %v674_v22 = vmul.f32 %v1497_v53, %v645_v12 }
 0x137   :  { %719 = vst [vmem:[%s1593_s4 + $0x20] sm:$0xff] %v703_v13  ;;  %v706_v51 = vmax.f32 %v690_v15, 0.0  ;;  %v689_v24 = vadd.f32 %v1504_v3, %v666_v21 }
 0x138   :  { %727 = vst [vmem:[%s1593_s4 + $0x60] sm:$0xff] %v711_v14  ;;  %v714_v23 = vmax.f32 %v698_v20, 0.0  ;;  %v697_v26 = vadd.f32 %v1504_v3, %v674_v22 }
 0x139   :  { %722 = vst [vmem:[%s1593_s4 + $0x38] sm:$0xff] %v706_v51  ;;  %v705_v53 = vmax.f32 %v689_v24, 0.0 }
 0x13a   :  { %730 = vst [vmem:[%s1593_s4 + $0x78] sm:$0xff] %v714_v23  ;;  %v713_v25 = vmax.f32 %v697_v26, 0.0 }
 0x13b   :  { %721 = vst [vmem:[%s1593_s4 + $0x30] sm:$0xff] %v705_v53 }
 0x13c   :  { %729 = vst [vmem:[%s1593_s4 + $0x70] sm:$0xff] %v713_v25 }

// kernel: resnet_generator_enc_forward.5
= control target key start
LH: loop header
LB: loop body
LE: loop exit
PB: predicated region body
PF: predicated region fallthrough
CT: control target
= control target key end

     0   :  { %s1907_s1 = inlined_call_operand.vmem [shape: f32[1152,256], index: 1, kind: input, shape index: {}]   ;;  %s1908_s0 = inlined_call_operand.vmem [shape: f32[32,1152], index: 0, kind: input, shape index: {}]   ;;  %s1909_s2 = inlined_call_operand.vmem [shape: f32[1,256], index: 2, kind: input, shape index: {}]   ;;  %s1910_s3 = inlined_call_operand.vmem [shape: f32[1,256], index: 3, kind: input, shape index: {}]   ;;  %s1911_s4 = inlined_call_operand.vmem [shape: f32[32,256], index: 4, kind: output, shape index: {}]  }
   0x1   :  { %v84_v0 = vld [vmem:[%s1907_s1 + $0xf8] sm:$0xff]  ;;  %v83_v2 = vld [vmem:[%s1907_s1 + $0xf0] sm:$0xff]  ;;  %v82_v4 = vld [vmem:[%s1907_s1 + $0xe8] sm:$0xff] }
   0x2   :  { %v148_v1 = vld [vmem:[%s1907_s1 + $0x2f8] sm:$0xff]  ;;  %341 = vmatprep.subr.mxu0 %v84_v0  ;;  %v147_v3 = vld [vmem:[%s1907_s1 + $0x2f0] sm:$0xff]  ;;  %v146_v5 = vld [vmem:[%s1907_s1 + $0x2e8] sm:$0xff] }
   0x3   :  { %430 = vmatprep.subr.mxu1 %v148_v1  ;;  %342 = vmatpush1.msra.mxu0 %v83_v2  ;;  %v81_v6 = vld [vmem:[%s1907_s1 + $0xe0] sm:$0xff]  ;;  %v80_v8 = vld [vmem:[%s1907_s1 + $0xd8] sm:$0xff]  ;;  %v79_v10 = vld [vmem:[%s1907_s1 + $0xd0] sm:$0xff] }
   0x4   :  { %431 = vmatpush1.msra.mxu1 %v147_v3  ;;  %v145_v7 = vld [vmem:[%s1907_s1 + $0x2e0] sm:$0xff]  ;;  %343 = vmatprep.subr.mxu0 %v82_v4  ;;  %v144_v9 = vld [vmem:[%s1907_s1 + $0x2d8] sm:$0xff]  ;;  %v143_v11 = vld [vmem:[%s1907_s1 + $0x2d0] sm:$0xff] }
   0x5   :  { %432 = vmatprep.subr.mxu1 %v146_v5  ;;  %344 = vmatpush1.msra.mxu0 %v81_v6  ;;  %v78_v12 = vld [vmem:[%s1907_s1 + $0xc8] sm:$0xff]  ;;  %v77_v14 = vld [vmem:[%s1907_s1 + $0xc0] sm:$0xff]  ;;  %v76_v16 = vld [vmem:[%s1907_s1 + $0xb8] sm:$0xff] }
   0x6   :  { %433 = vmatpush1.msra.mxu1 %v145_v7  ;;  %v142_v13 = vld [vmem:[%s1907_s1 + $0x2c8] sm:$0xff]  ;;  %345 = vmatprep.subr.mxu0 %v80_v8  ;;  %v141_v15 = vld [vmem:[%s1907_s1 + $0x2c0] sm:$0xff]  ;;  %v140_v17 = vld [vmem:[%s1907_s1 + $0x2b8] sm:$0xff] }
   0x7   :  { %434 = vmatprep.subr.mxu1 %v144_v9  ;;  %346 = vmatpush1.msra.mxu0 %v79_v10  ;;  %v75_v18 = vld [vmem:[%s1907_s1 + $0xb0] sm:$0xff]  ;;  %v74_v20 = vld [vmem:[%s1907_s1 + $0xa8] sm:$0xff]  ;;  %v73_v22 = vld [vmem:[%s1907_s1 + $0xa0] sm:$0xff] }
   0x8   :  { %435 = vmatpush1.msra.mxu1 %v143_v11  ;;  %347 = vmatprep.subr.mxu0 %v78_v12  ;;  %v139_v19 = vld [vmem:[%s1907_s1 + $0x2b0] sm:$0xff]  ;;  %v138_v21 = vld [vmem:[%s1907_s1 + $0x2a8] sm:$0xff]  ;;  %v137_v23 = vld [vmem:[%s1907_s1 + $0x2a0] sm:$0xff] }
   0x9   :  { %436 = vmatprep.subr.mxu1 %v142_v13  ;;  %348 = vmatpush1.msra.mxu0 %v77_v14  ;;  %v72_v24 = vld [vmem:[%s1907_s1 + $0x98] sm:$0xff]  ;;  %v71_v26 = vld [vmem:[%s1907_s1 + $0x90] sm:$0xff]  ;;  %v70_v28 = vld [vmem:[%s1907_s1 + $0x88] sm:$0xff] }
   0xa   :  { %437 = vmatpush1.msra.mxu1 %v141_v15  ;;  %349 = vmatprep.subr.mxu0 %v76_v16  ;;  %v136_v25 = vld [vmem:[%s1907_s1 + $0x298] sm:$0xff]  ;;  %v135_v27 = vld [vmem:[%s1907_s1 + $0x290] sm:$0xff]  ;;  %v134_v29 = vld [vmem:[%s1907_s1 + $0x288] sm:$0xff] }
   0xb   :  { %438 = vmatprep.subr.mxu1 %v140_v17  ;;  %350 = vmatpush1.msra.mxu0 %v75_v18  ;;  %v69_v30 = vld [vmem:[%s1907_s1 + $0x80] sm:$0xff]  ;;  %v68_v32 = vld [vmem:[%s1907_s1 + $0x78] sm:$0xff]  ;;  %v67_v34 = vld [vmem:[%s1907_s1 + $0x70] sm:$0xff] }
   0xc   :  { %439 = vmatpush1.msra.mxu1 %v139_v19  ;;  %351 = vmatprep.subr.mxu0 %v74_v20  ;;  %v133_v31 = vld [vmem:[%s1907_s1 + $0x280] sm:$0xff]  ;;  %v132_v33 = vld [vmem:[%s1907_s1 + $0x278] sm:$0xff]  ;;  %v131_v35 = vld [vmem:[%s1907_s1 + $0x270] sm:$0xff] }
   0xd   :  { %440 = vmatprep.subr.mxu1 %v138_v21  ;;  %352 = vmatpush1.msra.mxu0 %v73_v22  ;;  %v66_v36 = vld [vmem:[%s1907_s1 + $0x68] sm:$0xff]  ;;  %v65_v38 = vld [vmem:[%s1907_s1 + $0x60] sm:$0xff]  ;;  %v64_v40 = vld [vmem:[%s1907_s1 + $0x58] sm:$0xff] }
   0xe   :  { %441 = vmatpush1.msra.mxu1 %v137_v23  ;;  %353 = vmatprep.subr.mxu0 %v72_v24  ;;  %v130_v37 = vld [vmem:[%s1907_s1 + $0x268] sm:$0xff]  ;;  %v129_v39 = vld [vmem:[%s1907_s1 + $0x260] sm:$0xff]  ;;  %v128_v41 = vld [vmem:[%s1907_s1 + $0x258] sm:$0xff] }
   0xf   :  { %442 = vmatprep.subr.mxu1 %v136_v25  ;;  %354 = vmatpush1.msra.mxu0 %v71_v26  ;;  %v63_v42 = vld [vmem:[%s1907_s1 + $0x50] sm:$0xff]  ;;  %v62_v44 = vld [vmem:[%s1907_s1 + $0x48] sm:$0xff]  ;;  %v61_v46 = vld [vmem:[%s1907_s1 + $0x40] sm:$0xff] }
  0x10   :  { %443 = vmatpush1.msra.mxu1 %v135_v27  ;;  %355 = vmatprep.subr.mxu0 %v70_v28  ;;  %v127_v43 = vld [vmem:[%s1907_s1 + $0x250] sm:$0xff]  ;;  %v126_v45 = vld [vmem:[%s1907_s1 + $0x248] sm:$0xff]  ;;  %v125_v47 = vld [vmem:[%s1907_s1 + $0x240] sm:$0xff] }
  0x11   :  { %444 = vmatprep.subr.mxu1 %v134_v29  ;;  %356 = vmatpush1.msra.mxu0 %v69_v30  ;;  %v60_v48 = vld [vmem:[%s1907_s1 + $0x38] sm:$0xff]  ;;  %v59_v50 = vld [vmem:[%s1907_s1 + $0x30] sm:$0xff]  ;;  %v58_v52 = vld [vmem:[%s1907_s1 + $0x28] sm:$0xff] }
  0x12   :  { %445 = vmatpush1.msra.mxu1 %v133_v31  ;;  %357 = vmatprep.subr.mxu0 %v68_v32  ;;  %v124_v49 = vld [vmem:[%s1907_s1 + $0x238] sm:$0xff]  ;;  %v123_v51 = vld [vmem:[%s1907_s1 + $0x230] sm:$0xff]  ;;  %v122_v53 = vld [vmem:[%s1907_s1 + $0x228] sm:$0xff] }
  0x13   :  { %446 = vmatprep.subr.mxu1 %v132_v33  ;;  %358 = vmatpush1.msra.mxu0 %v67_v34  ;;  %v57_v54 = vld [vmem:[%s1907_s1 + $0x20] sm:$0xff]  ;;  %v56_v56 = vld [vmem:[%s1907_s1 + $0x18] sm:$0xff]  ;;  %v55_v58 = vld [vmem:[%s1907_s1 + $0x10] sm:$0xff] }
  0x14   :  { %447 = vmatpush1.msra.mxu1 %v131_v35  ;;  %359 = vmatprep.subr.mxu0 %v66_v36  ;;  %v121_v55 = vld [vmem:[%s1907_s1 + $0x220] sm:$0xff]  ;;  %v120_v57 = vld [vmem:[%s1907_s1 + $0x218] sm:$0xff]  ;;  %v119_v59 = vld [vmem:[%s1907_s1 + $0x210] sm:$0xff] }
  0x15   :  { %448 = vmatprep.subr.mxu1 %v130_v37  ;;  %360 = vmatpush1.msra.mxu0 %v65_v38  ;;  %v54_v60 = vld [vmem:[%s1907_s1 + $0x8] sm:$0xff]  ;;  %v53_v62 = vld [vmem:[%s1907_s1] sm:$0xff]  ;;  %v116_v0 = vld [vmem:[%s1907_s1 + $0x1f8] sm:$0xff] }
  0x16   :  { %449 = vmatpush1.msra.mxu1 %v129_v39  ;;  %361 = vmatprep.subr.mxu0 %v64_v40  ;;  %v118_v61 = vld [vmem:[%s1907_s1 + $0x208] sm:$0xff]  ;;  %v117_v63 = vld [vmem:[%s1907_s1 + $0x200] sm:$0xff]  ;;  %v180_v1 = vld [vmem:[%s1907_s1 + $0x3f8] sm:$0xff] }
  0x17   :  { %450 = vmatprep.subr.mxu1 %v128_v41  ;;  %362 = vmatpush1.msra.mxu0 %v63_v42  ;;  %v115_v2 = vld [vmem:[%s1907_s1 + $0x1f0] sm:$0xff]  ;;  %v114_v4 = vld [vmem:[%s1907_s1 + $0x1e8] sm:$0xff]  ;;  %v113_v6 = vld [vmem:[%s1907_s1 + $0x1e0] sm:$0xff] }
  0x18   :  { %451 = vmatpush1.msra.mxu1 %v127_v43  ;;  %363 = vmatprep.subr.mxu0 %v62_v44  ;;  %v179_v3 = vld [vmem:[%s1907_s1 + $0x3f0] sm:$0xff]  ;;  %v178_v5 = vld [vmem:[%s1907_s1 + $0x3e8] sm:$0xff]  ;;  %v177_v7 = vld [vmem:[%s1907_s1 + $0x3e0] sm:$0xff] }
  0x19   :  { %452 = vmatprep.subr.mxu1 %v126_v45  ;;  %364 = vmatpush1.msra.mxu0 %v61_v46  ;;  %v112_v8 = vld [vmem:[%s1907_s1 + $0x1d8] sm:$0xff]  ;;  %v111_v10 = vld [vmem:[%s1907_s1 + $0x1d0] sm:$0xff]  ;;  %v110_v12 = vld [vmem:[%s1907_s1 + $0x1c8] sm:$0xff] }
  0x1a   :  { %453 = vmatpush1.msra.mxu1 %v125_v47  ;;  %365 = vmatprep.subr.mxu0 %v60_v48  ;;  %v176_v9 = vld [vmem:[%s1907_s1 + $0x3d8] sm:$0xff]  ;;  %v175_v11 = vld [vmem:[%s1907_s1 + $0x3d0] sm:$0xff]  ;;  %v174_v13 = vld [vmem:[%s1907_s1 + $0x3c8] sm:$0xff] }
  0x1b   :  { %454 = vmatprep.subr.mxu1 %v124_v49  ;;  %366 = vmatpush1.msra.mxu0 %v59_v50  ;;  %v109_v14 = vld [vmem:[%s1907_s1 + $0x1c0] sm:$0xff]  ;;  %v108_v16 = vld [vmem:[%s1907_s1 + $0x1b8] sm:$0xff]  ;;  %v107_v18 = vld [vmem:[%s1907_s1 + $0x1b0] sm:$0xff] }
  0x1c   :  { %455 = vmatpush1.msra.mxu1 %v123_v51  ;;  %367 = vmatprep.subr.mxu0 %v58_v52  ;;  %v173_v15 = vld [vmem:[%s1907_s1 + $0x3c0] sm:$0xff]  ;;  %v172_v17 = vld [vmem:[%s1907_s1 + $0x3b8] sm:$0xff]  ;;  %v171_v19 = vld [vmem:[%s1907_s1 + $0x3b0] sm:$0xff] }
  0x1d   :  { %456 = vmatprep.subr.mxu1 %v122_v53  ;;  %368 = vmatpush1.msra.mxu0 %v57_v54  ;;  %v106_v20 = vld [vmem:[%s1907_s1 + $0x1a8] sm:$0xff]  ;;  %v105_v22 = vld [vmem:[%s1907_s1 + $0x1a0] sm:$0xff]  ;;  %v104_v24 = vld [vmem:[%s1907_s1 + $0x198] sm:$0xff] }
  0x1e   :  { %457 = vmatpush1.msra.mxu1 %v121_v55  ;;  %369 = vmatprep.subr.mxu0 %v56_v56  ;;  %v170_v21 = vld [vmem:[%s1907_s1 + $0x3a8] sm:$0xff]  ;;  %v169_v23 = vld [vmem:[%s1907_s1 + $0x3a0] sm:$0xff]  ;;  %v168_v25 = vld [vmem:[%s1907_s1 + $0x398] sm:$0xff] }
  0x1f   :  { %458 = vmatprep.subr.mxu1 %v120_v57  ;;  %370 = vmatpush1.msra.mxu0 %v55_v58  ;;  %v103_v26 = vld [vmem:[%s1907_s1 + $0x190] sm:$0xff]  ;;  %v102_v28 = vld [vmem:[%s1907_s1 + $0x188] sm:$0xff]  ;;  %v101_v30 = vld [vmem:[%s1907_s1 + $0x180] sm:$0xff] }
  0x20   :  { %459 = vmatpush1.msra.mxu1 %v119_v59  ;;  %371 = vmatprep.subr.mxu0 %v54_v60  ;;  %v167_v27 = vld [vmem:[%s1907_s1 + $0x390] sm:$0xff]  ;;  %v166_v29 = vld [vmem:[%s1907_s1 + $0x388] sm:$0xff]  ;;  %v165_v31 = vld [vmem:[%s1907_s1 + $0x380] sm:$0xff] }
  0x21   :  { %460 = vmatprep.subr.mxu1 %v118_v61  ;;  %372 = vmatpush1.msra.mxu0 %v53_v62  ;;  %v100_v32 = vld [vmem:[%s1907_s1 + $0x178] sm:$0xff]  ;;  %v99_v34 = vld [vmem:[%s1907_s1 + $0x170] sm:$0xff]  ;;  %v98_v36 = vld [vmem:[%s1907_s1 + $0x168] sm:$0xff] }
  0x22   :  { %461 = vmatpush1.msra.mxu1 %v117_v63  ;;  %373 = vmatprep.subr.mxu0 %v116_v0  ;;  %v164_v33 = vld [vmem:[%s1907_s1 + $0x378] sm:$0xff]  ;;  %v163_v35 = vld [vmem:[%s1907_s1 + $0x370] sm:$0xff]  ;;  %v162_v37 = vld [vmem:[%s1907_s1 + $0x368] sm:$0xff] }
  0x23   :  { %462 = vmatprep.subr.mxu1 %v180_v1  ;;  %374 = vmatpush2.msra.mxu0 %v115_v2  ;;  %v97_v38 = vld [vmem:[%s1907_s1 + $0x160] sm:$0xff]  ;;  %v96_v40 = vld [vmem:[%s1907_s1 + $0x158] sm:$0xff]  ;;  %v95_v42 = vld [vmem:[%s1907_s1 + $0x150] sm:$0xff] }
  0x24   :  { %463 = vmatpush2.msra.mxu1 %v179_v3  ;;  %375 = vmatprep.subr.mxu0 %v114_v4  ;;  %v161_v39 = vld [vmem:[%s1907_s1 + $0x360] sm:$0xff]  ;;  %v160_v41 = vld [vmem:[%s1907_s1 + $0x358] sm:$0xff]  ;;  %v159_v43 = vld [vmem:[%s1907_s1 + $0x350] sm:$0xff] }
  0x25   :  { %464 = vmatprep.subr.mxu1 %v178_v5  ;;  %376 = vmatpush2.msra.mxu0 %v113_v6  ;;  %v94_v44 = vld [vmem:[%s1907_s1 + $0x148] sm:$0xff]  ;;  %v93_v46 = vld [vmem:[%s1907_s1 + $0x140] sm:$0xff]  ;;  %v92_v48 = vld [vmem:[%s1907_s1 + $0x138] sm:$0xff] }
  0x26   :  { %465 = vmatpush2.msra.mxu1 %v177_v7  ;;  %377 = vmatprep.subr.mxu0 %v112_v8  ;;  %v158_v45 = vld [vmem:[%s1907_s1 + $0x348] sm:$0xff]  ;;  %v157_v47 = vld [vmem:[%s1907_s1 + $0x340] sm:$0xff]  ;;  %v156_v49 = vld [vmem:[%s1907_s1 + $0x338] sm:$0xff] }
  0x27   :  { %466 = vmatprep.subr.mxu1 %v176_v9  ;;  %378 = vmatpush2.msra.mxu0 %v111_v10  ;;  %v91_v50 = vld [vmem:[%s1907_s1 + $0x130] sm:$0xff]  ;;  %v90_v52 = vld [vmem:[%s1907_s1 + $0x128] sm:$0xff]  ;;  %v89_v54 = vld [vmem:[%s1907_s1 + $0x120] sm:$0xff] }
  0x28   :  { %467 = vmatpush2.msra.mxu1 %v175_v11  ;;  %379 = vmatprep.subr.mxu0 %v110_v12  ;;  %v155_v51 = vld [vmem:[%s1907_s1 + $0x330] sm:$0xff]  ;;  %v154_v53 = vld [vmem:[%s1907_s1 + $0x328] sm:$0xff]  ;;  %v153_v55 = vld [vmem:[%s1907_s1 + $0x320] sm:$0xff] }
  0x29   :  { %468 = vmatprep.subr.mxu1 %v174_v13  ;;  %380 = vmatpush2.msra.mxu0 %v109_v14  ;;  %v88_v56 = vld [vmem:[%s1907_s1 + $0x118] sm:$0xff]  ;;  %v87_v58 = vld [vmem:[%s1907_s1 + $0x110] sm:$0xff]  ;;  %v86_v60 = vld [vmem:[%s1907_s1 + $0x108] sm:$0xff] }
  0x2a   :  { %469 = vmatpush2.msra.mxu1 %v173_v15  ;;  %381 = vmatprep.subr.mxu0 %v108_v16  ;;  %v152_v57 = vld [vmem:[%s1907_s1 + $0x318] sm:$0xff]  ;;  %v151_v59 = vld [vmem:[%s1907_s1 + $0x310] sm:$0xff]  ;;  %v150_v61 = vld [vmem:[%s1907_s1 + $0x308] sm:$0xff] }
  0x2b   :  { %470 = vmatprep.subr.mxu1 %v172_v17  ;;  %382 = vmatpush2.msra.mxu0 %v107_v18  ;;  %v85_v62 = vld [vmem:[%s1907_s1 + $0x100] sm:$0xff]  ;;  %v18_v63 = vld [vmem:[%s1908_s0 + $0x8] sm:$0xff]  ;;  %v20_v1 = vld [vmem:[%s1908_s0 + $0x18] sm:$0xff] }
  0x2c   :  { %471 = vmatpush2.msra.mxu1 %v171_v19  ;;  %383 = vmatprep.subr.mxu0 %v106_v20  ;;  %v149_v0 = vld [vmem:[%s1907_s1 + $0x300] sm:$0xff]  ;;  %v19_v3 = vld [vmem:[%s1908_s0 + $0x10] sm:$0xff]  ;;  %v212_v4 = vld [vmem:[%s1907_s1 + $0x4f8] sm:$0xff] }
  0x2d   :  { %472 = vmatprep.subr.mxu1 %v170_v21  ;;  %384 = vmatpush2.msra.mxu0 %v105_v22  ;;  %v17_v2 = vld [vmem:[%s1908_s0] sm:$0xff]  ;;  %v276_v5 = vld [vmem:[%s1907_s1 + $0x6f8] sm:$0xff]  ;;  %v211_v6 = vld [vmem:[%s1907_s1 + $0x4f0] sm:$0xff] }
  0x2e   :  { %473 = vmatpush2.msra.mxu1 %v169_v23  ;;  %385 = vmatprep.subr.mxu0 %v104_v24  ;;  %v275_v7 = vld [vmem:[%s1907_s1 + $0x6f0] sm:$0xff]  ;;  %v210_v8 = vld [vmem:[%s1907_s1 + $0x4e8] sm:$0xff]  ;;  %v209_v10 = vld [vmem:[%s1907_s1 + $0x4e0] sm:$0xff] }
  0x2f   :  { %474 = vmatprep.subr.mxu1 %v168_v25  ;;  %386 = vmatpush2.msra.mxu0 %v103_v26  ;;  %v274_v9 = vld [vmem:[%s1907_s1 + $0x6e8] sm:$0xff]  ;;  %v273_v11 = vld [vmem:[%s1907_s1 + $0x6e0] sm:$0xff]  ;;  %v208_v12 = vld [vmem:[%s1907_s1 + $0x4d8] sm:$0xff] }
  0x30   :  { %475 = vmatpush2.msra.mxu1 %v167_v27  ;;  %387 = vmatprep.subr.mxu0 %v102_v28  ;;  %v272_v13 = vld [vmem:[%s1907_s1 + $0x6d8] sm:$0xff]  ;;  %v207_v14 = vld [vmem:[%s1907_s1 + $0x4d0] sm:$0xff]  ;;  %v206_v16 = vld [vmem:[%s1907_s1 + $0x4c8] sm:$0xff] }
  0x31   :  { %476 = vmatprep.subr.mxu1 %v166_v29  ;;  %388 = vmatpush2.msra.mxu0 %v101_v30  ;;  %v271_v15 = vld [vmem:[%s1907_s1 + $0x6d0] sm:$0xff]  ;;  %v270_v17 = vld [vmem:[%s1907_s1 + $0x6c8] sm:$0xff]  ;;  %v205_v18 = vld [vmem:[%s1907_s1 + $0x4c0] sm:$0xff] }
  0x32   :  { %477 = vmatpush2.msra.mxu1 %v165_v31  ;;  %389 = vmatprep.subr.mxu0 %v100_v32  ;;  %v269_v19 = vld [vmem:[%s1907_s1 + $0x6c0] sm:$0xff]  ;;  %v204_v20 = vld [vmem:[%s1907_s1 + $0x4b8] sm:$0xff]  ;;  %v203_v22 = vld [vmem:[%s1907_s1 + $0x4b0] sm:$0xff] }
  0x33   :  { %478 = vmatprep.subr.mxu1 %v164_v33  ;;  %390 = vmatpush2.msra.mxu0 %v99_v34  ;;  %v268_v21 = vld [vmem:[%s1907_s1 + $0x6b8] sm:$0xff]  ;;  %v267_v23 = vld [vmem:[%s1907_s1 + $0x6b0] sm:$0xff]  ;;  %v202_v24 = vld [vmem:[%s1907_s1 + $0x4a8] sm:$0xff] }
  0x34   :  { %479 = vmatpush2.msra.mxu1 %v163_v35  ;;  %391 = vmatprep.subr.mxu0 %v98_v36  ;;  %v266_v25 = vld [vmem:[%s1907_s1 + $0x6a8] sm:$0xff]  ;;  %v201_v26 = vld [vmem:[%s1907_s1 + $0x4a0] sm:$0xff]  ;;  %v200_v28 = vld [vmem:[%s1907_s1 + $0x498] sm:$0xff] }
  0x35   :  { %480 = vmatprep.subr.mxu1 %v162_v37  ;;  %392 = vmatpush2.msra.mxu0 %v97_v38  ;;  %v265_v27 = vld [vmem:[%s1907_s1 + $0x6a0] sm:$0xff]  ;;  %v264_v29 = vld [vmem:[%s1907_s1 + $0x698] sm:$0xff]  ;;  %v199_v30 = vld [vmem:[%s1907_s1 + $0x490] sm:$0xff] }
  0x36   :  { %481 = vmatpush2.msra.mxu1 %v161_v39  ;;  %393 = vmatprep.subr.mxu0 %v96_v40  ;;  %v263_v31 = vld [vmem:[%s1907_s1 + $0x690] sm:$0xff]  ;;  %v198_v32 = vld [vmem:[%s1907_s1 + $0x488] sm:$0xff]  ;;  %v197_v34 = vld [vmem:[%s1907_s1 + $0x480] sm:$0xff] }
  0x37   :  { %482 = vmatprep.subr.mxu1 %v160_v41  ;;  %394 = vmatpush2.msra.mxu0 %v95_v42  ;;  %v262_v33 = vld [vmem:[%s1907_s1 + $0x688] sm:$0xff]  ;;  %v261_v35 = vld [vmem:[%s1907_s1 + $0x680] sm:$0xff]  ;;  %v196_v36 = vld [vmem:[%s1907_s1 + $0x478] sm:$0xff] }
  0x38   :  { %483 = vmatpush2.msra.mxu1 %v159_v43  ;;  %395 = vmatprep.subr.mxu0 %v94_v44  ;;  %v260_v37 = vld [vmem:[%s1907_s1 + $0x678] sm:$0xff]  ;;  %v195_v38 = vld [vmem:[%s1907_s1 + $0x470] sm:$0xff]  ;;  %v194_v40 = vld [vmem:[%s1907_s1 + $0x468] sm:$0xff] }
  0x39   :  { %484 = vmatprep.subr.mxu1 %v158_v45  ;;  %396 = vmatpush2.msra.mxu0 %v93_v46  ;;  %v259_v39 = vld [vmem:[%s1907_s1 + $0x670] sm:$0xff]  ;;  %v258_v41 = vld [vmem:[%s1907_s1 + $0x668] sm:$0xff]  ;;  %v193_v42 = vld [vmem:[%s1907_s1 + $0x460] sm:$0xff] }
  0x3a   :  { %485 = vmatpush2.msra.mxu1 %v157_v47  ;;  %397 = vmatprep.subr.mxu0 %v92_v48  ;;  %v257_v43 = vld [vmem:[%s1907_s1 + $0x660] sm:$0xff]  ;;  %v192_v44 = vld [vmem:[%s1907_s1 + $0x458] sm:$0xff]  ;;  %v191_v46 = vld [vmem:[%s1907_s1 + $0x450] sm:$0xff] }
  0x3b   :  { %486 = vmatprep.subr.mxu1 %v156_v49  ;;  %398 = vmatpush2.msra.mxu0 %v91_v50  ;;  %v256_v45 = vld [vmem:[%s1907_s1 + $0x658] sm:$0xff]  ;;  %v255_v47 = vld [vmem:[%s1907_s1 + $0x650] sm:$0xff]  ;;  %v190_v48 = vld [vmem:[%s1907_s1 + $0x448] sm:$0xff] }
  0x3c   :  { %487 = vmatpush2.msra.mxu1 %v155_v51  ;;  %399 = vmatprep.subr.mxu0 %v90_v52  ;;  %v254_v49 = vld [vmem:[%s1907_s1 + $0x648] sm:$0xff]  ;;  %v189_v50 = vld [vmem:[%s1907_s1 + $0x440] sm:$0xff]  ;;  %v188_v52 = vld [vmem:[%s1907_s1 + $0x438] sm:$0xff] }
  0x3d   :  { %488 = vmatprep.subr.mxu1 %v154_v53  ;;  %400 = vmatpush2.msra.mxu0 %v89_v54  ;;  %v253_v51 = vld [vmem:[%s1907_s1 + $0x640] sm:$0xff]  ;;  %v252_v53 = vld [vmem:[%s1907_s1 + $0x638] sm:$0xff]  ;;  %v187_v54 = vld [vmem:[%s1907_s1 + $0x430] sm:$0xff] }
  0x3e   :  { %489 = vmatpush2.msra.mxu1 %v153_v55  ;;  %401 = vmatprep.subr.mxu0 %v88_v56  ;;  %v251_v55 = vld [vmem:[%s1907_s1 + $0x630] sm:$0xff]  ;;  %v186_v56 = vld [vmem:[%s1907_s1 + $0x428] sm:$0xff] }
  0x3f   :  { %490 = vmatprep.subr.mxu1 %v152_v57  ;;  %402 = vmatpush2.msra.mxu0 %v87_v58  ;;  %v250_v57 = vld [vmem:[%s1907_s1 + $0x628] sm:$0xff]  ;;  %v185_v58 = vld [vmem:[%s1907_s1 + $0x420] sm:$0xff] }
  0x40   :  { %491 = vmatpush2.msra.mxu1 %v151_v59  ;;  %403 = vmatprep.subr.mxu0 %v86_v60  ;;  %v249_v59 = vld [vmem:[%s1907_s1 + $0x620] sm:$0xff]  ;;  %v184_v60 = vld [vmem:[%s1907_s1 + $0x418] sm:$0xff] }
  0x41   :  { %492 = vmatprep.subr.mxu1 %v150_v61  ;;  %404 = vmatpush2.msra.mxu0 %v85_v62  ;;  %v248_v61 = vld [vmem:[%s1907_s1 + $0x618] sm:$0xff]  ;;  %v183_v62 = vld [vmem:[%s1907_s1 + $0x410] sm:$0xff] }
  0x42   :  { %405 = vmatprep.mubr.f32.mxu0 %v18_v63  ;;  %493 = vmatpush2.msra.mxu1 %v149_v0  ;;  %v247_v63 = vld [vmem:[%s1907_s1 + $0x610] sm:$0xff]  ;;  %v182_v0 = vld [vmem:[%s1907_s1 + $0x408] sm:$0xff] }
  0x43   :  { %494 = vmatprep.mubr.f32.mxu1 %v20_v1  ;;  %406 = vmatmul.mubr.f32.vlgmr.msra.gmra.mxu0 %v17_v2  ;;  %v246_v1 = vld [vmem:[%s1907_s1 + $0x608] sm:$0xff]  ;;  %v181_v2 = vld [vmem:[%s1907_s1 + $0x400] sm:$0xff] }
  0x44   :  { %495 = vmatmul.mubr.f32.vlgmr.msra.gmra.mxu1 %v19_v3  ;;  %519 = vmatprep.subr.mxu0 %v212_v4  ;;  %v245_v3 = vld [vmem:[%s1907_s1 + $0x600] sm:$0xff]  ;;  %v244_v4 = vld [vmem:[%s1907_s1 + $0x5f8] sm:$0xff] }
  0x45   :  { %608 = vmatprep.subr.mxu1 %v276_v5  ;;  %520 = vmatpush1.msra.mxu0 %v211_v6  ;;  %v308_v5 = vld [vmem:[%s1907_s1 + $0x7f8] sm:$0xff]  ;;  %v243_v6 = vld [vmem:[%s1907_s1 + $0x5f0] sm:$0xff] }
  0x46   :  { %609 = vmatpush1.msra.mxu1 %v275_v7  ;;  %521 = vmatprep.subr.mxu0 %v210_v8  ;;  %v307_v7 = vld [vmem:[%s1907_s1 + $0x7f0] sm:$0xff]  ;;  %v242_v8 = vld [vmem:[%s1907_s1 + $0x5e8] sm:$0xff] }
  0x47   :  { %610 = vmatprep.subr.mxu1 %v274_v9  ;;  %522 = vmatpush1.msra.mxu0 %v209_v10  ;;  %v306_v9 = vld [vmem:[%s1907_s1 + $0x7e8] sm:$0xff]  ;;  %v241_v10 = vld [vmem:[%s1907_s1 + $0x5e0] sm:$0xff] }
  0x48   :  { %611 = vmatpush1.msra.mxu1 %v273_v11  ;;  %523 = vmatprep.subr.mxu0 %v208_v12  ;;  %v305_v11 = vld [vmem:[%s1907_s1 + $0x7e0] sm:$0xff]  ;;  %v240_v12 = vld [vmem:[%s1907_s1 + $0x5d8] sm:$0xff] }
  0x49   :  { %612 = vmatprep.subr.mxu1 %v272_v13  ;;  %524 = vmatpush1.msra.mxu0 %v207_v14  ;;  %v304_v13 = vld [vmem:[%s1907_s1 + $0x7d8] sm:$0xff]  ;;  %v239_v14 = vld [vmem:[%s1907_s1 + $0x5d0] sm:$0xff] }
  0x4a   :  { %613 = vmatpush1.msra.mxu1 %v271_v15  ;;  %525 = vmatprep.subr.mxu0 %v206_v16  ;;  %v303_v15 = vld [vmem:[%s1907_s1 + $0x7d0] sm:$0xff]  ;;  %v238_v16 = vld [vmem:[%s1907_s1 + $0x5c8] sm:$0xff] }
  0x4b   :  { %614 = vmatprep.subr.mxu1 %v270_v17  ;;  %526 = vmatpush1.msra.mxu0 %v205_v18  ;;  %v302_v17 = vld [vmem:[%s1907_s1 + $0x7c8] sm:$0xff]  ;;  %v237_v18 = vld [vmem:[%s1907_s1 + $0x5c0] sm:$0xff] }
  0x4c   :  { %615 = vmatpush1.msra.mxu1 %v269_v19  ;;  %527 = vmatprep.subr.mxu0 %v204_v20  ;;  %v301_v19 = vld [vmem:[%s1907_s1 + $0x7c0] sm:$0xff]  ;;  %v236_v20 = vld [vmem:[%s1907_s1 + $0x5b8] sm:$0xff] }
  0x4d   :  { %616 = vmatprep.subr.mxu1 %v268_v21  ;;  %528 = vmatpush1.msra.mxu0 %v203_v22  ;;  %v300_v21 = vld [vmem:[%s1907_s1 + $0x7b8] sm:$0xff]  ;;  %v235_v22 = vld [vmem:[%s1907_s1 + $0x5b0] sm:$0xff] }
  0x4e   :  { %617 = vmatpush1.msra.mxu1 %v267_v23  ;;  %529 = vmatprep.subr.mxu0 %v202_v24  ;;  %v299_v23 = vld [vmem:[%s1907_s1 + $0x7b0] sm:$0xff]  ;;  %v234_v24 = vld [vmem:[%s1907_s1 + $0x5a8] sm:$0xff] }
  0x4f   :  { %618 = vmatprep.subr.mxu1 %v266_v25  ;;  %530 = vmatpush1.msra.mxu0 %v201_v26  ;;  %v298_v25 = vld [vmem:[%s1907_s1 + $0x7a8] sm:$0xff]  ;;  %v233_v26 = vld [vmem:[%s1907_s1 + $0x5a0] sm:$0xff] }
  0x50   :  { %619 = vmatpush1.msra.mxu1 %v265_v27  ;;  %531 = vmatprep.subr.mxu0 %v200_v28  ;;  %v297_v27 = vld [vmem:[%s1907_s1 + $0x7a0] sm:$0xff]  ;;  %v232_v28 = vld [vmem:[%s1907_s1 + $0x598] sm:$0xff] }
  0x51   :  { %620 = vmatprep.subr.mxu1 %v264_v29  ;;  %532 = vmatpush1.msra.mxu0 %v199_v30  ;;  %v296_v29 = vld [vmem:[%s1907_s1 + $0x798] sm:$0xff]  ;;  %v231_v30 = vld [vmem:[%s1907_s1 + $0x590] sm:$0xff] }
  0x52   :  { %621 = vmatpush1.msra.mxu1 %v263_v31  ;;  %533 = vmatprep.subr.mxu0 %v198_v32  ;;  %v295_v31 = vld [vmem:[%s1907_s1 + $0x790] sm:$0xff]  ;;  %v230_v32 = vld [vmem:[%s1907_s1 + $0x588] sm:$0xff] }
  0x53   :  { %622 = vmatprep.subr.mxu1 %v262_v33  ;;  %534 = vmatpush1.msra.mxu0 %v197_v34  ;;  %v294_v33 = vld [vmem:[%s1907_s1 + $0x788] sm:$0xff]  ;;  %v229_v34 = vld [vmem:[%s1907_s1 + $0x580] sm:$0xff] }
  0x54   :  { %623 = vmatpush1.msra.mxu1 %v261_v35  ;;  %535 = vmatprep.subr.mxu0 %v196_v36  ;;  %v293_v35 = vld [vmem:[%s1907_s1 + $0x780] sm:$0xff]  ;;  %v228_v36 = vld [vmem:[%s1907_s1 + $0x578] sm:$0xff] }
  0x55   :  { %624 = vmatprep.subr.mxu1 %v260_v37  ;;  %536 = vmatpush1.msra.mxu0 %v195_v38  ;;  %v292_v37 = vld [vmem:[%s1907_s1 + $0x778] sm:$0xff]  ;;  %v227_v38 = vld [vmem:[%s1907_s1 + $0x570] sm:$0xff] }
  0x56   :  { %625 = vmatpush1.msra.mxu1 %v259_v39  ;;  %537 = vmatprep.subr.mxu0 %v194_v40  ;;  %v291_v39 = vld [vmem:[%s1907_s1 + $0x770] sm:$0xff] }
  0x57   :  { %626 = vmatprep.subr.mxu1 %v258_v41  ;;  %538 = vmatpush1.msra.mxu0 %v193_v42  ;;  %v27_v40 = vld [vmem:[%s1908_s0 + $0x50] sm:$0xff]  ;;  %v29_v41 = vld [vmem:[%s1908_s0 + $0x60] sm:$0xff]  ;;  %v226_v42 = vld [vmem:[%s1907_s1 + $0x568] sm:$0xff] }
  0x58   :  { %627 = vmatpush1.msra.mxu1 %v257_v43  ;;  %539 = vmatprep.subr.mxu0 %v192_v44  ;;  %v290_v43 = vld [vmem:[%s1907_s1 + $0x768] sm:$0xff] }
  0x59   :  { %628 = vmatprep.subr.mxu1 %v256_v45  ;;  %540 = vmatpush1.msra.mxu0 %v191_v46  ;;  %v26_v44 = vld [vmem:[%s1908_s0 + $0x48] sm:$0xff]  ;;  %v28_v45 = vld [vmem:[%s1908_s0 + $0x58] sm:$0xff]  ;;  %v225_v46 = vld [vmem:[%s1907_s1 + $0x560] sm:$0xff] }
  0x5a   :  { %629 = vmatpush1.msra.mxu1 %v255_v47  ;;  %541 = vmatprep.subr.mxu0 %v190_v48  ;;  %v289_v47 = vld [vmem:[%s1907_s1 + $0x760] sm:$0xff]  ;;  %v224_v48 = vld [vmem:[%s1907_s1 + $0x558] sm:$0xff] }
  0x5b   :  { %630 = vmatprep.subr.mxu1 %v254_v49  ;;  %542 = vmatpush1.msra.mxu0 %v189_v50  ;;  %v288_v49 = vld [vmem:[%s1907_s1 + $0x758] sm:$0xff]  ;;  %v223_v50 = vld [vmem:[%s1907_s1 + $0x550] sm:$0xff] }
  0x5c   :  { %631 = vmatpush1.msra.mxu1 %v253_v51  ;;  %543 = vmatprep.subr.mxu0 %v188_v52  ;;  %v287_v51 = vld [vmem:[%s1907_s1 + $0x750] sm:$0xff]  ;;  %v36_v52 = vld [vmem:[%s1908_s0 + $0x98] sm:$0xff] }
  0x5d   :  { %632 = vmatprep.subr.mxu1 %v252_v53  ;;  %544 = vmatpush1.msra.mxu0 %v187_v54  ;;  %v38_v53 = vld [vmem:[%s1908_s0 + $0xa8] sm:$0xff] }
  0x5e   :  { %633 = vmatpush1.msra.mxu1 %v251_v55  ;;  %545 = vmatprep.subr.mxu0 %v186_v56  ;;  %v222_v54 = vld [vmem:[%s1907_s1 + $0x548] sm:$0xff]  ;;  %v35_v56 = vld [vmem:[%s1908_s0 + $0x90] sm:$0xff] }
  0x5f   :  { %634 = vmatprep.subr.mxu1 %v250_v57  ;;  %546 = vmatpush1.msra.mxu0 %v185_v58  ;;  %v286_v55 = vld [vmem:[%s1907_s1 + $0x748] sm:$0xff]  ;;  %v37_v57 = vld [vmem:[%s1908_s0 + $0xa0] sm:$0xff] }
  0x60   :  { %635 = vmatpush1.msra.mxu1 %v249_v59  ;;  %547 = vmatprep.subr.mxu0 %v184_v60  ;;  %v221_v58 = vld [vmem:[%s1907_s1 + $0x540] sm:$0xff]  ;;  %v220_v60 = vld [vmem:[%s1907_s1 + $0x538] sm:$0xff] }
  0x61   :  { %636 = vmatprep.subr.mxu1 %v248_v61  ;;  %548 = vmatpush1.msra.mxu0 %v183_v62  ;;  %v285_v59 = vld [vmem:[%s1907_s1 + $0x740] sm:$0xff]  ;;  %v284_v61 = vld [vmem:[%s1907_s1 + $0x738] sm:$0xff]  ;;  %v219_v62 = vld [vmem:[%s1907_s1 + $0x530] sm:$0xff] }
  0x62   :  { %637 = vmatpush1.msra.mxu1 %v247_v63  ;;  %549 = vmatprep.subr.mxu0 %v182_v0  ;;  %v283_v63 = vld [vmem:[%s1907_s1 + $0x730] sm:$0xff]  ;;  %v45_v0 = vld [vmem:[%s1908_s0 + $0xe0] sm:$0xff] }
  0x63   :  { %638 = vmatprep.subr.mxu1 %v246_v1  ;;  %550 = vmatpush1.msra.mxu0 %v181_v2  ;;  %v47_v1 = vld [vmem:[%s1908_s0 + $0xf0] sm:$0xff]  ;;  %v218_v2 = vld [vmem:[%s1907_s1 + $0x528] sm:$0xff] }
  0x64   :  { %639 = vmatpush1.msra.mxu1 %v245_v3  ;;  %551 = vmatprep.subr.mxu0 %v244_v4  ;;  %v282_v3 = vld [vmem:[%s1907_s1 + $0x728] sm:$0xff]  ;;  %v44_v4 = vld [vmem:[%s1908_s0 + $0xd8] sm:$0xff] }
  0x65   :  { %640 = vmatprep.subr.mxu1 %v308_v5  ;;  %552 = vmatpush2.msra.mxu0 %v243_v6  ;;  %v46_v5 = vld [vmem:[%s1908_s0 + $0xe8] sm:$0xff]  ;;  %v217_v6 = vld [vmem:[%s1907_s1 + $0x520] sm:$0xff] }
  0x66   :  { %641 = vmatpush2.msra.mxu1 %v307_v7  ;;  %553 = vmatprep.subr.mxu0 %v242_v8  ;;  %v281_v7 = vld [vmem:[%s1907_s1 + $0x720] sm:$0xff]  ;;  %v216_v8 = vld [vmem:[%s1907_s1 + $0x518] sm:$0xff] }
  0x67   :  { %642 = vmatprep.subr.mxu1 %v306_v9  ;;  %554 = vmatpush2.msra.mxu0 %v241_v10  ;;  %v280_v9 = vld [vmem:[%s1907_s1 + $0x718] sm:$0xff]  ;;  %v215_v10 = vld [vmem:[%s1907_s1 + $0x510] sm:$0xff] }
  0x68   :  { %643 = vmatpush2.msra.mxu1 %v305_v11  ;;  %555 = vmatprep.subr.mxu0 %v240_v12  ;;  %v279_v11 = vld [vmem:[%s1907_s1 + $0x710] sm:$0xff]  ;;  %v214_v12 = vld [vmem:[%s1907_s1 + $0x508] sm:$0xff] }
  0x69   :  { %644 = vmatprep.subr.mxu1 %v304_v13  ;;  %556 = vmatpush2.msra.mxu0 %v239_v14  ;;  %v278_v13 = vld [vmem:[%s1907_s1 + $0x708] sm:$0xff]  ;;  %v213_v14 = vld [vmem:[%s1907_s1 + $0x500] sm:$0xff] }
  0x6a   :  { %645 = vmatpush2.msra.mxu1 %v303_v15  ;;  %557 = vmatprep.subr.mxu0 %v238_v16  ;;  %v22_v15 = vld [vmem:[%s1908_s0 + $0x28] sm:$0xff]  ;;  %v277_v16 = vld [vmem:[%s1907_s1 + $0x700] sm:$0xff] }
  0x6b   :  { %646 = vmatprep.subr.mxu1 %v302_v17  ;;  %558 = vmatpush2.msra.mxu0 %v237_v18  ;;  %v24_v17 = vld [vmem:[%s1908_s0 + $0x38] sm:$0xff]  ;;  %v21_v18 = vld [vmem:[%s1908_s0 + $0x20] sm:$0xff] }
  0x6c   :  { %647 = vmatpush2.msra.mxu1 %v301_v19  ;;  %559 = vmatprep.subr.mxu0 %v236_v20  ;;  %v23_v19 = vld [vmem:[%s1908_s0 + $0x30] sm:$0xff]  ;;  %v340_v20 = vld [vmem:[%s1907_s1 + $0x8f8] sm:$0xff] }
  0x6d   :  { %648 = vmatprep.subr.mxu1 %v300_v21  ;;  %560 = vmatpush2.msra.mxu0 %v235_v22  ;;  %v339_v21 = vld [vmem:[%s1907_s1 + $0x8f0] sm:$0xff]  ;;  %v338_v22 = vld [vmem:[%s1907_s1 + $0x8e8] sm:$0xff] }
  0x6e   :  { %649 = vmatpush2.msra.mxu1 %v299_v23  ;;  %561 = vmatprep.subr.mxu0 %v234_v24  ;;  %v31_v23 = vld [vmem:[%s1908_s0 + $0x70] sm:$0xff]  ;;  %v337_v24 = vld [vmem:[%s1907_s1 + $0x8e0] sm:$0xff] }
  0x6f   :  { %650 = vmatprep.subr.mxu1 %v298_v25  ;;  %562 = vmatpush2.msra.mxu0 %v233_v26  ;;  %v30_v25 = vld [vmem:[%s1908_s0 + $0x68] sm:$0xff]  ;;  %v336_v26 = vld [vmem:[%s1907_s1 + $0x8d8] sm:$0xff] }
  0x70   :  { %651 = vmatpush2.msra.mxu1 %v297_v27  ;;  %563 = vmatprep.subr.mxu0 %v232_v28  ;;  %v33_v27 = vld [vmem:[%s1908_s0 + $0x80] sm:$0xff]  ;;  %v335_v28 = vld [vmem:[%s1907_s1 + $0x8d0] sm:$0xff] }
  0x71   :  { %652 = vmatprep.subr.mxu1 %v296_v29  ;;  %564 = vmatpush2.msra.mxu0 %v231_v30  ;;  %v334_v29 = vld [vmem:[%s1907_s1 + $0x8c8] sm:$0xff]  ;;  %v32_v30 = vld [vmem:[%s1908_s0 + $0x78] sm:$0xff] }
  0x72   :  { %653 = vmatpush2.msra.mxu1 %v295_v31  ;;  %565 = vmatprep.subr.mxu0 %v230_v32  ;;  %v40_v31 = vld [vmem:[%s1908_s0 + $0xb8] sm:$0xff]  ;;  %v333_v32 = vld [vmem:[%s1907_s1 + $0x8c0] sm:$0xff] }
  0x73   :  { %654 = vmatprep.subr.mxu1 %v294_v33  ;;  %566 = vmatpush2.msra.mxu0 %v229_v34  ;;  %v39_v33 = vld [vmem:[%s1908_s0 + $0xb0] sm:$0xff]  ;;  %v332_v34 = vld [vmem:[%s1907_s1 + $0x8b8] sm:$0xff] }
  0x74   :  { %655 = vmatpush2.msra.mxu1 %v293_v35  ;;  %567 = vmatprep.subr.mxu0 %v228_v36  ;;  %v42_v35 = vld [vmem:[%s1908_s0 + $0xc8] sm:$0xff]  ;;  %v331_v36 = vld [vmem:[%s1907_s1 + $0x8b0] sm:$0xff] }
  0x75   :  { %656 = vmatprep.subr.mxu1 %v292_v37  ;;  %568 = vmatpush2.msra.mxu0 %v227_v38  ;;  %v330_v37 = vld [vmem:[%s1907_s1 + $0x8a8] sm:$0xff]  ;;  %v41_v38 = vld [vmem:[%s1908_s0 + $0xc0] sm:$0xff] }
  0x76   :  { %657 = vmatpush2.msra.mxu1 %v291_v39  ;;  %411 = vmatprep.mubr.f32.mxu0 %v27_v40  ;;  %v49_v39 = vld [vmem:[%s1908_s0 + $0x100] sm:$0xff] }
  0x77   :  { %500 = vmatprep.mubr.f32.mxu1 %v29_v41  ;;  %569 = vmatprep.subr.mxu0 %v226_v42  ;;  %v329_v40 = vld [vmem:[%s1907_s1 + $0x8a0] sm:$0xff]  ;;  %v48_v41 = vld [vmem:[%s1908_s0 + $0xf8] sm:$0xff] }
  0x78   :  { %658 = vmatprep.subr.mxu1 %v290_v43  ;;  %412 = vmatmul.mubr.f32.gmra.mxu0 %v26_v44  ;;  %v328_v42 = vld [vmem:[%s1907_s1 + $0x898] sm:$0xff]  ;;  %v51_v43 = vld [vmem:[%s1908_s0 + $0x110] sm:$0xff] }
  0x79   :  { %501 = vmatmul.mubr.f32.gmra.mxu1 %v28_v45  ;;  %570 = vmatpush2.msra.mxu0 %v225_v46  ;;  %v327_v44 = vld [vmem:[%s1907_s1 + $0x890] sm:$0xff]  ;;  %v326_v45 = vld [vmem:[%s1907_s1 + $0x888] sm:$0xff] }
  0x7a   :  { %659 = vmatpush2.msra.mxu1 %v289_v47  ;;  %571 = vmatprep.subr.mxu0 %v224_v48  ;;  %v50_v46 = vld [vmem:[%s1908_s0 + $0x108] sm:$0xff]  ;;  %v325_v47 = vld [vmem:[%s1907_s1 + $0x880] sm:$0xff]  ;;  %v324_v48 = vld [vmem:[%s1907_s1 + $0x878] sm:$0xff] }
  0x7b   :  { %660 = vmatprep.subr.mxu1 %v288_v49  ;;  %572 = vmatpush2.msra.mxu0 %v223_v50  ;;  %v323_v49 = vld [vmem:[%s1907_s1 + $0x870] sm:$0xff]  ;;  %v322_v50 = vld [vmem:[%s1907_s1 + $0x868] sm:$0xff] }
  0x7c   :  { %661 = vmatpush2.msra.mxu1 %v287_v51  ;;  %417 = vmatprep.mubr.f32.mxu0 %v36_v52  ;;  %v321_v51 = vld [vmem:[%s1907_s1 + $0x860] sm:$0xff]  ;;  %v320_v52 = vld [vmem:[%s1907_s1 + $0x858] sm:$0xff] }
  0x7d   :  { %506 = vmatprep.mubr.f32.mxu1 %v38_v53  ;;  %573 = vmatprep.subr.mxu0 %v222_v54  ;;  %v319_v53 = vld [vmem:[%s1907_s1 + $0x850] sm:$0xff]  ;;  %v318_v54 = vld [vmem:[%s1907_s1 + $0x848] sm:$0xff] }
  0x7e   :  { %662 = vmatprep.subr.mxu1 %v286_v55  ;;  %418 = vmatmul.mubr.f32.gmra.mxu0 %v35_v56  ;;  %v317_v55 = vld [vmem:[%s1907_s1 + $0x840] sm:$0xff]  ;;  %v316_v56 = vld [vmem:[%s1907_s1 + $0x838] sm:$0xff] }
  0x7f   :  { %507 = vmatmul.mubr.f32.gmra.mxu1 %v37_v57  ;;  %574 = vmatpush2.msra.mxu0 %v221_v58  ;;  %v315_v57 = vld [vmem:[%s1907_s1 + $0x830] sm:$0xff]  ;;  %v314_v58 = vld [vmem:[%s1907_s1 + $0x828] sm:$0xff] }
  0x80   :  { %663 = vmatpush2.msra.mxu1 %v285_v59  ;;  %575 = vmatprep.subr.mxu0 %v220_v60  ;;  %v313_v59 = vld [vmem:[%s1907_s1 + $0x820] sm:$0xff]  ;;  %v312_v60 = vld [vmem:[%s1907_s1 + $0x818] sm:$0xff] }
  0x81   :  { %664 = vmatprep.subr.mxu1 %v284_v61  ;;  %576 = vmatpush2.msra.mxu0 %v219_v62  ;;  %v311_v61 = vld [vmem:[%s1907_s1 + $0x810] sm:$0xff]  ;;  %v310_v62 = vld [vmem:[%s1907_s1 + $0x808] sm:$0xff] }
  0x82   :  { %665 = vmatpush2.msra.mxu1 %v283_v63  ;;  %423 = vmatprep.mubr.f32.mxu0 %v45_v0  ;;  %v309_v63 = vld [vmem:[%s1907_s1 + $0x800] sm:$0xff] }
  0x83   :  { %512 = vmatprep.mubr.f32.mxu1 %v47_v1  ;;  %577 = vmatprep.subr.mxu0 %v218_v2  ;;  %v25_v0 = vld [vmem:[%s1908_s0 + $0x40] sm:$0xff]  ;;  %v43_v1 = vld [vmem:[%s1908_s0 + $0xd0] sm:$0xff]  ;;  %v879_v2 = vmov 0.0  }
  0x84   :  { %666 = vmatprep.subr.mxu1 %v282_v3  ;;  %424 = vmatmul.mubr.f32.gmra.mxu0 %v44_v4  ;;  %v34_v3 = vld [vmem:[%s1908_s0 + $0x88] sm:$0xff]  ;;  %v52_v4 = vld [vmem:[%s1908_s0 + $0x118] sm:$0xff] }
  0x85   :  { %513 = vmatmul.mubr.f32.gmra.mxu1 %v46_v5  ;;  %578 = vmatpush2.msra.mxu0 %v217_v6 }
  0x86   :  { %667 = vmatpush2.msra.mxu1 %v281_v7  ;;  %579 = vmatprep.subr.mxu0 %v216_v8 }
  0x87   :  { %668 = vmatprep.subr.mxu1 %v280_v9  ;;  %580 = vmatpush2.msra.mxu0 %v215_v10 }
  0x88   :  { %669 = vmatpush2.msra.mxu1 %v279_v11  ;;  %581 = vmatprep.subr.mxu0 %v214_v12 }
  0x89   :  { %670 = vmatprep.subr.mxu1 %v278_v13  ;;  %582 = vmatpush2.msra.mxu0 %v213_v14 }
  0x8a   :  { %583 = vmatprep.mubr.f32.mxu0 %v22_v15  ;;  %671 = vmatpush2.msra.mxu1 %v277_v16 }
  0x8b   :  { %672 = vmatprep.mubr.f32.mxu1 %v24_v17  ;;  %584 = vmatmul.mubr.f32.vlgmr.msra.gmra.mxu0 %v21_v18 }
  0x8c   :  { %673 = vmatmul.mubr.f32.vlgmr.msra.gmra.mxu1 %v23_v19  ;;  %697 = vmatprep.subr.mxu0 %v340_v20 }
  0x8d   :  { %846 = vmatprep.subr.mxu1 %v340_v20  ;;  %698 = vmatpush1.msra.mxu0 %v339_v21 }
  0x8e   :  { %862 = vmatpush1.msra.mxu1 %v339_v21  ;;  %699 = vmatprep.subr.mxu0 %v338_v22 }
  0x8f   :  { %847 = vmatprep.subr.mxu1 %v338_v22  ;;  %589 = vmatprep.mubr.f32.mxu0 %v31_v23 }
  0x90   :  { %700 = vmatpush1.msra.mxu0 %v337_v24  ;;  %863 = vmatpush1.msra.mxu1 %v337_v24 }
  0x91   :  { %590 = vmatmul.mubr.f32.gmra.mxu0 %v30_v25  ;;  %701 = vmatprep.subr.mxu0 %v336_v26 }
  0x92   :  { %848 = vmatprep.subr.mxu1 %v336_v26  ;;  %678 = vmatprep.mubr.f32.mxu1 %v33_v27 }
  0x93   :  { %702 = vmatpush1.msra.mxu0 %v335_v28  ;;  %864 = vmatpush1.msra.mxu1 %v335_v28 }
  0x94   :  { %703 = vmatprep.subr.mxu0 %v334_v29  ;;  %679 = vmatmul.mubr.f32.gmra.mxu1 %v32_v30 }
  0x95   :  { %849 = vmatprep.subr.mxu1 %v334_v29  ;;  %595 = vmatprep.mubr.f32.mxu0 %v40_v31  ;;  %v788_v31 = vlaneseq }
  0x96   :  { %704 = vmatpush1.msra.mxu0 %v333_v32  ;;  %865 = vmatpush1.msra.mxu1 %v333_v32 }
  0x97   :  { %596 = vmatmul.mubr.f32.gmra.mxu0 %v39_v33  ;;  %705 = vmatprep.subr.mxu0 %v332_v34 }
  0x98   :  { %850 = vmatprep.subr.mxu1 %v332_v34  ;;  %684 = vmatprep.mubr.f32.mxu1 %v42_v35  ;;  %v789_v34 = vshrl.u32 %v788_v31, 7 }
  0x99   :  { %706 = vmatpush1.msra.mxu0 %v331_v36  ;;  %866 = vmatpush1.msra.mxu1 %v331_v36 }
  0x9a   :  { %707 = vmatprep.subr.mxu0 %v330_v37  ;;  %685 = vmatmul.mubr.f32.gmra.mxu1 %v41_v38 }
  0x9b   :  { %851 = vmatprep.subr.mxu1 %v330_v37  ;;  %601 = vmatprep.mubr.f32.mxu0 %v49_v39  ;;  %v790_v39 = vsub.s32 0, %v789_v34 }
  0x9c   :  { %708 = vmatpush1.msra.mxu0 %v329_v40  ;;  %867 = vmatpush1.msra.mxu1 %v329_v40  ;;  %v794_v40 = vsub.s32 1, %v789_v34 }
  0x9d   :  { %602 = vmatmul.mubr.f32.gmra.mxu0 %v48_v41  ;;  %709 = vmatprep.subr.mxu0 %v328_v42 }
  0x9e   :  { %852 = vmatprep.subr.mxu1 %v328_v42  ;;  %690 = vmatprep.mubr.f32.mxu1 %v51_v43 }
  0x9f   :  { %710 = vmatpush1.msra.mxu0 %v327_v44  ;;  %868 = vmatpush1.msra.mxu1 %v327_v44 }
  0xa0   :  { %711 = vmatprep.subr.mxu0 %v326_v45  ;;  %691 = vmatmul.mubr.f32.gmra.mxu1 %v50_v46  ;;  %v806_v46 = vld [vmem:[%s1910_s3] sm:$0x3] }
  0xa1   :  { %853 = vmatprep.subr.mxu1 %v326_v45  ;;  %712 = vmatpush1.msra.mxu0 %v325_v47  ;;  %v786_v45 = vld [vmem:[%s1909_s2] sm:$0x3] }
  0xa2   :  { %869 = vmatpush1.msra.mxu1 %v325_v47  ;;  %713 = vmatprep.subr.mxu0 %v324_v48 }
  0xa3   :  { %854 = vmatprep.subr.mxu1 %v324_v48  ;;  %714 = vmatpush1.msra.mxu0 %v323_v49 }
  0xa4   :  { %870 = vmatpush1.msra.mxu1 %v323_v49  ;;  %715 = vmatprep.subr.mxu0 %v322_v50 }
  0xa5   :  { %855 = vmatprep.subr.mxu1 %v322_v50  ;;  %716 = vmatpush1.msra.mxu0 %v321_v51 }
  0xa6   :  { %871 = vmatpush1.msra.mxu1 %v321_v51  ;;  %717 = vmatprep.subr.mxu0 %v320_v52 }
  0xa7   :  { %856 = vmatprep.subr.mxu1 %v320_v52  ;;  %718 = vmatpush1.msra.mxu0 %v319_v53 }
  0xa8   :  { %872 = vmatpush1.msra.mxu1 %v319_v53  ;;  %719 = vmatprep.subr.mxu0 %v318_v54  ;;  %v791_v53 = vrot.slane %v786_v45, %v790_v39 }
  0xa9   :  { %857 = vmatprep.subr.mxu1 %v318_v54  ;;  %720 = vmatpush1.msra.mxu0 %v317_v55 }
  0xaa   :  { %873 = vmatpush1.msra.mxu1 %v317_v55  ;;  %721 = vmatprep.subr.mxu0 %v316_v56 }
  0xab   :  { %858 = vmatprep.subr.mxu1 %v316_v56  ;;  %722 = vmatpush1.msra.mxu0 %v315_v57  ;;  %v811_v56 = vrot.slane %v806_v46, %v790_v39 }
  0xac   :  { %874 = vmatpush1.msra.mxu1 %v315_v57  ;;  %723 = vmatprep.subr.mxu0 %v314_v58  ;;  %v795_v57 = vrot.slane %v786_v45, %v794_v40 }
  0xad   :  { %859 = vmatprep.subr.mxu1 %v314_v58  ;;  %724 = vmatpush1.msra.mxu0 %v313_v59 }
  0xae   :  { %875 = vmatpush1.msra.mxu1 %v313_v59  ;;  %725 = vmatprep.subr.mxu0 %v312_v60 }
  0xaf   :  { %860 = vmatprep.subr.mxu1 %v312_v60  ;;  %726 = vmatpush1.msra.mxu0 %v311_v61 }
  0xb0   :  { %876 = vmatpush1.msra.mxu1 %v311_v61  ;;  %727 = vmatprep.subr.mxu0 %v310_v62 }
  0xb1   :  { %861 = vmatprep.subr.mxu1 %v310_v62  ;;  %728 = vmatpush1.msra.mxu0 %v309_v63 }
  0xb2   :  { %877 = vmatpush1.msra.mxu1 %v309_v63  ;;  %761 = vmatprep.mubr.f32.mxu0 %v879_v2 }
  0xb3   :  { %773 = vmatprep.mubr.f32.mxu1 %v879_v2  ;;  %762 = vmatmul.mubr.f32.vlgmr.msra.gmra.mxu0 %v25_v0 }
  0xb4   :  { %774 = vmatmul.mubr.f32.vlgmr.msra.gmra.mxu1 %v43_v1  ;;  %767 = vmatprep.mubr.f32.mxu0 %v879_v2 }
  0xb5   :  { %779 = vmatprep.mubr.f32.mxu1 %v879_v2 }
  0xb7   :  { %768 = vmatmul.mubr.f32.gmra.mxu0 %v34_v3 }
  0xb8   :  { %780 = vmatmul.mubr.f32.gmra.mxu1 %v52_v4 }
 0x103   :  { %v407_v5 = vpop.f32.mrf.mxu0 }
 0x104   :  { %v496_v6 = vpop.f32.mrf.mxu1 }
 0x105   :  { %v409_v7 = vpop.f32.mrf.mxu0  ;;  %v497_v35 = vadd.f32 %v496_v6, %v407_v5 }
 0x106   :  { %v498_v8 = vpop.f32.mrf.mxu1 }
 0x107   :  { %v499_v41 = vadd.f32 %v498_v8, %v409_v7  ;;  %v815_v7 = vrot.slane %v806_v46, %v794_v40 }
 0x138   :  { %v413_v9 = vpop.f32.mrf.mxu0 }
 0x139   :  { %v502_v10 = vpop.f32.mrf.mxu1 }
 0x13a   :  { %v415_v11 = vpop.f32.mrf.mxu0  ;;  %v503_v49 = vadd.f32 %v502_v10, %v413_v9 }
 0x13b   :  { %v504_v12 = vpop.f32.mrf.mxu1 }
 0x13c   :  { %v505_v58 = vadd.f32 %v504_v12, %v415_v11 }
 0x13e   :  { %v419_v13 = vpop.f32.mrf.mxu0 }
 0x13f   :  { %v508_v14 = vpop.f32.mrf.mxu1 }
 0x140   :  { %v421_v15 = vpop.f32.mrf.mxu0  ;;  %v509_v36 = vadd.f32 %v508_v14, %v419_v13 }
 0x141   :  { %v510_v16 = vpop.f32.mrf.mxu1 }
 0x142   :  { %v511_v42 = vadd.f32 %v510_v16, %v421_v15 }
 0x144   :  { %v425_v17 = vpop.f32.mrf.mxu0 }
 0x145   :  { %v514_v18 = vpop.f32.mrf.mxu1 }
 0x146   :  { %v427_v19 = vpop.f32.mrf.mxu0  ;;  %v515_v50 = vadd.f32 %v514_v18, %v425_v17 }
 0x147   :  { %v516_v20 = vpop.f32.mrf.mxu1 }
 0x148   :  { %v517_v59 = vadd.f32 %v516_v20, %v427_v19 }
 0x14b   :  { %v585_v21 = vpop.f32.mrf.mxu0 }
 0x14c   :  { %v674_v22 = vpop.f32.mrf.mxu1  ;;  %v586_v43 = vadd.f32 %v585_v21, %v497_v35 }
 0x14d   :  { %v587_v23 = vpop.f32.mrf.mxu0 }
 0x14e   :  { %v676_v24 = vpop.f32.mrf.mxu1  ;;  %v588_v47 = vadd.f32 %v587_v23, %v499_v41  ;;  %v675_v54 = vadd.f32 %v674_v22, %v586_v43 }
 0x150   :  { %v677_v0 = vadd.f32 %v676_v24, %v588_v47 }
 0x151   :  { %v591_v25 = vpop.f32.mrf.mxu0 }
 0x152   :  { %v592_v60 = vadd.f32 %v591_v25, %v503_v49 }
 0x153   :  { %v593_v27 = vpop.f32.mrf.mxu0 }
 0x154   :  { %v680_v26 = vpop.f32.mrf.mxu1  ;;  %v594_v4 = vadd.f32 %v593_v27, %v505_v58 }
 0x155   :  { %v681_v15 = vadd.f32 %v680_v26, %v592_v60 }
 0x156   :  { %v682_v28 = vpop.f32.mrf.mxu1 }
 0x157   :  { %v597_v29 = vpop.f32.mrf.mxu0  ;;  %v683_v21 = vadd.f32 %v682_v28, %v594_v4 }
 0x158   :  { %v598_v44 = vadd.f32 %v597_v29, %v509_v36 }
 0x159   :  { %v599_v32 = vpop.f32.mrf.mxu0 }
 0x15a   :  { %v686_v30 = vpop.f32.mrf.mxu1  ;;  %v600_v48 = vadd.f32 %v599_v32, %v511_v42 }
 0x15b   :  { %v687_v55 = vadd.f32 %v686_v30, %v598_v44 }
 0x15c   :  { %v688_v33 = vpop.f32.mrf.mxu1 }
 0x15d   :  { %v603_v37 = vpop.f32.mrf.mxu0  ;;  %v689_v1 = vadd.f32 %v688_v33, %v600_v48 }
 0x15e   :  { %v604_v61 = vadd.f32 %v603_v37, %v515_v50 }
 0x15f   :  { %v605_v51 = vpop.f32.mrf.mxu0 }
 0x160   :  { %v692_v38 = vpop.f32.mrf.mxu1  ;;  %v606_v5 = vadd.f32 %v605_v51, %v517_v59 }
 0x161   :  { %v693_v11 = vadd.f32 %v692_v38, %v604_v61 }
 0x162   :  { %v694_v52 = vpop.f32.mrf.mxu1 }
 0x163   :  { %v695_v22 = vadd.f32 %v694_v52, %v606_v5 }
 0x173   :  { %v763_v62 = vpop.f32.mrf.mxu0 }
 0x174   :  { %v775_v63 = vpop.f32.mrf.mxu1  ;;  %v764_v2 = vadd.f32 %v763_v62, %v675_v54 }
 0x175   :  { %v776_v3 = vadd.f32 %v775_v63, %v687_v55  ;;  %v765_v6 = vpop.f32.mrf.mxu0 }
 0x176   :  { %v777_v8 = vpop.f32.mrf.mxu1  ;;  %v798_v9 = vmul.f32 %v791_v53, %v764_v2  ;;  %v766_v13 = vadd.f32 %v765_v6, %v677_v0 }
 0x177   :  { %v802_v10 = vmul.f32 %v791_v53, %v776_v3  ;;  %v778_v14 = vadd.f32 %v777_v8, %v689_v1  ;;  %v769_v12 = vpop.f32.mrf.mxu0 }
 0x178   :  { %v781_v16 = vpop.f32.mrf.mxu1  ;;  %v818_v17 = vadd.f32 %v811_v56, %v798_v9  ;;  %v799_v19 = vmul.f32 %v795_v57, %v766_v13  ;;  %v770_v23 = vadd.f32 %v769_v12, %v681_v15 }
 0x179   :  { %v822_v18 = vadd.f32 %v811_v56, %v802_v10  ;;  %v803_v20 = vmul.f32 %v795_v57, %v778_v14  ;;  %v782_v24 = vadd.f32 %v781_v16, %v693_v11  ;;  %v771_v25 = vpop.f32.mrf.mxu0 }
 0x17a   :  { %v783_v27 = vpop.f32.mrf.mxu1  ;;  %v826_v29 = vmax.f32 %v818_v17, 0.0  ;;  %v819_v31 = vadd.f32 %v815_v7, %v799_v19  ;;  %v800_v33 = vmul.f32 %v791_v53, %v770_v23  ;;  %v772_v26 = vadd.f32 %v771_v25, %v683_v21 }
 0x17b   :  { %v830_v30 = vmax.f32 %v822_v18, 0.0  ;;  %v823_v32 = vadd.f32 %v815_v7, %v803_v20  ;;  %v804_v34 = vmul.f32 %v791_v53, %v782_v24  ;;  %v784_v35 = vadd.f32 %v783_v27, %v695_v22 }
 0x17c   :  { %834 = vst [vmem:[%s1911_s4] sm:$0xff] %v826_v29  ;;  %v827_v28 = vmax.f32 %v819_v31, 0.0  ;;  %v820_v37 = vadd.f32 %v811_v56, %v800_v33  ;;  %v801_v39 = vmul.f32 %v795_v57, %v772_v26 }
 0x17d   :  { %838 = vst [vmem:[%s1911_s4 + $0x20] sm:$0xff] %v830_v30  ;;  %v831_v36 = vmax.f32 %v823_v32, 0.0  ;;  %v824_v38 = vadd.f32 %v811_v56, %v804_v34  ;;  %v805_v40 = vmul.f32 %v795_v57, %v784_v35 }
 0x17e   :  { %835 = vst [vmem:[%s1911_s4 + $0x8] sm:$0xff] %v827_v28  ;;  %v828_v41 = vmax.f32 %v820_v37, 0.0  ;;  %v821_v43 = vadd.f32 %v815_v7, %v801_v39 }
 0x17f   :  { %839 = vst [vmem:[%s1911_s4 + $0x28] sm:$0xff] %v831_v36  ;;  %v832_v42 = vmax.f32 %v824_v38, 0.0  ;;  %v825_v44 = vadd.f32 %v815_v7, %v805_v40 }
 0x180   :  { %836 = vst [vmem:[%s1911_s4 + $0x10] sm:$0xff] %v828_v41  ;;  %v829_v45 = vmax.f32 %v821_v43, 0.0 }
 0x181   :  { %840 = vst [vmem:[%s1911_s4 + $0x30] sm:$0xff] %v832_v42  ;;  %v833_v46 = vmax.f32 %v825_v44, 0.0 }
 0x182   :  { %837 = vst [vmem:[%s1911_s4 + $0x18] sm:$0xff] %v829_v45 }
 0x183   :  { %841 = vst [vmem:[%s1911_s4 + $0x38] sm:$0xff] %v833_v46 }

</bundles_post_ra>
